<compile_context>
chip_gen: v7x
topology: tpu7x:2x2x1
jax: 0.10.0
libtpu: 0.0.40
codegen_flags: <defaults>
</compile_context>

<pallas_src>
import functools

import jax
import jax.numpy as jnp
from jax import lax
from jax.experimental import pallas as pl
from jax.experimental.pallas import tpu as pltpu

EPS = 1e-5     # nn.BatchNorm2d default eps
LANE = 128     # TPU lane width


def _round_up(x, m):
    return (x + m - 1) // m * m


def _vmem_limit_bytes():
    # Generation-aware VMEM cap (review item): ~3/4 of physical VMEM.
    #   v5e/v6e: 128 MiB -> 96 MiB;   v7x: 64 MiB -> 48 MiB.
    try:
        cap = int(pltpu.get_tpu_info().vmem_capacity_bytes)
    except Exception:
        cap = 64 * 1024 * 1024
    return cap * 3 // 4


# ---------------- pass 1: fused im2col conv matmul + per-image channel stats ----------------
def conv_stats_kernel(xp_ref, w_ref, y_ref, sum_ref, sq_ref, *, oh, ow, kh_sz, kw_sz, stride):
    """xp:[s*s,Hq,Wq,C] bf16 (one image, phase-decomposed), w:[KH*KW,C,OCp] bf16.
    Writes y:[OH*OW,OCp] bf16 and per-image sum / sum-of-squares:[1,OCp] f32."""
    m_img = oh * ow
    c = xp_ref.shape[-1]

    acc = None
    for kh in range(kh_sz):
        for kw in range(kw_sz):
            t = kh * kw_sz + kw
            phase = (kh % stride) * stride + (kw % stride)
            hq0 = kh // stride
            wq0 = kw // stride
            # Static contiguous slice — the stride-phase decomposition makes every tap
            # a plain window, no strided/gather access needed.
            x_tap = xp_ref[phase, hq0:hq0 + oh, wq0:wq0 + ow, :]        # (OH, OW, C) bf16
            # Collapse (OH, OW) -> M rows.  Layout-preserving when OW is a multiple of
            # the bf16 sublane pack (16); true for the shapes used here.
            x2 = x_tap.reshape(m_img, c)
            part = jnp.dot(x2, w_ref[t], preferred_element_type=jnp.float32)   # MXU, f32 acc
            acc = part if acc is None else acc + part

    # y intermediate stored in bf16 (halves the pass1->pass2 HBM round trip).
    y_ref[...] = acc.astype(y_ref.dtype)

    # Per-image channel stats from the f32 accumulation, on the XLU (MXU stays free).
    sum_ref[...] = jnp.sum(acc, axis=0, keepdims=True)
    sq_ref[...] = jnp.sum(acc * acc, axis=0, keepdims=True)


# ---------------- pass 2: BN affine + in-kernel transpose to channel-major ----------------
def bn_apply_kernel(y_ref, scale_ref, shift_ref, o_ref):
    y = y_ref[...].astype(jnp.float32)                  # (M_img, OCp)
    o = y * scale_ref[...] + shift_ref[...]             # f32 affine, VPU
    o_t = jnp.transpose(o)                               # (OCp, M_img), XLU (idle slot)
    o_ref[...] = o_t[:o_ref.shape[0], :]                 # keep only the real channels


def conv2d_bn(x, w, b, gamma, beta, *, stride=1, padding=0):
    """Conv2d(stride, padding, dilation=1, groups=1, bias) + BatchNorm2d (batch stats)."""
    # Conv bias is a per-channel constant and is exactly removed by the BN mean
    # subtraction -> intentionally unused.
    del b

    N, C, H, W = x.shape
    OC, _, KH, KW = w.shape
    s = stride
    OH = (H + 2 * padding - KH) // s + 1
    OW = (W + 2 * padding - KW) // s + 1
    M_img = OH * OW
    M = N * M_img

    OC_pad = _round_up(OC, LANE)     # lane dim of y / stats
    OC_out = _round_up(OC, 8)        # sublane dim of the transposed final output

    # --- glue: NHWC, cast to bf16 BEFORE padding (no f32 temporaries), spatial pad,
    #     stride-phase decomposition (same total bytes as the input, no blow-up).
    Hp, Wp = H + 2 * padding, W + 2 * padding
    Hq, Wq = -(-Hp // s), -(-Wp // s)
    xb = jnp.transpose(x, (0, 2, 3, 1)).astype(jnp.bfloat16)
    xp = jnp.pad(xb, ((0, 0),
                      (padding, padding + Hq * s - Hp),
                      (padding, padding + Wq * s - Wp),
                      (0, 0)))
    phases = xp.reshape(N, Hq, s, Wq, s, C).transpose(0, 2, 4, 1, 3, 5).reshape(N, s * s, Hq, Wq, C)

    # Weights as (KH*KW, C, OC_pad) bf16; K ordering matches the tap loop.
    w_t = jnp.transpose(w, (2, 3, 1, 0)).reshape(KH * KW, C, OC)
    w_t = jnp.pad(w_t, ((0, 0), (0, 0), (0, OC_pad - OC))).astype(jnp.bfloat16)

    vmem = _vmem_limit_bytes()

    # --- pass 1: one image per grid step, fully "parallel" (megacore on v7x; no
    #     cross-step accumulation thanks to per-image stat slabs).
    y, psum, psq = pl.pallas_call(
        functools.partial(conv_stats_kernel, oh=OH, ow=OW, kh_sz=KH, kw_sz=KW, stride=s),
        out_shape=(
            jax.ShapeDtypeStruct((N, M_img, OC_pad), jnp.bfloat16),
            jax.ShapeDtypeStruct((N, 1, OC_pad), jnp.float32),
            jax.ShapeDtypeStruct((N, 1, OC_pad), jnp.float32),
        ),
        grid=(N,),
        in_specs=[
            pl.BlockSpec((None, s * s, Hq, Wq, C), lambda n: (n, 0, 0, 0, 0)),
            pl.BlockSpec((KH * KW, C, OC_pad), lambda n: (0, 0, 0)),
        ],
        out_specs=(
            pl.BlockSpec((None, M_img, OC_pad), lambda n: (n, 0, 0)),
            pl.BlockSpec((None, 1, OC_pad), lambda n: (n, 0, 0)),
            pl.BlockSpec((None, 1, OC_pad), lambda n: (n, 0, 0)),
        ),
        compiler_params=pltpu.CompilerParams(
            dimension_semantics=("parallel",),
            vmem_limit_bytes=vmem,
        ),
    )(phases, w_t)

    # --- glue: reduce the tiny per-image partials and fold BN into a single f32 affine.
    mean = jnp.sum(psum, axis=0) / M                     # (1, OC_pad)
    var = jnp.sum(psq, axis=0) / M - mean * mean
    inv_std = lax.rsqrt(var + EPS)
    g = jnp.pad(gamma.reshape(1, OC).astype(jnp.float32), ((0, 0), (0, OC_pad - OC)))
    bb = jnp.pad(beta.reshape(1, OC).astype(jnp.float32), ((0, 0), (0, OC_pad - OC)))
    scale = g * inv_std                                  # (1, OC_pad)
    shift = bb - mean * scale

    # --- pass 2: per-image affine + in-kernel transpose -> channel-major output,
    #     so NCHW is a pure reshape (no XLA transpose round trip).
    out = pl.pallas_call(
        bn_apply_kernel,
        out_shape=jax.ShapeDtypeStruct((N, OC_out, M_img), jnp.float32),
        grid=(N,),
        in_specs=[
            pl.BlockSpec((None, M_img, OC_pad), lambda n: (n, 0, 0)),
            pl.BlockSpec((1, OC_pad), lambda n: (0, 0)),
            pl.BlockSpec((1, OC_pad), lambda n: (0, 0)),
        ],
        out_specs=pl.BlockSpec((None, OC_out, M_img), lambda n: (n, 0, 0)),
        compiler_params=pltpu.CompilerParams(
            dimension_semantics=("parallel",),
            vmem_limit_bytes=vmem,
        ),
    )(y, scale, shift)

    # --- glue: drop padded channels (no-op when OC is a multiple of 8) and reshape.
    return out[:, :OC, :].reshape(N, OC, OH, OW)


# ---------------- references ----------------
def reference(x, w, b, gamma, beta, *, stride=1, padding=0):
    y = lax.conv_general_dilated(
        x.astype(jnp.float32), w.astype(jnp.float32),
        window_strides=(stride, stride),
        padding=[(padding, padding), (padding, padding)],
        dimension_numbers=("NCHW", "OIHW", "NCHW"))
    y = y + b.reshape(1, -1, 1, 1)
    mean = jnp.mean(y, axis=(0, 2, 3), keepdims=True)
    var = jnp.mean((y - mean) ** 2, axis=(0, 2, 3), keepdims=True)
    return gamma.reshape(1, -1, 1, 1) * (y - mean) * lax.rsqrt(var + EPS) \
        + beta.reshape(1, -1, 1, 1)


def reference_matched(x, w, b, gamma, beta, *, stride=1, padding=0):
    """Precision-matched reference: bf16-rounded conv inputs, f32 accumulation and stats,
    bf16-rounded y before the affine (mirrors the kernel's bf16 intermediate)."""
    del b  # cancelled by BN mean subtraction, as in the kernel
    xq = x.astype(jnp.bfloat16).astype(jnp.float32)
    wq = w.astype(jnp.bfloat16).astype(jnp.float32)
    y = lax.conv_general_dilated(
        xq, wq, window_strides=(stride, stride),
        padding=[(padding, padding), (padding, padding)],
        dimension_numbers=("NCHW", "OIHW", "NCHW"))
    mean = jnp.mean(y, axis=(0, 2, 3), keepdims=True)
    var = jnp.mean(y * y, axis=(0, 2, 3), keepdims=True) - mean * mean
    scale = gamma.reshape(1, -1, 1, 1) * lax.rsqrt(var + EPS)
    shift = beta.reshape(1, -1, 1, 1) - mean * scale
    yq = y.astype(jnp.bfloat16).astype(jnp.float32)
    return yq * scale + shift


if __name__ == "__main__":
    # Module config (deterministic, synthetic): in=4, out=8, kernel=3, stride=1, pad=1
    N, C, H, W = 2, 4, 16, 16
    OC, KH, KW = 8, 3, 3
    stride, padding = 1, 1

    key = jax.random.PRNGKey(0)
    kx, kw_, kb = jax.random.split(key, 3)
    x = jax.random.normal(kx, (N, C, H, W), dtype=jnp.float32)
    w = jax.random.normal(kw_, (OC, C, KH, KW), dtype=jnp.float32) * 0.1
    b = jax.random.normal(kb, (OC,), dtype=jnp.float32) * 0.1
    gamma = jnp.ones((OC,), dtype=jnp.float32)   # BatchNorm2d affine init
    beta = jnp.zeros((OC,), dtype=jnp.float32)

    out = conv2d_bn(x, w, b, gamma, beta, stride=stride, padding=padding)
    out = jax.block_until_ready(out)
    assert out.shape == (N, OC, H, W), out.shape

    # Precision-matched reference (bf16 MXU feed + bf16 y intermediate, f32 stats/affine).
    ref_m = reference_matched(x, w, b, gamma, beta, stride=stride, padding=padding)
    err_m = float(jnp.max(jnp.abs(out - ref_m)))
    assert jnp.allclose(out, ref_m, atol=2.5e-2, rtol=2.5e-2), err_m

    # Loose sanity check against the full-f32 module semantics.
    ref_f = reference(x, w, b, gamma, beta, stride=stride, padding=padding)
    err_f = float(jnp.max(jnp.abs(out - ref_f)))
    assert jnp.allclose(out, ref_f, atol=1e-1, rtol=1e-1), err_f

    print("KERNEL_OK")
</pallas_src>

<mosaic_0001>
module attributes {stable_mosaic.version = 11 : i64} {
  func.func @conv_stats_kernel(%arg0: i32, %arg1: memref<1x1x18x18x4xbf16, #tpu.memory_space<vmem>>, %arg2: memref<9x4x128xbf16, #tpu.memory_space<vmem>>, %arg3: memref<1x256x128xbf16, #tpu.memory_space<vmem>>, %arg4: memref<1x1x128xf32, #tpu.memory_space<vmem>>, %arg5: memref<1x1x128xf32, #tpu.memory_space<vmem>>) attributes {dimension_semantics = [#tpu.dimension_semantics<parallel>], iteration_bounds = array<i64: 2>, scalar_prefetch = 0 : i64, scratch_operands = 0 : i64, tpu.core_type = #tpu.core_type<tc>, window_params = [{transform_indices = @transform_0, window_bounds = array<i64: 1, 1, 18, 18, 4>}, {pipeline_mode = #tpu.pipeline_mode<synchronous>, transform_indices = @transform_1, window_bounds = array<i64: 9, 4, 128>}, {transform_indices = @transform_2, window_bounds = array<i64: 1, 256, 128>}, {transform_indices = @transform_3, window_bounds = array<i64: 1, 1, 128>}, {transform_indices = @transform_4, window_bounds = array<i64: 1, 1, 128>}]} {
    %c0 = arith.constant 0 : index
    %c0_0 = arith.constant 0 : index
    %c0_1 = arith.constant 0 : index
    %c0_2 = arith.constant 0 : index
    %c0_3 = arith.constant 0 : index
    %0 = vector.load %arg1[%c0, %c0_0, %c0_1, %c0_2, %c0_3] : memref<1x1x18x18x4xbf16, #tpu.memory_space<vmem>>, vector<1x1x16x16x4xbf16>
    %1 = vector.shape_cast %0 : vector<1x1x16x16x4xbf16> to vector<16x16x4xbf16>
    %2 = vector.shape_cast %1 : vector<16x16x4xbf16> to vector<256x4xbf16>
    %c0_4 = arith.constant 0 : index
    %c0_5 = arith.constant 0 : index
    %c0_6 = arith.constant 0 : index
    %3 = vector.load %arg2[%c0_4, %c0_5, %c0_6] : memref<9x4x128xbf16, #tpu.memory_space<vmem>>, vector<1x4x128xbf16>
    %4 = vector.shape_cast %3 : vector<1x4x128xbf16> to vector<4x128xbf16>
    %cst = arith.constant dense<0.000000e+00> : vector<256x128xf32>
    %5 = tpu.matmul %2, %4, %cst {dimension_numbers = #tpu.dot_dimension_numbers<[1], [0], [0], [1], [0, 0, 1, 1], [], []>} : vector<256x4xbf16>, vector<4x128xbf16>, vector<256x128xf32> -> vector<256x128xf32>
    %c0_7 = arith.constant 0 : index
    %c0_8 = arith.constant 0 : index
    %c0_9 = arith.constant 0 : index
    %c1 = arith.constant 1 : index
    %c0_10 = arith.constant 0 : index
    %6 = vector.load %arg1[%c0_7, %c0_8, %c0_9, %c1, %c0_10] : memref<1x1x18x18x4xbf16, #tpu.memory_space<vmem>>, vector<1x1x16x16x4xbf16>
    %7 = vector.shape_cast %6 : vector<1x1x16x16x4xbf16> to vector<16x16x4xbf16>
    %8 = vector.shape_cast %7 : vector<16x16x4xbf16> to vector<256x4xbf16>
    %c1_11 = arith.constant 1 : index
    %c0_12 = arith.constant 0 : index
    %c0_13 = arith.constant 0 : index
    %9 = vector.load %arg2[%c1_11, %c0_12, %c0_13] : memref<9x4x128xbf16, #tpu.memory_space<vmem>>, vector<1x4x128xbf16>
    %10 = vector.shape_cast %9 : vector<1x4x128xbf16> to vector<4x128xbf16>
    %cst_14 = arith.constant dense<0.000000e+00> : vector<256x128xf32>
    %11 = tpu.matmul %8, %10, %cst_14 {dimension_numbers = #tpu.dot_dimension_numbers<[1], [0], [0], [1], [0, 0, 1, 1], [], []>} : vector<256x4xbf16>, vector<4x128xbf16>, vector<256x128xf32> -> vector<256x128xf32>
    %12 = arith.addf %5, %11 : vector<256x128xf32>
    %c0_15 = arith.constant 0 : index
    %c0_16 = arith.constant 0 : index
    %c0_17 = arith.constant 0 : index
    %c2 = arith.constant 2 : index
    %c0_18 = arith.constant 0 : index
    %13 = vector.load %arg1[%c0_15, %c0_16, %c0_17, %c2, %c0_18] : memref<1x1x18x18x4xbf16, #tpu.memory_space<vmem>>, vector<1x1x16x16x4xbf16>
    %14 = vector.shape_cast %13 : vector<1x1x16x16x4xbf16> to vector<16x16x4xbf16>
    %15 = vector.shape_cast %14 : vector<16x16x4xbf16> to vector<256x4xbf16>
    %c2_19 = arith.constant 2 : index
    %c0_20 = arith.constant 0 : index
    %c0_21 = arith.constant 0 : index
    %16 = vector.load %arg2[%c2_19, %c0_20, %c0_21] : memref<9x4x128xbf16, #tpu.memory_space<vmem>>, vector<1x4x128xbf16>
    %17 = vector.shape_cast %16 : vector<1x4x128xbf16> to vector<4x128xbf16>
    %cst_22 = arith.constant dense<0.000000e+00> : vector<256x128xf32>
    %18 = tpu.matmul %15, %17, %cst_22 {dimension_numbers = #tpu.dot_dimension_numbers<[1], [0], [0], [1], [0, 0, 1, 1], [], []>} : vector<256x4xbf16>, vector<4x128xbf16>, vector<256x128xf32> -> vector<256x128xf32>
    %19 = arith.addf %12, %18 : vector<256x128xf32>
    %c0_23 = arith.constant 0 : index
    %c0_24 = arith.constant 0 : index
    %c1_25 = arith.constant 1 : index
    %c0_26 = arith.constant 0 : index
    %c0_27 = arith.constant 0 : index
    %20 = vector.load %arg1[%c0_23, %c0_24, %c1_25, %c0_26, %c0_27] : memref<1x1x18x18x4xbf16, #tpu.memory_space<vmem>>, vector<1x1x16x16x4xbf16>
    %21 = vector.shape_cast %20 : vector<1x1x16x16x4xbf16> to vector<16x16x4xbf16>
    %22 = vector.shape_cast %21 : vector<16x16x4xbf16> to vector<256x4xbf16>
    %c3 = arith.constant 3 : index
    %c0_28 = arith.constant 0 : index
    %c0_29 = arith.constant 0 : index
    %23 = vector.load %arg2[%c3, %c0_28, %c0_29] : memref<9x4x128xbf16, #tpu.memory_space<vmem>>, vector<1x4x128xbf16>
    %24 = vector.shape_cast %23 : vector<1x4x128xbf16> to vector<4x128xbf16>
    %cst_30 = arith.constant dense<0.000000e+00> : vector<256x128xf32>
    %25 = tpu.matmul %22, %24, %cst_30 {dimension_numbers = #tpu.dot_dimension_numbers<[1], [0], [0], [1], [0, 0, 1, 1], [], []>} : vector<256x4xbf16>, vector<4x128xbf16>, vector<256x128xf32> -> vector<256x128xf32>
    %26 = arith.addf %19, %25 : vector<256x128xf32>
    %c0_31 = arith.constant 0 : index
    %c0_32 = arith.constant 0 : index
    %c1_33 = arith.constant 1 : index
    %c1_34 = arith.constant 1 : index
    %c0_35 = arith.constant 0 : index
    %27 = vector.load %arg1[%c0_31, %c0_32, %c1_33, %c1_34, %c0_35] : memref<1x1x18x18x4xbf16, #tpu.memory_space<vmem>>, vector<1x1x16x16x4xbf16>
    %28 = vector.shape_cast %27 : vector<1x1x16x16x4xbf16> to vector<16x16x4xbf16>
    %29 = vector.shape_cast %28 : vector<16x16x4xbf16> to vector<256x4xbf16>
    %c4 = arith.constant 4 : index
    %c0_36 = arith.constant 0 : index
    %c0_37 = arith.constant 0 : index
    %30 = vector.load %arg2[%c4, %c0_36, %c0_37] : memref<9x4x128xbf16, #tpu.memory_space<vmem>>, vector<1x4x128xbf16>
    %31 = vector.shape_cast %30 : vector<1x4x128xbf16> to vector<4x128xbf16>
    %cst_38 = arith.constant dense<0.000000e+00> : vector<256x128xf32>
    %32 = tpu.matmul %29, %31, %cst_38 {dimension_numbers = #tpu.dot_dimension_numbers<[1], [0], [0], [1], [0, 0, 1, 1], [], []>} : vector<256x4xbf16>, vector<4x128xbf16>, vector<256x128xf32> -> vector<256x128xf32>
    %33 = arith.addf %26, %32 : vector<256x128xf32>
    %c0_39 = arith.constant 0 : index
    %c0_40 = arith.constant 0 : index
    %c1_41 = arith.constant 1 : index
    %c2_42 = arith.constant 2 : index
    %c0_43 = arith.constant 0 : index
    %34 = vector.load %arg1[%c0_39, %c0_40, %c1_41, %c2_42, %c0_43] : memref<1x1x18x18x4xbf16, #tpu.memory_space<vmem>>, vector<1x1x16x16x4xbf16>
    %35 = vector.shape_cast %34 : vector<1x1x16x16x4xbf16> to vector<16x16x4xbf16>
    %36 = vector.shape_cast %35 : vector<16x16x4xbf16> to vector<256x4xbf16>
    %c5 = arith.constant 5 : index
    %c0_44 = arith.constant 0 : index
    %c0_45 = arith.constant 0 : index
    %37 = vector.load %arg2[%c5, %c0_44, %c0_45] : memref<9x4x128xbf16, #tpu.memory_space<vmem>>, vector<1x4x128xbf16>
    %38 = vector.shape_cast %37 : vector<1x4x128xbf16> to vector<4x128xbf16>
    %cst_46 = arith.constant dense<0.000000e+00> : vector<256x128xf32>
    %39 = tpu.matmul %36, %38, %cst_46 {dimension_numbers = #tpu.dot_dimension_numbers<[1], [0], [0], [1], [0, 0, 1, 1], [], []>} : vector<256x4xbf16>, vector<4x128xbf16>, vector<256x128xf32> -> vector<256x128xf32>
    %40 = arith.addf %33, %39 : vector<256x128xf32>
    %c0_47 = arith.constant 0 : index
    %c0_48 = arith.constant 0 : index
    %c2_49 = arith.constant 2 : index
    %c0_50 = arith.constant 0 : index
    %c0_51 = arith.constant 0 : index
    %41 = vector.load %arg1[%c0_47, %c0_48, %c2_49, %c0_50, %c0_51] : memref<1x1x18x18x4xbf16, #tpu.memory_space<vmem>>, vector<1x1x16x16x4xbf16>
    %42 = vector.shape_cast %41 : vector<1x1x16x16x4xbf16> to vector<16x16x4xbf16>
    %43 = vector.shape_cast %42 : vector<16x16x4xbf16> to vector<256x4xbf16>
    %c6 = arith.constant 6 : index
    %c0_52 = arith.constant 0 : index
    %c0_53 = arith.constant 0 : index
    %44 = vector.load %arg2[%c6, %c0_52, %c0_53] : memref<9x4x128xbf16, #tpu.memory_space<vmem>>, vector<1x4x128xbf16>
    %45 = vector.shape_cast %44 : vector<1x4x128xbf16> to vector<4x128xbf16>
    %cst_54 = arith.constant dense<0.000000e+00> : vector<256x128xf32>
    %46 = tpu.matmul %43, %45, %cst_54 {dimension_numbers = #tpu.dot_dimension_numbers<[1], [0], [0], [1], [0, 0, 1, 1], [], []>} : vector<256x4xbf16>, vector<4x128xbf16>, vector<256x128xf32> -> vector<256x128xf32>
    %47 = arith.addf %40, %46 : vector<256x128xf32>
    %c0_55 = arith.constant 0 : index
    %c0_56 = arith.constant 0 : index
    %c2_57 = arith.constant 2 : index
    %c1_58 = arith.constant 1 : index
    %c0_59 = arith.constant 0 : index
    %48 = vector.load %arg1[%c0_55, %c0_56, %c2_57, %c1_58, %c0_59] : memref<1x1x18x18x4xbf16, #tpu.memory_space<vmem>>, vector<1x1x16x16x4xbf16>
    %49 = vector.shape_cast %48 : vector<1x1x16x16x4xbf16> to vector<16x16x4xbf16>
    %50 = vector.shape_cast %49 : vector<16x16x4xbf16> to vector<256x4xbf16>
    %c7 = arith.constant 7 : index
    %c0_60 = arith.constant 0 : index
    %c0_61 = arith.constant 0 : index
    %51 = vector.load %arg2[%c7, %c0_60, %c0_61] : memref<9x4x128xbf16, #tpu.memory_space<vmem>>, vector<1x4x128xbf16>
    %52 = vector.shape_cast %51 : vector<1x4x128xbf16> to vector<4x128xbf16>
    %cst_62 = arith.constant dense<0.000000e+00> : vector<256x128xf32>
    %53 = tpu.matmul %50, %52, %cst_62 {dimension_numbers = #tpu.dot_dimension_numbers<[1], [0], [0], [1], [0, 0, 1, 1], [], []>} : vector<256x4xbf16>, vector<4x128xbf16>, vector<256x128xf32> -> vector<256x128xf32>
    %54 = arith.addf %47, %53 : vector<256x128xf32>
    %c0_63 = arith.constant 0 : index
    %c0_64 = arith.constant 0 : index
    %c2_65 = arith.constant 2 : index
    %c2_66 = arith.constant 2 : index
    %c0_67 = arith.constant 0 : index
    %55 = vector.load %arg1[%c0_63, %c0_64, %c2_65, %c2_66, %c0_67] : memref<1x1x18x18x4xbf16, #tpu.memory_space<vmem>>, vector<1x1x16x16x4xbf16>
    %56 = vector.shape_cast %55 : vector<1x1x16x16x4xbf16> to vector<16x16x4xbf16>
    %57 = vector.shape_cast %56 : vector<16x16x4xbf16> to vector<256x4xbf16>
    %c8 = arith.constant 8 : index
    %c0_68 = arith.constant 0 : index
    %c0_69 = arith.constant 0 : index
    %58 = vector.load %arg2[%c8, %c0_68, %c0_69] : memref<9x4x128xbf16, #tpu.memory_space<vmem>>, vector<1x4x128xbf16>
    %59 = vector.shape_cast %58 : vector<1x4x128xbf16> to vector<4x128xbf16>
    %cst_70 = arith.constant dense<0.000000e+00> : vector<256x128xf32>
    %60 = tpu.matmul %57, %59, %cst_70 {dimension_numbers = #tpu.dot_dimension_numbers<[1], [0], [0], [1], [0, 0, 1, 1], [], []>} : vector<256x4xbf16>, vector<4x128xbf16>, vector<256x128xf32> -> vector<256x128xf32>
    %61 = arith.addf %54, %60 : vector<256x128xf32>
    %62 = arith.truncf %61 : vector<256x128xf32> to vector<256x128xbf16>
    %c0_71 = arith.constant 0 : index
    %c0_72 = arith.constant 0 : index
    %c0_73 = arith.constant 0 : index
    %63 = vector.load %arg3[%c0_71, %c0_72, %c0_73] : memref<1x256x128xbf16, #tpu.memory_space<vmem>>, vector<1x256x128xbf16>
    %64 = vector.shape_cast %63 : vector<1x256x128xbf16> to vector<256x128xbf16>
    %65 = vector.shape_cast %62 : vector<256x128xbf16> to vector<1x256x128xbf16>
    tpu.vector_store %arg3[%c0_71, %c0_72, %c0_73], %65 {strides = array<i32>} : memref<1x256x128xbf16, #tpu.memory_space<vmem>>, vector<1x256x128xbf16>,
    %cst_74 = arith.constant dense<0.000000e+00> : vector<128xf32>
    %66 = vector.multi_reduction <add>, %61, %cst_74 [0] : vector<256x128xf32> to vector<128xf32>
    %67 = vector.shape_cast %66 : vector<128xf32> to vector<1x128xf32>
    %c0_75 = arith.constant 0 : index
    %c0_76 = arith.constant 0 : index
    %c0_77 = arith.constant 0 : index
    %68 = vector.load %arg4[%c0_75, %c0_76, %c0_77] : memref<1x1x128xf32, #tpu.memory_space<vmem>>, vector<1x1x128xf32>
    %69 = vector.shape_cast %68 : vector<1x1x128xf32> to vector<1x128xf32>
    %70 = vector.shape_cast %67 : vector<1x128xf32> to vector<1x1x128xf32>
    tpu.vector_store %arg4[%c0_75, %c0_76, %c0_77], %70 {strides = array<i32>} : memref<1x1x128xf32, #tpu.memory_space<vmem>>, vector<1x1x128xf32>,
    %71 = arith.mulf %61, %61 : vector<256x128xf32>
    %cst_78 = arith.constant dense<0.000000e+00> : vector<128xf32>
    %72 = vector.multi_reduction <add>, %71, %cst_78 [0] : vector<256x128xf32> to vector<128xf32>
    %73 = vector.shape_cast %72 : vector<128xf32> to vector<1x128xf32>
    %c0_79 = arith.constant 0 : index
    %c0_80 = arith.constant 0 : index
    %c0_81 = arith.constant 0 : index
    %74 = vector.load %arg5[%c0_79, %c0_80, %c0_81] : memref<1x1x128xf32, #tpu.memory_space<vmem>>, vector<1x1x128xf32>
    %75 = vector.shape_cast %74 : vector<1x1x128xf32> to vector<1x128xf32>
    %76 = vector.shape_cast %73 : vector<1x128xf32> to vector<1x1x128xf32>
    tpu.vector_store %arg5[%c0_79, %c0_80, %c0_81], %76 {strides = array<i32>} : memref<1x1x128xf32, #tpu.memory_space<vmem>>, vector<1x1x128xf32>,
    return
  }
  func.func @transform_0(%arg0: i32) -> (i32, i32, i32, i32, i32) {
    %c0_i32 = arith.constant 0 : i32
    %c0_i32_0 = arith.constant 0 : i32
    %c0_i32_1 = arith.constant 0 : i32
    %c0_i32_2 = arith.constant 0 : i32
    %c0_i32_3 = arith.constant 0 : i32
    return %arg0, %c0_i32, %c0_i32_0, %c0_i32_1, %c0_i32_2 : i32, i32, i32, i32, i32
  }
  func.func @transform_1(%arg0: i32) -> (i32, i32, i32) {
    %c0_i32 = arith.constant 0 : i32
    %c0_i32_0 = arith.constant 0 : i32
    %c0_i32_1 = arith.constant 0 : i32
    %c0_i32_2 = arith.constant 0 : i32
    return %c0_i32, %c0_i32_0, %c0_i32_1 : i32, i32, i32
  }
  func.func @transform_2(%arg0: i32) -> (i32, i32, i32) {
    %c0_i32 = arith.constant 0 : i32
    %c0_i32_0 = arith.constant 0 : i32
    %c0_i32_1 = arith.constant 0 : i32
    return %arg0, %c0_i32, %c0_i32_0 : i32, i32, i32
  }
  func.func @transform_3(%arg0: i32) -> (i32, i32, i32) {
    %c0_i32 = arith.constant 0 : i32
    %c0_i32_0 = arith.constant 0 : i32
    %c0_i32_1 = arith.constant 0 : i32
    return %arg0, %c0_i32, %c0_i32_0 : i32, i32, i32
  }
  func.func @transform_4(%arg0: i32) -> (i32, i32, i32) {
    %c0_i32 = arith.constant 0 : i32
    %c0_i32_0 = arith.constant 0 : i32
    %c0_i32_1 = arith.constant 0 : i32
    return %arg0, %c0_i32, %c0_i32_0 : i32, i32, i32
  }
}

</mosaic_0001>

<bundles_post_ra>
// kernel: tpu_custom_call.1
= control target key start
LH: loop header
LB: loop body
LE: loop exit
PB: predicated region body
PF: predicated region fallthrough
CT: control target
= control target key end

     0   :  { %10 = vsyncpa [#allocation3], 0  ;;  %s8859_s0 = inlined_call_operand.vmem [shape: bf16[2,1,18,18,4], index: 0, kind: input, shape index: {}]   ;;  %s8860_s1 = inlined_call_operand.vmem [shape: bf16[9,4,128], index: 1, kind: input, shape index: {}]   ;;  %s8861_s2 = inlined_call_operand.hbm [shape: bf16[2,256,128], index: 2, kind: output, shape index: {0}]   ;;  %s8862_s3 = inlined_call_operand.hbm [shape: f32[2,1,128], index: 3, kind: output, shape index: {1}]   ;;  %s8863_s4 = inlined_call_operand.hbm [shape: f32[2,1,128], index: 4, kind: output, shape index: {2}]  }
   0x1   :  { %12 = vsyncpa [#allocation3 + $0x1], 0 }
   0x2   :  { %13 = vsyncpa [#allocation5], 0 }
   0x3   :  { %15 = vsyncpa [#allocation5 + $0x1], 0  ;;  %s6950_s15 = smov 0   ;;  %s6952_s16 = smov 0  }
   0x4   :  { %s6954_s17 = smov 0   ;;  %s6956_s18 = smov 0  }
   0x5 LB: > { %s6971_s19 = sadd.s32 4294967295, %s6918_s18   ;;  %s5203_s20 = sadd.s32 4294967294, %s6918_s18   ;;  %s6918_s18 = sphi %s6956_s18, %s8936_s18   ;;  %s6914_s17 = sphi %s6954_s17, %s8935_s17   ;;  %s6910_s16 = sphi %s6952_s16, %s8934_s16   ;;  %s6906_s15 = sphi %s6950_s15, %s8933_s15  }
   0x6   : > { %s6975_s21 = sadd.s32 1, %s6918_s18   ;;  %s75_s22 = sadd.s32 1, %s6914_s17 }
   0x7   : > { %s72_s23 = ssub.s32 %s6918_s18, %s6975_s21  ;;  %p85_p0 = scmp.ne.s32.totalorder %s6914_s17, %s6910_s16 }
   0x8   : > { %p73_p1 = scmp.eq.s32.totalorder %s72_s23, 0  ;;  %p86_p2 = scmp.eq.s32.totalorder %s6971_s19, 1 }
   0x9   : > { %p91_p3 = scmp.ne.s32.totalorder %s6910_s16, %s6906_s15  ;;  %p92_p4 = scmp.eq.s32.totalorder %s5203_s20, 1 }
   0xa   : > { %s6988_s24 = scalar_select %p73_p1, %s6914_s17, %s75_s22  }
   0xb   : > { %p6990_p5 = por %p86_p2, %p85_p0  ;;  %p6994_p6 = por %p92_p4, %p91_p3 }
   0xc   : > { %p5206_p7 = scmp.ge.s32.totalorder %s6918_s18, 1  ;;  %p173_p8 = scmp.lt.s32.totalorder %s6918_s18, 3 }
   0xe   : > { %p174_p9 = pnand %p5206_p7, %p173_p8 }
  0x10   : > { %177 = sbr.rel (%p174_p9) target bundleno = 659 (0x293), region = 28 }
  0x17   : > { %v5209_v0 = vld [vmem:[%s8860_s1 + $0x2] sm:$0x3]  ;;  %vm748_vm0 = vcmask 1041408   ;;  %v5436_v1 = vld [vmem:[%s8860_s1 + $0x8] sm:$0x3]  ;;  %p207_p10 = scmp.lt.s32.totalorder %s6971_s19, 1 }
  0x18   : > { %6629 = vmatprep.subr.msk.bf16.mxu1 %vm748_vm0, %v5209_v0  ;;  %6633 = vmatprep.subr.msk.bf16.mxu0 %vm748_vm0, %v5436_v1  ;;  %v750_v2 = vsel %vm748_vm0, %v5209_v0, 0  ;;  %v7011_v3 = vsel %vm748_vm0, %v5436_v1, 0  ;;  %v245_v4 = vld [vmem:[%s8860_s1] sm:$0x3]  ;;  %v5501_v5 = vld [vmem:[%s8860_s1 + $0xa] sm:$0x3] }
  0x19   : > { %8879 = vst [vmem:[#allocation9_spill] sm:$0xff] %v7011_v3  ;;  %6066 = vmatpush3.bf16.msra.mxu1 %v750_v2  ;;  %6202 = vmatpush3.bf16.msra.mxu0 %v7011_v3  ;;  %s208_s5 = scalar_select %p207_p10, %s6971_s19, 1  ;;  %vm262_vm1 = vsmask.f32 3328  ;;  %vm263_vm2 = vsmask.f32 7440 }
  0x1a   : > { %6630 = vmatprep.subr.msk.bf16.mxu1 %vm748_vm0, %v245_v4  ;;  %6635 = vmatprep.subr.msk.bf16.mxu0 %vm748_vm0, %v5501_v5  ;;  %vm699_vm3 = vcmask 31744   ;;  %v7039_v17 = vsel %vm748_vm0, %v245_v4, 0  ;;  %v7045_v26 = vld [vmem:[%s8860_s1 + $0xc] sm:$0x3]  ;;  %vm7052_vm4 = vmor %vm262_vm1, %vm263_vm2  ;;  %v7058_v37 = vsel %vm748_vm0, %v5501_v5, 0  ;;  %vm1253_vm5 = vcmask 1042432  }
  0x1b   : > { %s6639_s10 = smul.u32 216, %s208_s5  ;;  %v7062_v41 = vsel %vm748_vm0, %v7045_v26, 0  ;;  %vm1254_vm6 = vcmask 1046532   ;;  %s8713_s12 = sand.u32 1, %s6910_s16  }
  0x1c   : > { %vm7278_vm7 = vmor %vm1253_vm5, %vm1254_vm6  ;;  %s5816_s22 = sshll.u32 %s6971_s19, 11  ;;  %s5041_s30 = scalar_lea.sflag [#allocation3], %s8713_s12 }
  0x1d   : > { %s7026_s13 = scalar_lea.vmem %s8859_s0, %s6639_s10  ;;  %s8742_s29 = scalar_lea.hbm %s8861_s2, %s5816_s22 }
  0x1e   : > { %v213_v6 = vld [vmem:[%s7026_s13] sm:$0xf]  ;;  %v214_v7 = vld [vmem:[%s7026_s13 + $0x4] sm:$0xf]  ;;  %v246_v8 = vld [vmem:[%s7026_s13 + $0x8] sm:$0x1] }
  0x1f   : > { %v266_v9 = vshrl.u32 %v213_v6, 16  ;;  %v269_v10 = vshll.u32 %v213_v6, 16  ;;  %v275_v11 = vshll.u32 %v214_v7, 16  ;;  %v279_v12 = vshrl.u32 %v214_v7, 16  ;;  %v5388_v13 = vld [vmem:[%s7026_s13 + $0xc] sm:$0xf] }
  0x20   : > { %v285_v14 = vshll.u32 %v246_v8, 16  ;;  %v7033_v15 = vld [vmem:[%s7026_s13 + $0x10] sm:$0xf]  ;;  %v7036_v16 = vld [vmem:[%s7026_s13 + $0x14] sm:$0x1]  ;;  %v2070_v23 = vshrl.u32 %v5388_v13, 16 }
  0x21   : > { %v268_v18 = vrot.slane %v266_v9, 4  ;;  %v271_v19 = vrot.slane %v269_v10, 5  ;;  %v277_v20 = vrot.slane %v275_v11, 5  ;;  %v281_v21 = vrot.slane %v279_v12, 4  ;;  %v215_v31 = vld [vmem:[%s7026_s13 + $0xc] sm:$0xf] }
  0x22   : > { %v287_v22 = vrot.slane %v285_v14, 5  ;;  %v2073_v24 = vshll.u32 %v5388_v13, 16  ;;  %v2079_v25 = vshll.u32 %v7033_v15, 16  ;;  %v2083_v29 = vshrl.u32 %v7033_v15, 16  ;;  %v216_v36 = vld [vmem:[%s7026_s13 + $0x10] sm:$0xf] }
  0x23   : > { %v272_v27 = vor.u32 %v271_v19, %v268_v18  ;;  %v282_v28 = vor.u32 %v281_v21, %v277_v20  ;;  %v2089_v30 = vshll.u32 %v7036_v16, 16  ;;  %v2072_v33 = vrot.slane %v2070_v23, 4  ;;  %v247_v44 = vld [vmem:[%s7026_s13 + $0x14] sm:$0x1]  ;;  %v5391_v55 = vld [vmem:[%s7026_s13 + $0x18] sm:$0xf] }
  0x24   : > { %v2075_v34 = vrot.slane %v2073_v24, 5  ;;  %v2081_v35 = vrot.slane %v2079_v25, 5  ;;  %v2085_v40 = vrot.slane %v2083_v29, 4  ;;  %v290_v45 = vshrl.u32 %v215_v31, 16  ;;  %v7071_v60 = vld [vmem:[%s7026_s13 + $0x1c] sm:$0xf] }
  0x25   : > { %v273_v38 = vrot.slane %v272_v27, 4  ;;  %v283_v39 = vrot.slane %v282_v28, 4  ;;  %v2091_v43 = vrot.slane %v2089_v30, 5  ;;  %v293_v46 = vshll.u32 %v215_v31, 16  ;;  %v7079_v1 = vld [vmem:[%s7026_s13 + $0x20] sm:$0x1] }
  0x26   : > { %v2076_v42 = vor.u32 %v2075_v34, %v2072_v33  ;;  %v2086_v49 = vor.u32 %v2085_v40, %v2081_v35  ;;  %v299_v50 = vshll.u32 %v216_v36, 16  ;;  %v292_v53 = vrot.slane %v290_v45, 4  ;;  %v217_v18 = vld [vmem:[%s7026_s13 + $0x18] sm:$0xf]  ;;  %v218_v23 = vld [vmem:[%s7026_s13 + $0x1c] sm:$0xf] }
  0x27   : > { %v278_v47 = vsel %vm7052_vm4, %v273_v38, %v277_v20  ;;  %v288_v48 = vsel %vm7052_vm4, %v283_v39, %v287_v22  ;;  %v295_v54 = vrot.slane %v293_v46, 5  ;;  %v303_v58 = vshrl.u32 %v216_v36, 16  ;;  %v248_v31 = vld [vmem:[%s7026_s13 + $0x20] sm:$0x1]  ;;  %v5394_v40 = vld [vmem:[%s7026_s13 + $0x24] sm:$0xf] }
  0x28   : > { %v5210_v51 = vcombine.low %v278_v47, %v288_v48  ;;  %v2077_v52 = vrot.slane %v2076_v42, 4  ;;  %v2087_v56 = vrot.slane %v2086_v49, 4  ;;  %v301_v57 = vrot.slane %v299_v50, 5  ;;  %v7102_v46 = vld [vmem:[%s7026_s13 + $0x28] sm:$0xf]  ;;  %s6920_s6 = smov [#allocation2]  }
  0x29   : > { %v309_v59 = vshll.u32 %v247_v44, 16  ;;  %v2813_v62 = vrot.slane %v7033_v15, 5  ;;  %v2816_v63 = vrot.slane %v7036_v16, 5  ;;  %v296_v0 = vor.u32 %v295_v54, %v292_v53  ;;  %v7111_v54 = vld [vmem:[%s7026_s13 + $0x2c] sm:$0x1]  ;;  %s6800_s7 = sshll.u32 %s6920_s6, 4  ;;  %s6801_s7 = int_to_ptr.vmem [resolvable:$false] %s6800_s7 }
  0x2a   : > { %6067 = vmatprep.mubr.msk.bf16.mxu1 %vm699_vm3, %v5210_v51  ;;  %v2082_v61 = vsel %vm7052_vm4, %v2077_v52, %v2081_v35  ;;  %v2092_v2 = vsel %vm7052_vm4, %v2087_v56, %v2091_v43  ;;  %v305_v4 = vrot.slane %v303_v58, 4  ;;  %v2094_v6 = vshrl.u32 %v5391_v55, 16  ;;  %v5290_v51 = vld [vmem:[%s8860_s1 + $0x4] sm:$0x3]  ;;  %v7311_v16 = vld [vmem:[%s7026_s13 + $0x7c] sm:$0xf] }
  0x2b   : > { %v311_v5 = vrot.slane %v309_v59, 5  ;;  %v5437_v7 = vcombine.low %v2082_v61, %v2092_v2  ;;  %v297_v8 = vrot.slane %v296_v0, 4  ;;  %v2097_v9 = vshll.u32 %v5391_v55, 16  ;;  %v219_v0 = vld [vmem:[%s7026_s13 + $0x24] sm:$0xf]  ;;  %s6802_s8 = scalar_lea.vmem %s6801_s7, 4096 }
  0x2c   : > { %v2103_v10 = vshll.u32 %v7071_v60, 16  ;;  %v306_v11 = vor.u32 %v305_v4, %v301_v57  ;;  %v2096_v12 = vrot.slane %v2094_v6, 4  ;;  %v2107_v13 = vshrl.u32 %v7071_v60, 16 }
  0x2d   : > { %v2113_v14 = vshll.u32 %v7079_v1, 16  ;;  %6203 = vmatprep.mubr.msk.bf16.mxu0 %vm699_vm3, %v5437_v7  ;;  %v302_v19 = vsel %vm7052_vm4, %v297_v8, %v301_v57  ;;  %v2099_v20 = vrot.slane %v2097_v9, 5  ;;  %v2820_v22 = vrot.slane %v7071_v60, 5  ;;  %v220_v7 = vld [vmem:[%s7026_s13 + $0x28] sm:$0xf] }
  0x2e   : > { %v2105_v21 = vrot.slane %v2103_v10, 5  ;;  %v307_v24 = vrot.slane %v306_v11, 4  ;;  %v2109_v25 = vrot.slane %v2107_v13, 4  ;;  %v2823_v28 = vrot.slane %v7079_v1, 5  ;;  %v249_v13 = vld [vmem:[%s7026_s13 + $0x2c] sm:$0x1] }
  0x2f   : > { %v2115_v27 = vrot.slane %v2113_v14, 5  ;;  %v2100_v29 = vor.u32 %v2099_v20, %v2096_v12  ;;  %v7095_v30 = vrot.slane %v2820_v22, 4  ;;  %v314_v33 = vshrl.u32 %v217_v18, 16 }
  0x30   : > { %v317_v34 = vshll.u32 %v217_v18, 16  ;;  %v312_v35 = vsel %vm7052_vm4, %v307_v24, %v311_v5  ;;  %v2110_v36 = vor.u32 %v2109_v25, %v2105_v21  ;;  %v323_v38 = vshll.u32 %v218_v23, 16  ;;  %v5397_v24 = vld [vmem:[%s7026_s13 + $0x30] sm:$0xf] }
  0x31   : > { %v327_v39 = vshrl.u32 %v218_v23, 16  ;;  %v5211_v42 = vcombine.low %v302_v19, %v312_v35  ;;  %v2101_v43 = vrot.slane %v2100_v29, 4  ;;  %v316_v44 = vrot.slane %v314_v33, 4  ;;  %v7131_v33 = vld [vmem:[%s7026_s13 + $0x34] sm:$0xf] }
  0x32   : > { %v319_v45 = vrot.slane %v317_v34, 5  ;;  %v2111_v47 = vrot.slane %v2110_v36, 4  ;;  %v325_v48 = vrot.slane %v323_v38, 5  ;;  %v333_v50 = vshll.u32 %v248_v31, 16 }
  0x33   : > { %v329_v49 = vrot.slane %v327_v39, 4  ;;  %6068 = vmatmul.mubr.msk.bf16.vlgmr.msra.gmra.mrb[0].mxu1 %vm699_vm3, %v5211_v42  ;;  %v2106_v52 = vsel %vm7052_vm4, %v2101_v43, %v2105_v21  ;;  %v2118_v55 = vshrl.u32 %v5394_v40, 16  ;;  %v2121_v56 = vshll.u32 %v5394_v40, 16  ;;  %v7139_v40 = vld [vmem:[%s7026_s13 + $0x38] sm:$0x1] }
  0x34   : > { %v320_v53 = vor.u32 %v319_v45, %v316_v44  ;;  %6100 = vmatpush3.bf16.msra.mxu1 %v7039_v17  ;;  %v2116_v57 = vsel %vm7052_vm4, %v2111_v47, %v2115_v27  ;;  %v335_v59 = vrot.slane %v333_v50, 5  ;;  %v2127_v61 = vshll.u32 %v7102_v46, 16 }
  0x35   : > { %v330_v58 = vor.u32 %v329_v49, %v325_v48  ;;  %v5438_v2 = vcombine.low %v2106_v52, %v2116_v57  ;;  %v2120_v5 = vrot.slane %v2118_v55, 4  ;;  %v2123_v6 = vrot.slane %v2121_v56, 5  ;;  %6631 = vmatprep.subr.msk.bf16.mxu1 %vm748_vm0, %v5290_v51  ;;  %v221_v52 = vld [vmem:[%s7026_s13 + $0x30] sm:$0xf] }
  0x36   : > { %v321_v4 = vrot.slane %v320_v53, 4  ;;  %v2129_v9 = vrot.slane %v2127_v61, 5  ;;  %v2131_v17 = vshrl.u32 %v7102_v46, 16  ;;  %v2137_v10 = vshll.u32 %v7111_v54, 16 }
  0x37   : > { %v331_v8 = vrot.slane %v330_v58, 4  ;;  %6204 = vmatmul.mubr.msk.bf16.vlgmr.msra.gmra.mrb[0].mxu0 %vm699_vm3, %v5438_v2  ;;  %v2124_v12 = vor.u32 %v2123_v6, %v2120_v5  ;;  %v338_v14 = vshrl.u32 %v219_v0, 16  ;;  %v341_v18 = vshll.u32 %v219_v0, 16  ;;  %v222_v58 = vld [vmem:[%s7026_s13 + $0x34] sm:$0xf] }
  0x38   : > { %v326_v11 = vsel %vm7052_vm4, %v321_v4, %v325_v48  ;;  %6236 = vmatpush3.bf16.msra.mxu0 %v7058_v37  ;;  %v2133_v20 = vrot.slane %v2131_v17, 4  ;;  %v2139_v21 = vrot.slane %v2137_v10, 5  ;;  %v347_v23 = vshll.u32 %v220_v7, 16  ;;  %v250_v4 = vld [vmem:[%s7026_s13 + $0x38] sm:$0x1] }
  0x39   : > { %v336_v19 = vsel %vm7052_vm4, %v331_v8, %v335_v59  ;;  %v2125_v27 = vrot.slane %v2124_v12, 4  ;;  %v340_v29 = vrot.slane %v338_v14, 4  ;;  %v343_v31 = vrot.slane %v341_v18, 5  ;;  %6636 = vmatprep.subr.msk.bf16.mxu0 %vm748_vm0, %v7045_v26  ;;  %v5400_v12 = vld [vmem:[%s7026_s13 + $0x3c] sm:$0xf] }
  0x3a   : > { %v5212_v25 = vcombine.low %v326_v11, %v336_v19  ;;  %v2134_v34 = vor.u32 %v2133_v20, %v2129_v9  ;;  %v349_v35 = vrot.slane %v347_v23, 5  ;;  %v351_v37 = vshrl.u32 %v220_v7, 16  ;;  %v7156_v20 = vld [vmem:[%s7026_s13 + $0x40] sm:$0xf] }
  0x3b   : > { %v357_v36 = vshll.u32 %v249_v13, 16  ;;  %v2130_v38 = vsel %vm7052_vm4, %v2125_v27, %v2129_v9  ;;  %v344_v39 = vor.u32 %v343_v31, %v340_v29  ;;  %v2142_v42 = vshrl.u32 %v5397_v24, 16 }
  0x3c   : > { %6071 = vmatprep.mubr.msk.bf16.mxu1 %vm699_vm3, %v5212_v25  ;;  %v2145_v43 = vshll.u32 %v5397_v24, 16  ;;  %v2135_v44 = vrot.slane %v2134_v34, 4  ;;  %v353_v45 = vrot.slane %v351_v37, 4  ;;  %v2151_v26 = vshll.u32 %v7131_v33, 16  ;;  %v7161_v34 = vld [vmem:[%s7026_s13 + $0x44] sm:$0x1] }
  0x3d   : > { %v359_v47 = vrot.slane %v357_v36, 5  ;;  %v345_v48 = vrot.slane %v344_v39, 4  ;;  %v2144_v49 = vrot.slane %v2142_v42, 4  ;;  %v2155_v51 = vshrl.u32 %v7131_v33, 16  ;;  %v223_v42 = vld [vmem:[%s7026_s13 + $0x3c] sm:$0xf] }
  0x3e   : > { %v2147_v50 = vrot.slane %v2145_v43, 5  ;;  %v2140_v53 = vsel %vm7052_vm4, %v2135_v44, %v2139_v21  ;;  %v354_v55 = vor.u32 %v353_v45, %v349_v35  ;;  %v2153_v56 = vrot.slane %v2151_v26, 5  ;;  %v224_v26 = vld [vmem:[%s7026_s13 + $0x40] sm:$0xf] }
  0x3f   : > { %v2161_v57 = vshll.u32 %v7139_v40, 16  ;;  %v5439_v59 = vcombine.low %v2130_v38, %v2140_v53  ;;  %v350_v61 = vsel %vm7052_vm4, %v345_v48, %v349_v35  ;;  %v2157_v2 = vrot.slane %v2155_v51, 4 }
  0x40   : > { %v2148_v0 = vor.u32 %v2147_v50, %v2144_v49  ;;  %v355_v5 = vrot.slane %v354_v55, 4  ;;  %v362_v7 = vshrl.u32 %v221_v52, 16  ;;  %v365_v8 = vshll.u32 %v221_v52, 16 }
  0x41   : > { %v2163_v6 = vrot.slane %v2161_v57, 5  ;;  %6207 = vmatprep.mubr.msk.bf16.mxu0 %vm699_vm3, %v5439_v59  ;;  %v2158_v17 = vor.u32 %v2157_v2, %v2153_v56  ;;  %v371_v10 = vshll.u32 %v222_v58, 16  ;;  %v375_v11 = vshrl.u32 %v222_v58, 16  ;;  %v5403_v2 = vld [vmem:[%s7026_s13 + $0x48] sm:$0xf] }
  0x42   : > { %v2149_v9 = vrot.slane %v2148_v0, 4  ;;  %v360_v13 = vsel %vm7052_vm4, %v355_v5, %v359_v47  ;;  %v364_v14 = vrot.slane %v362_v7, 4  ;;  %v367_v18 = vrot.slane %v365_v8, 5  ;;  %v7179_v8 = vld [vmem:[%s7026_s13 + $0x4c] sm:$0xf] }
  0x43   : > { %v381_v19 = vshll.u32 %v250_v4, 16  ;;  %v5213_v21 = vcombine.low %v350_v61, %v360_v13  ;;  %v2159_v24 = vrot.slane %v2158_v17, 4  ;;  %v373_v25 = vrot.slane %v371_v10, 5  ;;  %v251_v61 = vld [vmem:[%s7026_s13 + $0x44] sm:$0x1] }
  0x44   : > { %v2154_v23 = vsel %vm7052_vm4, %v2149_v9, %v2153_v56  ;;  %v368_v27 = vor.u32 %v367_v18, %v364_v14  ;;  %v377_v29 = vrot.slane %v375_v11, 4  ;;  %v2166_v35 = vshrl.u32 %v5400_v12, 16 }
  0x45   : > { %v383_v31 = vrot.slane %v381_v19, 5  ;;  %6072 = vmatmul.mubr.msk.bf16.gmra.mrb[4].mxu1 %vm699_vm3, %v5213_v21  ;;  %v2164_v37 = vsel %vm7052_vm4, %v2159_v24, %v2163_v6  ;;  %v2169_v36 = vshll.u32 %v5400_v12, 16  ;;  %v2175_v38 = vshll.u32 %v7156_v20, 16 }
  0x46   : > { %v2179_v39 = vshrl.u32 %v7156_v20, 16  ;;  %v5440_v43 = vcombine.low %v2154_v23, %v2164_v37  ;;  %v369_v44 = vrot.slane %v368_v27, 4  ;;  %v378_v45 = vor.u32 %v377_v29, %v373_v25  ;;  %v7187_v23 = vld [vmem:[%s7026_s13 + $0x50] sm:$0x1]  ;;  %v7191_v27 = vld [vmem:[%s7026_s13 + $0x48] sm:$0xf] }
  0x47   : > { %v2168_v47 = vrot.slane %v2166_v35, 4  ;;  %v2171_v48 = vrot.slane %v2169_v36, 5  ;;  %v2177_v49 = vrot.slane %v2175_v38, 5  ;;  %v2185_v51 = vshll.u32 %v7161_v34, 16  ;;  %v7194_v36 = vld [vmem:[%s7026_s13 + $0x4c] sm:$0xf] }
  0x48   : > { %v2181_v50 = vrot.slane %v2179_v39, 4  ;;  %6208 = vmatmul.mubr.msk.bf16.gmra.mrb[4].mxu0 %vm699_vm3, %v5440_v43  ;;  %v374_v52 = vsel %vm7052_vm4, %v369_v44, %v373_v25  ;;  %v379_v53 = vrot.slane %v378_v45, 4  ;;  %v386_v55 = vshrl.u32 %v223_v42, 16 }
  0x49   : > { %v389_v56 = vshll.u32 %v223_v42, 16  ;;  %v2172_v57 = vor.u32 %v2171_v48, %v2168_v47  ;;  %v2187_v59 = vrot.slane %v2185_v51, 5  ;;  %v395_v0 = vshll.u32 %v224_v26, 16 }
  0x4a   : > { %v2182_v58 = vor.u32 %v2181_v50, %v2177_v49  ;;  %v384_v4 = vsel %vm7052_vm4, %v379_v53, %v383_v31  ;;  %v388_v5 = vrot.slane %v386_v55, 4  ;;  %v399_v7 = vshrl.u32 %v224_v26, 16  ;;  %v252_v26 = vld [vmem:[%s7026_s13 + $0x50] sm:$0x1]  ;;  %v5406_v53 = vld [vmem:[%s7026_s13 + $0x54] sm:$0xf] }
  0x4b   : > { %v391_v6 = vrot.slane %v389_v56, 5  ;;  %v5214_v9 = vcombine.low %v374_v52, %v384_v4  ;;  %v2173_v17 = vrot.slane %v2172_v57, 4  ;;  %v397_v11 = vrot.slane %v395_v0, 5  ;;  %v7210_v4 = vld [vmem:[%s7026_s13 + $0x58] sm:$0xf] }
  0x4c   : > { %v2183_v10 = vrot.slane %v2182_v58, 4  ;;  %v401_v13 = vrot.slane %v399_v7, 4  ;;  %v405_v14 = vshll.u32 %v251_v61, 16  ;;  %v2190_v18 = vshrl.u32 %v5403_v2, 16 }
  0x4d   : > { %v392_v12 = vor.u32 %v391_v6, %v388_v5  ;;  %6075 = vmatprep.mubr.msk.bf16.mxu1 %vm699_vm3, %v5214_v9  ;;  %v2178_v19 = vsel %vm7052_vm4, %v2173_v17, %v2177_v49  ;;  %v2193_v24 = vshll.u32 %v5403_v2, 16  ;;  %v2199_v25 = vshll.u32 %v7179_v8, 16 }
  0x4e   : > { %v2188_v21 = vsel %vm7052_vm4, %v2183_v10, %v2187_v59  ;;  %v402_v35 = vor.u32 %v401_v13, %v397_v11  ;;  %v407_v37 = vrot.slane %v405_v14, 5  ;;  %v2192_v38 = vrot.slane %v2190_v18, 4 }
  0x4f   : > { %v5441_v29 = vcombine.low %v2178_v19, %v2188_v21  ;;  %v393_v31 = vrot.slane %v392_v12, 4  ;;  %v2195_v39 = vrot.slane %v2193_v24, 5  ;;  %v2201_v42 = vrot.slane %v2199_v25, 5  ;;  %v7216_v12 = vld [vmem:[%s7026_s13 + $0x5c] sm:$0x1] }
  0x50   : > { %v2203_v43 = vshrl.u32 %v7179_v8, 16  ;;  %v403_v45 = vrot.slane %v402_v35, 4  ;;  %v2209_v47 = vshll.u32 %v7187_v23, 16  ;;  %v410_v48 = vshrl.u32 %v7191_v27, 16  ;;  %v7220_v24 = vld [vmem:[%s7026_s13 + $0x54] sm:$0xf] }
  0x51   : > { %6211 = vmatprep.mubr.msk.bf16.mxu0 %vm699_vm3, %v5441_v29  ;;  %v398_v44 = vsel %vm7052_vm4, %v393_v31, %v397_v11  ;;  %v2196_v49 = vor.u32 %v2195_v39, %v2192_v38  ;;  %v413_v51 = vshll.u32 %v7191_v27, 16  ;;  %v419_v52 = vshll.u32 %v7194_v36, 16 }
  0x52   : > { %v2205_v50 = vrot.slane %v2203_v43, 4  ;;  %v408_v55 = vsel %vm7052_vm4, %v403_v45, %v407_v37  ;;  %v2211_v56 = vrot.slane %v2209_v47, 5  ;;  %v412_v57 = vrot.slane %v410_v48, 4  ;;  %v7226_v37 = vld [vmem:[%s7026_s13 + $0x58] sm:$0xf] }
  0x53   : > { %v423_v58 = vshrl.u32 %v7194_v36, 16  ;;  %v5215_v59 = vcombine.low %v398_v44, %v408_v55  ;;  %v2197_v61 = vrot.slane %v2196_v49, 4  ;;  %v415_v2 = vrot.slane %v413_v51, 5 }
  0x54   : > { %v2206_v0 = vor.u32 %v2205_v50, %v2201_v42  ;;  %v421_v5 = vrot.slane %v419_v52, 5  ;;  %v429_v7 = vshll.u32 %v252_v26, 16  ;;  %v2214_v9 = vshrl.u32 %v5406_v53, 16  ;;  %v253_v26 = vld [vmem:[%s7026_s13 + $0x5c] sm:$0x1] }
  0x55   : > { %v425_v6 = vrot.slane %v423_v58, 4  ;;  %6076 = vmatmul.mubr.msk.bf16.gmra.mrb[8].mxu1 %vm699_vm3, %v5215_v59  ;;  %v2202_v17 = vsel %vm7052_vm4, %v2197_v61, %v2201_v42  ;;  %v416_v11 = vor.u32 %v415_v2, %v412_v57  ;;  %v2217_v13 = vshll.u32 %v5406_v53, 16  ;;  %v5409_v53 = vld [vmem:[%s7026_s13 + $0x60] sm:$0xf]  ;;  %v7240_v59 = vld [vmem:[%s7026_s13 + $0x64] sm:$0xf] }
  0x56   : > { %v2207_v10 = vrot.slane %v2206_v0, 4  ;;  %v431_v18 = vrot.slane %v429_v7, 5  ;;  %v2216_v19 = vrot.slane %v2214_v9, 4  ;;  %v2223_v21 = vshll.u32 %v7210_v4, 16  ;;  %v7247_v9 = vld [vmem:[%s7026_s13 + $0x68] sm:$0x1] }
  0x57   : > { %v426_v14 = vor.u32 %v425_v6, %v421_v5  ;;  %v417_v29 = vrot.slane %v416_v11, 4  ;;  %v2219_v31 = vrot.slane %v2217_v13, 5  ;;  %v2227_v35 = vshrl.u32 %v7210_v4, 16 }
  0x58   : > { %v2212_v25 = vsel %vm7052_vm4, %v2207_v10, %v2211_v56  ;;  %v2225_v42 = vrot.slane %v2223_v21, 5  ;;  %v2233_v43 = vshll.u32 %v7216_v12, 16  ;;  %v434_v48 = vshrl.u32 %v7220_v24, 16 }
  0x59   : > { %v5442_v38 = vcombine.low %v2202_v17, %v2212_v25  ;;  %v427_v39 = vrot.slane %v426_v14, 4  ;;  %v422_v44 = vsel %vm7052_vm4, %v417_v29, %v421_v5  ;;  %v2220_v45 = vor.u32 %v2219_v31, %v2216_v19  ;;  %v7251_v19 = vld [vmem:[%s7026_s13 + $0x60] sm:$0xf] }
  0x5a   : > { %v2229_v47 = vrot.slane %v2227_v35, 4  ;;  %v2235_v50 = vrot.slane %v2233_v43, 5  ;;  %v437_v51 = vshll.u32 %v7220_v24, 16  ;;  %v443_v52 = vshll.u32 %v7226_v37, 16  ;;  %v7257_v35 = vld [vmem:[%s7026_s13 + $0x64] sm:$0xf] }
  0x5b   : > { %6212 = vmatmul.mubr.msk.bf16.gmra.mrb[8].mxu0 %vm699_vm3, %v5442_v38  ;;  %v432_v49 = vsel %vm7052_vm4, %v427_v39, %v431_v18  ;;  %v2221_v56 = vrot.slane %v2220_v45, 4  ;;  %v436_v58 = vrot.slane %v434_v48, 4  ;;  %v447_v2 = vshrl.u32 %v7226_v37, 16 }
  0x5c   : > { %v5216_v55 = vcombine.low %v422_v44, %v432_v49  ;;  %v2230_v57 = vor.u32 %v2229_v47, %v2225_v42  ;;  %v439_v61 = vrot.slane %v437_v51, 5  ;;  %v445_v0 = vrot.slane %v443_v52, 5 }
  0x5d   : > { %v453_v5 = vshll.u32 %v253_v26, 16  ;;  %v2226_v6 = vsel %vm7052_vm4, %v2221_v56, %v2225_v42  ;;  %v2238_v17 = vshrl.u32 %v5409_v53, 16  ;;  %v2241_v10 = vshll.u32 %v5409_v53, 16 }
  0x5e   : > { %6079 = vmatprep.mubr.msk.bf16.mxu1 %vm699_vm3, %v5216_v55  ;;  %v2231_v7 = vrot.slane %v2230_v57, 4  ;;  %v440_v11 = vor.u32 %v439_v61, %v436_v58  ;;  %v449_v13 = vrot.slane %v447_v2, 4  ;;  %v2247_v18 = vshll.u32 %v7240_v59, 16  ;;  %v5469_v58 = vld [vmem:[%s7026_s13 + $0xc] sm:$0xe] }
  0x5f   : > { %v455_v14 = vrot.slane %v453_v5, 5  ;;  %v2240_v25 = vrot.slane %v2238_v17, 4  ;;  %v2243_v29 = vrot.slane %v2241_v10, 5  ;;  %v2251_v31 = vshrl.u32 %v7240_v59, 16 }
  0x60   : > { %v2236_v21 = vsel %vm7052_vm4, %v2231_v7, %v2235_v50  ;;  %v441_v39 = vrot.slane %v440_v11, 4  ;;  %v450_v42 = vor.u32 %v449_v13, %v445_v0  ;;  %v2249_v43 = vrot.slane %v2247_v18, 5  ;;  %v254_v50 = vld [vmem:[%s7026_s13 + $0x68] sm:$0x1] }
  0x61   : > { %v5443_v38 = vcombine.low %v2226_v6, %v2236_v21  ;;  %v2244_v44 = vor.u32 %v2243_v29, %v2240_v25  ;;  %v2253_v45 = vrot.slane %v2251_v31, 4  ;;  %v2257_v47 = vshll.u32 %v7247_v9, 16  ;;  %v7285_v29 = vld [vmem:[%s7026_s13 + $0x70] sm:$0xf] }
  0x62   : > { %v458_v26 = vshrl.u32 %v7251_v19, 16  ;;  %v446_v48 = vsel %vm7052_vm4, %v441_v39, %v445_v0  ;;  %v451_v49 = vrot.slane %v450_v42, 4  ;;  %v461_v51 = vshll.u32 %v7251_v19, 16  ;;  %v7272_v0 = vld [vmem:[%s7026_s13 + $0x6c] sm:$0xf] }
  0x63   : > { %6215 = vmatprep.mubr.msk.bf16.mxu0 %vm699_vm3, %v5443_v38  ;;  %v467_v52 = vshll.u32 %v7257_v35, 16  ;;  %v2245_v53 = vrot.slane %v2244_v44, 4  ;;  %v2254_v55 = vor.u32 %v2253_v45, %v2249_v43  ;;  %v2259_v56 = vrot.slane %v2257_v47, 5 }
  0x64   : > { %v460_v57 = vrot.slane %v458_v26, 4  ;;  %v456_v61 = vsel %vm7052_vm4, %v451_v49, %v455_v14  ;;  %v463_v2 = vrot.slane %v461_v51, 5  ;;  %v471_v6 = vshrl.u32 %v7257_v35, 16  ;;  %v255_v26 = vld [vmem:[%s7026_s13 + $0x74] sm:$0x1] }
  0x65   : > { %v469_v5 = vrot.slane %v467_v52, 5  ;;  %v5217_v7 = vcombine.low %v446_v48, %v456_v61  ;;  %v2250_v17 = vsel %vm7052_vm4, %v2245_v53, %v2249_v43  ;;  %v2255_v10 = vrot.slane %v2254_v55, 4  ;;  %v5470_v48 = vld [vmem:[%s7026_s13 + $0x18] sm:$0xe] }
  0x66   : > { %v477_v11 = vshll.u32 %v254_v50, 16  ;;  %v464_v14 = vor.u32 %v463_v2, %v460_v57  ;;  %v473_v18 = vrot.slane %v471_v6, 4  ;;  %v5485_v21 = vrot.slane %v5469_v58, 9  ;;  %v7304_v53 = vld [vmem:[%s7026_s13 + $0x78] sm:$0xf] }
  0x67   : > { %v2815_v25 = vrot.slane %v2813_v62, 4  ;;  %6080 = vmatmul.mubr.msk.bf16.gmra.mrb[12].mxu1 %vm699_vm3, %v5217_v7  ;;  %v2260_v31 = vsel %vm7052_vm4, %v2255_v10, %v2259_v56  ;;  %v482_v39 = vshrl.u32 %v7272_v0, 16  ;;  %v485_v42 = vshll.u32 %v7272_v0, 16  ;;  %v256_v57 = vld [vmem:[%s7026_s13 + $0x80] sm:$0x1] }
  0x68   : > { %v479_v38 = vrot.slane %v477_v11, 5  ;;  %v5444_v43 = vcombine.low %v2250_v17, %v2260_v31  ;;  %v465_v44 = vrot.slane %v464_v14, 4  ;;  %v474_v45 = vor.u32 %v473_v18, %v469_v5  ;;  %v5471_v10 = vld [vmem:[%s7026_s13 + $0x24] sm:$0xe] }
  0x69   : > { %v2814_v47 = vsel %vm7278_vm7, %v5485_v21, %v2813_v62  ;;  %v2817_v49 = vsel %vm7278_vm7, %v2815_v25, %v2816_v63  ;;  %v484_v50 = vrot.slane %v482_v39, 4  ;;  %v487_v51 = vrot.slane %v485_v42, 5  ;;  %v7330_v39 = vld [vmem:[%s7026_s13 + $0x84] sm:$0xf] }
  0x6a   : > { %v491_v52 = vshll.u32 %v7285_v29, 16  ;;  %6216 = vmatmul.mubr.msk.bf16.gmra.mrb[12].mxu0 %vm699_vm3, %v5444_v43  ;;  %v470_v15 = vsel %vm7052_vm4, %v465_v44, %v469_v5  ;;  %v475_v62 = vrot.slane %v474_v45, 4  ;;  %v5502_v55 = vcombine.low %v2814_v47, %v2817_v49  ;;  %v7338_v43 = vld [vmem:[%s7026_s13 + $0x88] sm:$0xf] }
  0x6b   : > { %v495_v56 = vshrl.u32 %v7285_v29, 16  ;;  %v488_v63 = vor.u32 %v487_v51, %v484_v50  ;;  %v501_v61 = vshll.u32 %v255_v26, 16  ;;  %v5486_v2 = vrot.slane %v5470_v48, 9 }
  0x6c   : > { %v493_v58 = vrot.slane %v491_v52, 5  ;;  %v480_v6 = vsel %vm7052_vm4, %v475_v62, %v479_v38  ;;  %6237 = vmatprep.mubr.msk.bf16.mxu0 %vm699_vm3, %v5502_v55  ;;  %v2824_v5 = vsel %vm7278_vm7, %v7095_v30, %v2823_v28  ;;  %v506_v17 = vshrl.u32 %v7304_v53, 16  ;;  %v257_v52 = vld [vmem:[%s7026_s13 + $0x8c] sm:$0x1] }
  0x6d   : > { %v497_v7 = vrot.slane %v495_v56, 4  ;;  %v5218_v11 = vcombine.low %v470_v15, %v480_v6  ;;  %v489_v14 = vrot.slane %v488_v63, 4  ;;  %v503_v18 = vrot.slane %v501_v61, 5 }
  0x6e   : > { %v2821_v21 = vsel %vm7278_vm7, %v5486_v2, %v2820_v22  ;;  %v508_v38 = vrot.slane %v506_v17, 4  ;;  %v509_v1 = vshll.u32 %v7304_v53, 16  ;;  %v515_v30 = vshll.u32 %v7311_v16, 16  ;;  %v7343_v22 = vld [vmem:[%s8860_s1 + $0xe] sm:$0x3] }
  0x6f   : > { %v498_v25 = vor.u32 %v497_v7, %v493_v58  ;;  %v5503_v31 = vcombine.low %v2821_v21, %v2824_v5  ;;  %6083 = vmatprep.mubr.msk.bf16.mxu1 %vm699_vm3, %v5218_v11  ;;  %v494_v28 = vsel %vm7052_vm4, %v489_v14, %v493_v58  ;;  %v519_v60 = vshrl.u32 %v7311_v16, 16  ;;  %v7362_v5 = vld [vmem:[%s7026_s13 + $0x90] sm:$0xf] }
  0x70   : > { %v525_v42 = vshll.u32 %v256_v57, 16  ;;  %v511_v45 = vrot.slane %v509_v1, 5  ;;  %v5487_v47 = vrot.slane %v5471_v10, 9  ;;  %v2827_v26 = vrot.slane %v7102_v46, 5  ;;  %v5472_v57 = vld [vmem:[%s7026_s13 + $0x30] sm:$0xe] }
  0x71   : > { %v499_v44 = vrot.slane %v498_v25, 4  ;;  %v517_v48 = vrot.slane %v515_v30, 5  ;;  %v521_v49 = vrot.slane %v519_v60, 4  ;;  %v2830_v51 = vrot.slane %v7111_v54, 5  ;;  %v7374_v30 = vld [vmem:[%s7026_s13 + $0x94] sm:$0xf] }
  0x72   : > { %v527_v50 = vrot.slane %v525_v42, 5  ;;  %6238 = vmatmul.mubr.msk.bf16.vlgmr.msra.gmra.mrb[0].mxu0 %vm699_vm3, %v5503_v31  ;;  %v512_v62 = vor.u32 %v511_v45, %v508_v38  ;;  %v2828_v55 = vsel %vm7278_vm7, %v5487_v47, %v2827_v26  ;;  %v2829_v56 = vrot.slane %v2827_v26, 4  ;;  %v258_v60 = vld [vmem:[%s7026_s13 + $0x98] sm:$0x1]  ;;  %v5473_v26 = vld [vmem:[%s7026_s13 + $0x3c] sm:$0xe] }
  0x73   : > { %v504_v15 = vsel %vm7052_vm4, %v499_v44, %v503_v18  ;;  %6270 = vmatpush3.bf16.msra.mxu0 %v7062_v41  ;;  %v522_v46 = vor.u32 %v521_v49, %v517_v48  ;;  %v530_v58 = vshrl.u32 %v7330_v39, 16  ;;  %v533_v54 = vshll.u32 %v7330_v39, 16 }
  0x74   : > { %v5219_v63 = vcombine.low %v494_v28, %v504_v15  ;;  %v513_v61 = vrot.slane %v512_v62, 4  ;;  %v2831_v2 = vsel %vm7278_vm7, %v2829_v56, %v2830_v51  ;;  %v539_v6 = vshll.u32 %v7338_v43, 16  ;;  %6637 = vmatprep.subr.msk.bf16.mxu0 %vm748_vm0, %v7343_v22 }
  0x75   : > { %v543_v7 = vshrl.u32 %v7338_v43, 16  ;;  %v523_v41 = vrot.slane %v522_v46, 4  ;;  %v5504_v17 = vcombine.low %v2828_v55, %v2831_v2  ;;  %v532_v10 = vrot.slane %v530_v58, 4  ;;  %v7394_v46 = vld [vmem:[%s7026_s13 + $0xa0] sm:$0xf] }
  0x76   : > { %6084 = vmatmul.mubr.msk.bf16.gmra.mrb[16].mxu1 %vm699_vm3, %v5219_v63  ;;  %v535_v11 = vrot.slane %v533_v54, 5  ;;  %v518_v14 = vsel %vm7052_vm4, %v513_v61, %v517_v48  ;;  %v541_v18 = vrot.slane %v539_v6, 5  ;;  %v549_v25 = vshll.u32 %v257_v52, 16  ;;  %v7383_v52 = vld [vmem:[%s7026_s13 + $0x9c] sm:$0xf] }
  0x77   : > { %v545_v21 = vrot.slane %v543_v7, 4  ;;  %v528_v31 = vsel %vm7052_vm4, %v523_v41, %v527_v50  ;;  %6241 = vmatprep.mubr.msk.bf16.mxu0 %vm699_vm3, %v5504_v17  ;;  %v5488_v1 = vrot.slane %v5472_v57, 9  ;;  %v2834_v28 = vrot.slane %v7131_v33, 5 }
  0x78   : > { %v536_v38 = vor.u32 %v535_v11, %v532_v10  ;;  %v5220_v42 = vcombine.low %v518_v14, %v528_v31  ;;  %v551_v45 = vrot.slane %v549_v25, 5  ;;  %v2837_v47 = vrot.slane %v7139_v40, 5  ;;  %v259_v10 = vld [vmem:[%s7026_s13 + $0xa4] sm:$0x1]  ;;  %v5474_v11 = vld [vmem:[%s7026_s13 + $0x48] sm:$0xe] }
  0x79   : > { %v546_v44 = vor.u32 %v545_v21, %v541_v18  ;;  %v2835_v49 = vsel %vm7278_vm7, %v5488_v1, %v2834_v28  ;;  %v2836_v50 = vrot.slane %v2834_v28, 4  ;;  %v554_v51 = vshrl.u32 %v7362_v5, 16 }
  0x7a   : > { %v537_v48 = vrot.slane %v536_v38, 4  ;;  %6087 = vmatprep.mubr.msk.bf16.mxu1 %vm699_vm3, %v5220_v42  ;;  %v557_v15 = vshll.u32 %v7362_v5, 16  ;;  %v563_v62 = vshll.u32 %v7374_v30, 16  ;;  %v567_v40 = vshrl.u32 %v7374_v30, 16 }
  0x7b   : > { %v547_v33 = vrot.slane %v546_v44, 4  ;;  %v2838_v56 = vsel %vm7278_vm7, %v2836_v50, %v2837_v47  ;;  %v556_v57 = vrot.slane %v554_v51, 4  ;;  %v573_v63 = vshll.u32 %v258_v60, 16 }
  0x7c   : > { %v542_v55 = vsel %vm7052_vm4, %v537_v48, %v541_v18  ;;  %v5505_v54 = vcombine.low %v2835_v49, %v2838_v56  ;;  %v559_v61 = vrot.slane %v557_v15, 5  ;;  %v565_v2 = vrot.slane %v563_v62, 5  ;;  %v7420_v56 = vld [vmem:[%s7026_s13 + $0xac] sm:$0xf] }
  0x7d   : > { %v552_v58 = vsel %vm7052_vm4, %v547_v33, %v551_v45  ;;  %v569_v7 = vrot.slane %v567_v40, 4  ;;  %v575_v41 = vrot.slane %v573_v63, 5  ;;  %v5489_v17 = vrot.slane %v5473_v26, 9  ;;  %v7415_v33 = vld [vmem:[%s7026_s13 + $0xa8] sm:$0xf] }
  0x7e   : > { %v5221_v6 = vcombine.low %v542_v55, %v552_v58  ;;  %6242 = vmatmul.mubr.msk.bf16.gmra.mrb[4].mxu0 %vm699_vm3, %v5505_v54  ;;  %v560_v14 = vor.u32 %v559_v61, %v556_v57  ;;  %v2841_v18 = vrot.slane %v7156_v20, 5  ;;  %v2844_v21 = vrot.slane %v7161_v34, 5  ;;  %v260_v61 = vld [vmem:[%s7026_s13 + $0xb0] sm:$0x1] }
  0x7f   : > { %v578_v25 = vshrl.u32 %v7383_v52, 16  ;;  %v570_v31 = vor.u32 %v569_v7, %v565_v2  ;;  %v581_v38 = vshll.u32 %v7383_v52, 16  ;;  %v587_v1 = vshll.u32 %v7394_v46, 16 }
  0x80   : > { %6088 = vmatmul.mubr.msk.bf16.gmra.mrb[20].mxu1 %vm699_vm3, %v5221_v6  ;;  %v591_v28 = vshrl.u32 %v7394_v46, 16  ;;  %v561_v60 = vrot.slane %v560_v14, 4  ;;  %v2842_v42 = vsel %vm7278_vm7, %v5489_v17, %v2841_v18  ;;  %v2843_v20 = vrot.slane %v2841_v18, 4  ;;  %v7435_v14 = vld [vmem:[%s7026_s13 + $0xb4] sm:$0xf] }
  0x81   : > { %v580_v44 = vrot.slane %v578_v25, 4  ;;  %v571_v34 = vrot.slane %v570_v31, 4  ;;  %v583_v45 = vrot.slane %v581_v38, 5  ;;  %v589_v47 = vrot.slane %v587_v1, 5 }
  0x82   : > { %v593_v26 = vrot.slane %v591_v28, 4  ;;  %v566_v48 = vsel %vm7052_vm4, %v561_v60, %v565_v2  ;;  %v2845_v49 = vsel %vm7278_vm7, %v2843_v20, %v2844_v21  ;;  %v597_v50 = vshll.u32 %v259_v10, 16  ;;  %v5475_v2 = vld [vmem:[%s7026_s13 + $0x54] sm:$0xe] }
  0x83   : > { %v5490_v51 = vrot.slane %v5474_v11, 9  ;;  %v576_v15 = vsel %vm7052_vm4, %v571_v34, %v575_v41  ;;  %v5506_v62 = vcombine.low %v2842_v42, %v2845_v49  ;;  %v584_v40 = vor.u32 %v583_v45, %v580_v44  ;;  %v7444_v42 = vld [vmem:[%s7026_s13 + $0xb8] sm:$0xf]  ;;  %v261_v49 = vld [vmem:[%s7026_s13 + $0xbc] sm:$0x1] }
  0x84   : > { %v594_v55 = vor.u32 %v593_v26, %v589_v47  ;;  %v5222_v57 = vcombine.low %v566_v48, %v576_v15  ;;  %v599_v63 = vrot.slane %v597_v50, 5  ;;  %v2848_v58 = vrot.slane %v7179_v8, 5 }
  0x85   : > { %v2851_v54 = vrot.slane %v7187_v23, 5  ;;  %6245 = vmatprep.mubr.msk.bf16.mxu0 %vm699_vm3, %v5506_v62  ;;  %v585_v6 = vrot.slane %v584_v40, 4  ;;  %v602_v41 = vshrl.u32 %v7415_v33, 16  ;;  %v605_v17 = vshll.u32 %v7415_v33, 16 }
  0x86   : > { %v595_v7 = vrot.slane %v594_v55, 4  ;;  %6091 = vmatprep.mubr.msk.bf16.mxu1 %vm699_vm3, %v5222_v57  ;;  %v2849_v10 = vsel %vm7278_vm7, %v5490_v51, %v2848_v58  ;;  %v2850_v11 = vrot.slane %v2848_v58, 4  ;;  %v611_v8 = vshll.u32 %v7420_v56, 16  ;;  %v5476_v55 = vld [vmem:[%s7026_s13 + $0x60] sm:$0xe] }
  0x87   : > { %v615_v23 = vshrl.u32 %v7420_v56, 16  ;;  %v590_v18 = vsel %vm7052_vm4, %v585_v6, %v589_v47  ;;  %v604_v25 = vrot.slane %v602_v41, 4  ;;  %v607_v31 = vrot.slane %v605_v17, 5  ;;  %v5477_v6 = vld [vmem:[%s7026_s13 + $0x6c] sm:$0xe] }
  0x88   : > { %v600_v21 = vsel %vm7052_vm4, %v595_v7, %v599_v63  ;;  %v2852_v1 = vsel %vm7278_vm7, %v2850_v11, %v2851_v54  ;;  %v613_v28 = vrot.slane %v611_v8, 5  ;;  %v621_v34 = vshll.u32 %v260_v61, 16  ;;  %v5413_v11 = vld [vmem:[%s7026_s13 + $0x70] sm:$0xf]  ;;  %v5414_v8 = vld [vmem:[%s7026_s13 + $0x74] sm:$0x1] }
  0x89   : > { %v5223_v38 = vcombine.low %v590_v18, %v600_v21  ;;  %v617_v60 = vrot.slane %v615_v23, 4  ;;  %v5507_v20 = vcombine.low %v2849_v10, %v2852_v1  ;;  %v608_v44 = vor.u32 %v607_v31, %v604_v25 }
  0x8a   : > { %v5491_v45 = vrot.slane %v5475_v2, 9  ;;  %v2855_v26 = vrot.slane %v7210_v4, 5  ;;  %v2858_v48 = vrot.slane %v7216_v12, 5  ;;  %v626_v50 = vshrl.u32 %v7435_v14, 16 }
  0x8b   : > { %6092 = vmatmul.mubr.msk.bf16.gmra.mrb[24].mxu1 %vm699_vm3, %v5223_v38  ;;  %v618_v47 = vor.u32 %v617_v60, %v613_v28  ;;  %6246 = vmatmul.mubr.msk.bf16.gmra.mrb[8].mxu0 %vm699_vm3, %v5507_v20  ;;  %v609_v51 = vrot.slane %v608_v44, 4  ;;  %v623_v15 = vrot.slane %v621_v34, 5  ;;  %v629_v62 = vshll.u32 %v7435_v14, 16 }
  0x8c   : > { %v635_v40 = vshll.u32 %v7444_v42, 16  ;;  %v2856_v4 = vsel %vm7278_vm7, %v5491_v45, %v2855_v26  ;;  %v2857_v12 = vrot.slane %v2855_v26, 4  ;;  %v628_v63 = vrot.slane %v626_v50, 4 }
  0x8d   : > { %v619_v57 = vrot.slane %v618_v47, 4  ;;  %v614_v58 = vsel %vm7052_vm4, %v609_v51, %v613_v28  ;;  %v631_v54 = vrot.slane %v629_v62, 5  ;;  %v639_v2 = vshrl.u32 %v7444_v42, 16  ;;  %v5478_v47 = vld [vmem:[%s7026_s13 + $0x78] sm:$0xe] }
  0x8e   : > { %v637_v61 = vrot.slane %v635_v40, 5  ;;  %v2859_v41 = vsel %vm7278_vm7, %v2857_v12, %v2858_v48  ;;  %v645_v17 = vshll.u32 %v261_v49, 16  ;;  %v5492_v10 = vrot.slane %v5476_v55, 9  ;;  %v6739_v51 = vld [vmem:[%s7026_s13] sm:$0xf] }
  0x8f   : > { %v624_v7 = vsel %vm7052_vm4, %v619_v57, %v623_v15  ;;  %v5508_v18 = vcombine.low %v2856_v4, %v2859_v41  ;;  %v632_v21 = vor.u32 %v631_v54, %v628_v63  ;;  %v641_v25 = vrot.slane %v639_v2, 4  ;;  %v7482_v15 = vld [vmem:[%s7026_s13 + $0x4] sm:$0xf]  ;;  %v7486_v40 = vld [vmem:[%s7026_s13 + $0x7c] sm:$0xf] }
  0x90   : > { %v5224_v23 = vcombine.low %v614_v58, %v624_v7  ;;  %v647_v31 = vrot.slane %v645_v17, 5  ;;  %v2862_v38 = vrot.slane %v7240_v59, 5  ;;  %v2865_v1 = vrot.slane %v7247_v9, 5  ;;  %v7489_v55 = vld [vmem:[%s7026_s13 + $0x80] sm:$0x1] }
  0x91   : > { %v5493_v28 = vrot.slane %v5477_v6, 9  ;;  %6249 = vmatprep.mubr.msk.bf16.mxu0 %vm699_vm3, %v5508_v18  ;;  %v633_v60 = vrot.slane %v632_v21, 4  ;;  %v642_v20 = vor.u32 %v641_v25, %v637_v61  ;;  %v2869_v44 = vrot.slane %v5413_v11, 5  ;;  %v5419_v57 = vld [vmem:[%s7026_s13 + $0x88] sm:$0xf] }
  0x92   : > { %6095 = vmatprep.mubr.msk.bf16.mxu1 %vm699_vm3, %v5224_v23  ;;  %v2872_v34 = vrot.slane %v5414_v8, 5  ;;  %v2863_v45 = vsel %vm7278_vm7, %v5492_v10, %v2862_v38  ;;  %v2864_v59 = vrot.slane %v2862_v38, 4  ;;  %v5242_v62 = vcombine.low %v6739_v51, %v7482_v15  ;;  %v5420_v54 = vld [vmem:[%s7026_s13 + $0x8c] sm:$0x1]  ;;  %v5422_v17 = vld [vmem:[%s7026_s13 + $0x94] sm:$0xf] }
  0x93   : > { %v638_v9 = vsel %vm7052_vm4, %v633_v60, %v637_v61  ;;  %v643_v26 = vrot.slane %v642_v20, 4  ;;  %v2870_v48 = vsel %vm7278_vm7, %v5493_v28, %v2869_v44  ;;  %v2871_v49 = vrot.slane %v2869_v44, 4  ;;  %v5479_v61 = vld [vmem:[%s7026_s13 + $0x84] sm:$0xe]  ;;  %v5480_v23 = vld [vmem:[%s7026_s13 + $0x90] sm:$0xe] }
  0x94   : > { %v2866_v50 = vsel %vm7278_vm7, %v2864_v59, %v2865_v1  ;;  %v5494_v58 = vrot.slane %v5478_v47, 9  ;;  %v2876_v7 = vrot.slane %v7486_v40, 5  ;;  %v2879_v41 = vrot.slane %v7489_v55, 5  ;;  %v5423_v25 = vld [vmem:[%s7026_s13 + $0x98] sm:$0x1] }
  0x95   : > { %v648_v4 = vsel %vm7052_vm4, %v643_v26, %v647_v31  ;;  %v5509_v12 = vcombine.low %v2863_v45, %v2866_v50  ;;  %v2873_v63 = vsel %vm7278_vm7, %v2871_v49, %v2872_v34  ;;  %v5495_v10 = vrot.slane %v5479_v61, 9  ;;  %v5425_v31 = vld [vmem:[%s7026_s13 + $0xa0] sm:$0xf]  ;;  %v5426_v60 = vld [vmem:[%s7026_s13 + $0xa4] sm:$0x1] }
  0x96   : > { %v5225_v2 = vcombine.low %v638_v9, %v648_v4  ;;  %v5510_v6 = vcombine.low %v2870_v48, %v2873_v63  ;;  %v2883_v11 = vrot.slane %v5419_v57, 5  ;;  %v2886_v8 = vrot.slane %v5420_v54, 5  ;;  %v5481_v20 = vld [vmem:[%s7026_s13 + $0x9c] sm:$0xe]  ;;  %v6741_v44 = vld [vmem:[%s7026_s13 + $0xc] sm:$0xf] }
  0x97   : > { %6250 = vmatmul.mubr.msk.bf16.gmra.mrb[12].mxu0 %vm699_vm3, %v5509_v12  ;;  %v2877_v18 = vsel %vm7278_vm7, %v5494_v58, %v2876_v7  ;;  %v2878_v21 = vrot.slane %v2876_v7, 4  ;;  %v2890_v28 = vrot.slane %v5422_v17, 5  ;;  %v7516_v34 = vld [vmem:[%s7026_s13 + $0x10] sm:$0xf]  ;;  %v6743_v47 = vld [vmem:[%s7026_s13 + $0x18] sm:$0xf] }
  0x98   : > { %6096 = vmatmul.mubr.msk.bf16.gmra.mrb[28].mxu1 %vm699_vm3, %v5225_v2  ;;  %6253 = vmatprep.mubr.msk.bf16.mxu0 %vm699_vm3, %v5510_v6  ;;  %v2884_v38 = vsel %vm7278_vm7, %v5495_v10, %v2883_v11  ;;  %v2885_v1 = vrot.slane %v2883_v11, 4  ;;  %v5243_v45 = vcombine.low %v6741_v44, %v7516_v34  ;;  %v7523_v9 = vld [vmem:[%s7026_s13 + $0x1c] sm:$0xf]  ;;  %v5496_v48 = vrot.slane %v5480_v23, 9  ;;  %v5428_v57 = vld [vmem:[%s7026_s13 + $0xac] sm:$0xf] }
  0x99   : > { %6101 = vmatprep.mubr.msk.bf16.mxu1 %vm699_vm3, %v5242_v62  ;;  %v2880_v59 = vsel %vm7278_vm7, %v2878_v21, %v2879_v41  ;;  %v5244_v26 = vcombine.low %v6743_v47, %v7523_v9  ;;  %v2892_v51 = vrot.slane %v2890_v28, 4  ;;  %v2893_v62 = vrot.slane %v5423_v25, 5  ;;  %v6745_v54 = vld [vmem:[%s8860_s1 + $0x4] sm:$0x3]  ;;  %v5431_v2 = vld [vmem:[%s7026_s13 + $0xb8] sm:$0xf] }
  0x9a   : > { %v5511_v49 = vcombine.low %v2877_v18, %v2880_v59  ;;  %v2887_v50 = vsel %vm7278_vm7, %v2885_v1, %v2886_v8  ;;  %v5497_v12 = vrot.slane %v5481_v20, 9  ;;  %v2897_v63 = vrot.slane %v5425_v31, 5  ;;  %v7538_v7 = vld [vmem:[%s8860_s1 + $0x6] sm:$0x3]  ;;  %v5429_v10 = vld [vmem:[%s7026_s13 + $0xb0] sm:$0x1] }
  0x9b   : > { %v5512_v4 = vcombine.low %v2884_v38, %v2887_v50  ;;  %v2900_v58 = vrot.slane %v5426_v60, 5  ;;  %v1467_v61 = vsel %vm748_vm0, %v6745_v54, 0  ;;  %v2891_v41 = vsel %vm7278_vm7, %v5496_v48, %v2890_v28  ;;  %v5482_v11 = vld [vmem:[%s7026_s13 + $0xa8] sm:$0xe]  ;;  %v5432_v25 = vld [vmem:[%s7026_s13 + $0xbc] sm:$0x1] }
  0x9c   : > { %v2899_v6 = vrot.slane %v2897_v63, 4  ;;  %v2894_v17 = vsel %vm7278_vm7, %v2892_v51, %v2893_v62  ;;  %v2904_v8 = vrot.slane %v5428_v57, 5  ;;  %v2898_v23 = vsel %vm7278_vm7, %v5497_v12, %v2897_v63  ;;  %v5483_v31 = vld [vmem:[%s7026_s13 + $0xb4] sm:$0xe]  ;;  %v6746_v38 = vld [vmem:[%s7026_s13 + $0x24] sm:$0xf] }
  0x9d   : > { %v2911_v21 = vrot.slane %v5431_v2, 5  ;;  %v7559_v1 = vld [vmem:[%s7026_s13 + $0x28] sm:$0xf]  ;;  %v5513_v60 = vcombine.low %v2891_v41, %v2894_v17  ;;  %v5498_v44 = vrot.slane %v5482_v11, 9  ;;  %v2907_v59 = vrot.slane %v5429_v10, 5 }
  0x9e   : > { %v2901_v18 = vsel %vm7278_vm7, %v2899_v6, %v2900_v58  ;;  %v5245_v28 = vcombine.low %v6746_v38, %v7559_v1  ;;  %v6748_v47 = vld [vmem:[%s7026_s13 + $0x30] sm:$0xf]  ;;  %v2914_v51 = vrot.slane %v5432_v25, 5  ;;  %v5434_v62 = vld [vmem:[%s7026_s13 + $0xc4] sm:$0xf]  ;;  %v2299_v25 = vshrl.u32 %v7486_v40, 16 }
  0x9f   : > { %6254 = vmatmul.mubr.msk.bf16.gmra.mrb[16].mxu0 %vm699_vm3, %v5511_v49  ;;  %v5514_v20 = vcombine.low %v2898_v23, %v2901_v18  ;;  %v5499_v49 = vrot.slane %v5483_v31, 9  ;;  %v2913_v50 = vrot.slane %v2911_v21, 4  ;;  %v2905_v57 = vsel %vm7278_vm7, %v5498_v44, %v2904_v8  ;;  %v5484_v12 = vld [vmem:[%s7026_s13 + $0xc0] sm:$0xe]  ;;  %v6750_v41 = vld [vmem:[%s7026_s13 + $0x3c] sm:$0xf] }
  0xa0   : > { %6102 = vmatmul.mubr.msk.bf16.vlgmr.msra.gmra.mrb[0].mxu1 %vm699_vm3, %v5243_v45  ;;  %6257 = vmatprep.mubr.msk.bf16.mxu0 %vm699_vm3, %v5512_v4  ;;  %v2906_v45 = vrot.slane %v2904_v8, 4  ;;  %v2918_v63 = vrot.slane %v5434_v62, 5  ;;  %v5500_v6 = vrot.slane %v5484_v12, 9  ;;  %v7584_v17 = vld [vmem:[%s7026_s13 + $0x40] sm:$0xf]  ;;  %v5248_v18 = vcombine.low %v7191_v27, %v7194_v36  ;;  %v6702_v62 = vld [vmem:[%s7026_s13 + $0x24] sm:$0xff]  }
  0xa1   : > { %6134 = vmatpush3.bf16.msra.mxu1 %v1467_v61  ;;  %6105 = vmatprep.mubr.msk.bf16.mxu1 %vm699_vm3, %v5244_v26  ;;  %v7564_v26 = vld [vmem:[%s7026_s13 + $0x34] sm:$0xf]  ;;  %v2912_v58 = vsel %vm7278_vm7, %v5499_v49, %v2911_v21  ;;  %v2915_v54 = vsel %vm7278_vm7, %v2913_v50, %v2914_v51  ;;  %v5435_v61 = vld [vmem:[%s7026_s13 + $0xc8] sm:$0x1]  ;;  %v5247_v10 = vcombine.low %v6750_v41, %v7584_v17  ;;  %v2295_v21 = vshll.u32 %v7486_v40, 16 }
  0xa2   : > { %6632 = vmatprep.subr.msk.bf16.mxu1 %vm748_vm0, %v7538_v7  ;;  %v5246_v48 = vcombine.low %v6748_v47, %v7564_v26  ;;  %v2908_v4 = vsel %vm7278_vm7, %v2906_v45, %v2907_v59  ;;  %v5516_v11 = vcombine.low %v2912_v58, %v2915_v54  ;;  %v2920_v8 = vrot.slane %v2918_v63, 4  ;;  %v1205_v45 = vld [vmem:[%s7026_s13] sm:$0xe]  ;;  %v1206_v59 = vld [vmem:[%s7026_s13 + $0xc] sm:$0xe] }
  0xa3   : > { %v5515_v2 = vcombine.low %v2905_v57, %v2908_v4  ;;  %v2921_v23 = vrot.slane %v5435_v61, 5  ;;  %v2919_v31 = vsel %vm7278_vm7, %v5500_v6, %v2918_v63  ;;  %v7599_v27 = vrot.slane %v2295_v21, 5  ;;  %v1209_v41 = vld [vmem:[%s7026_s13 + $0x30] sm:$0xe] }
  0xa4   : > { %v2301_v36 = vrot.slane %v2299_v25, 4  ;;  %v5250_v44 = vcombine.low %v7251_v19, %v7257_v35  ;;  %v2305_v47 = vshll.u32 %v7489_v55, 16  ;;  %v5274_v19 = vrot.slane %v1205_v45, 9 }
  0xa5   : > { %v2922_v38 = vsel %vm7278_vm7, %v2920_v8, %v2921_v23  ;;  %8884 = vst [vmem:[#allocation10_spill] sm:$0xff] %v7599_v27  ;;  %v5275_v35 = vrot.slane %v1206_v59, 9  ;;  %v1272_v4 = vrot.slane %v7523_v9, 5  ;;  %v1279_v12 = vrot.slane %v7559_v1, 5  ;;  %v1210_v8 = vld [vmem:[%s7026_s13 + $0x3c] sm:$0xe] }
  0xa6   : > { %v5517_v40 = vcombine.low %v2919_v31, %v2922_v38  ;;  %v2302_v49 = vor.u32 %v2301_v36, %v7599_v27  ;;  %v7619_v51 = vrot.slane %v2305_v47, 5  ;;  %v5251_v58 = vcombine.low %v7272_v0, %v7285_v29  ;;  %v1211_v31 = vld [vmem:[%s7026_s13 + $0x48] sm:$0xe]  ;;  %v6756_v59 = vld [vmem:[%s7026_s13 + $0x38] sm:$0x1] }
  0xa7   : > { %6258 = vmatmul.mubr.msk.bf16.gmra.mrb[20].mxu0 %vm699_vm3, %v5513_v60  ;;  %v5249_v60 = vcombine.low %v7220_v24, %v7226_v37  ;;  %v6753_v24 = vld [vmem:[%s7026_s13 + $0x14] sm:$0x1]  ;;  %v4107_v54 = vsel %vm748_vm0, %v7343_v22, 0  ;;  %v5252_v61 = vcombine.low %v7304_v53, %v7311_v16  ;;  %v5253_v6 = vcombine.low %v7330_v39, %v7338_v43  ;;  %v6754_v16 = vld [vmem:[%s7026_s13 + $0x20] sm:$0x1] }
  0xa8   : > { %6106 = vmatmul.mubr.msk.bf16.gmra.mrb[4].mxu1 %vm699_vm3, %v5245_v28  ;;  %6261 = vmatprep.mubr.msk.bf16.mxu0 %vm699_vm3, %v5514_v20  ;;  %v1265_v28 = vrot.slane %v7516_v34, 5  ;;  %v6700_v20 = vld [vmem:[%s7026_s13 + $0x18] sm:$0xff]   ;;  %v6752_v34 = vld [vmem:[%s7026_s13 + $0x8] sm:$0x1]  ;;  %v1268_v37 = vrot.slane %v6753_v24, 5  ;;  %8885 = vst [vmem:[#allocation11_spill] sm:$0xff] %v7619_v51  ;;  %v5254_v9 = vcombine.low %v7362_v5, %v7374_v30 }
  0xa9   : > { %6109 = vmatprep.mubr.msk.bf16.mxu1 %vm699_vm3, %v5246_v48  ;;  %v1258_v48 = vrot.slane %v7482_v15, 5  ;;  %v1261_v50 = vrot.slane %v6752_v34, 5  ;;  %v1207_v15 = vld [vmem:[%s7026_s13 + $0x18] sm:$0xe]  ;;  %v7624_v63 = vrot.slane %v2302_v49, 4  ;;  %v1275_v22 = vrot.slane %v6754_v16, 5 }
  0xaa   : > { %v1267_v55 = vrot.slane %v1265_v28, 4  ;;  %v5276_v1 = vrot.slane %v1207_v15, 9  ;;  %v7646_v29 = vsel %vm7278_vm7, %v5275_v35, %v1265_v28  ;;  %v1281_v25 = vrot.slane %v1279_v12, 4  ;;  %v5599_v24 = vld [vmem:[%s7026_s13 + $0x18] sm:$0xf] }
  0xab   : > { %v1260_v57 = vrot.slane %v1258_v48, 4  ;;  %8886 = vst [vmem:[#allocation12_spill] sm:$0xff] %v7624_v63  ;;  %v7642_v0 = vsel %vm7278_vm7, %v5274_v19, %v1258_v48  ;;  %v1289_v47 = vrot.slane %v6756_v59, 5  ;;  %v7683_v49 = vsel %vm748_vm0, %v7538_v7, 0  ;;  %v5600_v7 = vld [vmem:[%s7026_s13 + $0x1c] sm:$0xf] }
  0xac   : > { %v7650_v53 = vsel %vm7278_vm7, %v1267_v55, %v1268_v37  ;;  %v7687_v34 = vsel %vm7278_vm7, %v5276_v1, %v1272_v4  ;;  %v6706_v37 = vld [vmem:[%s7026_s13 + $0x3c] sm:$0xff]   ;;  %v5279_v35 = vrot.slane %v1210_v8, 9  ;;  %v6757_v55 = vld [vmem:[%s7026_s13 + $0x44] sm:$0x1]  ;;  %v3628_v8 = vshll.u32 %v5599_v24, 16 }
  0xad   : > { %v7661_v23 = vsel %vm7278_vm7, %v1260_v57, %v1261_v50  ;;  %v1212_v50 = vld [vmem:[%s7026_s13 + $0x54] sm:$0xe]  ;;  %v1296_v15 = vrot.slane %v6757_v55, 5  ;;  %v5603_v39 = vld [vmem:[%s7026_s13 + $0x28] sm:$0xf] }
  0xae   : > { %v6764_v5 = vld [vmem:[%s7026_s13 + $0x70] sm:$0xf] }
  0xaf   : > { %6262 = vmatmul.mubr.msk.bf16.gmra.mrb[24].mxu0 %vm699_vm3, %v5515_v2  ;;  %v1208_v2 = vld [vmem:[%s7026_s13 + $0x24] sm:$0xe]  ;;  %v1321_v30 = vrot.slane %v6764_v5, 5 }
  0xb0   : > { %6110 = vmatmul.mubr.msk.bf16.gmra.mrb[8].mxu1 %vm699_vm3, %v5247_v10  ;;  %6265 = vmatprep.mubr.msk.bf16.mxu0 %vm699_vm3, %v5516_v11  ;;  %v1286_v10 = vrot.slane %v7564_v26, 5  ;;  %v6704_v11 = vld [vmem:[%s7026_s13 + $0x30] sm:$0xff]   ;;  %v5277_v21 = vrot.slane %v1208_v2, 9 }
  0xb1   : > { %6113 = vmatprep.mubr.msk.bf16.mxu1 %vm699_vm3, %v5248_v18  ;;  %v7657_v26 = vld [vmem:[%s8860_s1 + $0x10] sm:$0x3]  ;;  %v1274_v18 = vrot.slane %v1272_v4, 4  ;;  %v1323_v48 = vrot.slane %v1321_v30, 4 }
  0xb2   : > { %v1288_v45 = vrot.slane %v1286_v10, 4  ;;  %v7694_v19 = vsel %vm7278_vm7, %v5277_v21, %v1279_v12  ;;  %v3638_v21 = vshrl.u32 %v5600_v7, 16 }
  0xb3   : > { %v7703_v4 = vsel %vm7278_vm7, %v1274_v18, %v1275_v22  ;;  %v3625_v22 = vshrl.u32 %v5599_v24, 16  ;;  %v3634_v18 = vshll.u32 %v5600_v7, 16  ;;  %v5602_v24 = vld [vmem:[%s7026_s13 + $0x24] sm:$0xf] }
  0xb4   : > { %v7716_v1 = vsel %vm7278_vm7, %v1288_v45, %v1289_v47 }
  0xb5   : > { %v3627_v43 = vrot.slane %v3625_v22, 4  ;;  %v7758_v7 = vrot.slane %v3634_v18, 5  ;;  %v3652_v22 = vshll.u32 %v5602_v24, 16  ;;  %v3662_v18 = vshrl.u32 %v5603_v39, 16 }
  0xb7   : > { %6266 = vmatmul.mubr.msk.bf16.gmra.mrb[28].mxu0 %vm699_vm3, %v5517_v40  ;;  %v6755_v40 = vld [vmem:[%s7026_s13 + $0x2c] sm:$0x1]  ;;  %v3654_v27 = vrot.slane %v3652_v22, 5 }
  0xb8   : > { %6114 = vmatmul.mubr.msk.bf16.gmra.mrb[12].mxu1 %vm699_vm3, %v5249_v60  ;;  %6271 = vmatprep.mubr.msk.bf16.mxu0 %vm699_vm3, %v6700_v20  ;;  %v1282_v28 = vrot.slane %v6755_v40, 5  ;;  %v1293_v60 = vrot.slane %v7584_v17, 5  ;;  %v6760_v40 = vld [vmem:[%s7026_s13 + $0x50] sm:$0x1]  ;;  %v6765_v17 = vld [vmem:[%s7026_s13 + $0x74] sm:$0x1] }
  0xb9   : > { %6117 = vmatprep.mubr.msk.bf16.mxu1 %vm699_vm3, %v5250_v44  ;;  %v5278_v44 = vrot.slane %v1209_v41, 9  ;;  %v5281_v41 = vrot.slane %v1212_v50, 9  ;;  %v1213_v50 = vld [vmem:[%s7026_s13 + $0x60] sm:$0xe]  ;;  %v5604_v20 = vld [vmem:[%s7026_s13 + $0x2c] sm:$0x1] }
  0xba   : > { %v1295_v12 = vrot.slane %v1293_v60, 4  ;;  %v7729_v45 = vsel %vm7278_vm7, %v5279_v35, %v1293_v60  ;;  %v6761_v35 = vld [vmem:[%s7026_s13 + $0x5c] sm:$0x1] }
  0xbb   : > { %v7712_v2 = vsel %vm7278_vm7, %v5278_v44, %v1286_v10  ;;  %v1310_v55 = vrot.slane %v6761_v35, 5  ;;  %v1214_v35 = vld [vmem:[%s7026_s13 + $0x6c] sm:$0xe] }
  0xbc   : > { %v7733_v59 = vsel %vm7278_vm7, %v1295_v12, %v1296_v15  ;;  %v6762_v15 = vld [vmem:[%s7026_s13 + $0x64] sm:$0xf]  ;;  %v3640_v12 = vrot.slane %v3638_v21, 4  ;;  %v5283_v5 = vrot.slane %v1214_v35, 9 }
  0xbd   : > { %v6712_v21 = vld [vmem:[%s7026_s13 + $0x60] sm:$0xff]  }
  0xbf   : > { %6272 = vmatmul.mubr.msk.bf16.vlgmr.msra.gmra.mrb[0].mxu0 %vm699_vm3, %v6702_v62  ;;  %v6758_v62 = vld [vmem:[%s7026_s13 + $0x4c] sm:$0xf] }
  0xc0   : > { %6118 = vmatmul.mubr.msk.bf16.gmra.mrb[16].mxu1 %vm699_vm3, %v5251_v58  ;;  %6304 = vmatpush3.bf16.msra.mxu0 %v4107_v54  ;;  %v1300_v57 = vrot.slane %v6758_v62, 5  ;;  %v7707_v58 = vsel %vm7278_vm7, %v1281_v25, %v1282_v28  ;;  %v5280_v54 = vrot.slane %v1211_v31, 9  ;;  %v1303_v28 = vrot.slane %v6760_v40, 5 }
  0xc1   : > { %6121 = vmatprep.mubr.msk.bf16.mxu1 %vm699_vm3, %v5252_v61  ;;  %6275 = vmatprep.mubr.msk.bf16.mxu0 %vm699_vm3, %v6704_v11  ;;  %v6708_v61 = vld [vmem:[%s7026_s13 + $0x48] sm:$0xff]   ;;  %v6759_v11 = vld [vmem:[%s7026_s13 + $0x58] sm:$0xf]  ;;  %v1314_v62 = vrot.slane %v6762_v15, 5  ;;  %v5606_v15 = vld [vmem:[%s7026_s13 + $0x34] sm:$0xf] }
  0xc2   : > { %6638 = vmatprep.subr.msk.bf16.mxu0 %vm748_vm0, %v7657_v26  ;;  %v1307_v16 = vrot.slane %v6759_v11, 5  ;;  %v1302_v31 = vrot.slane %v1300_v57, 4  ;;  %v7737_v47 = vsel %vm7278_vm7, %v5280_v54, %v1300_v57  ;;  %v5601_v57 = vld [vmem:[%s7026_s13 + $0x20] sm:$0x1]  ;;  %v5605_v54 = vld [vmem:[%s7026_s13 + $0x30] sm:$0xf] }
  0xc3   : > { %v5282_v11 = vrot.slane %v1213_v50, 9  ;;  %v3676_v50 = vshll.u32 %v5605_v54, 16  ;;  %v3644_v25 = vshll.u32 %v5601_v57, 16  ;;  %v3682_v36 = vshll.u32 %v5606_v15, 16 }
  0xc4   : > { %v7748_v60 = vsel %vm7278_vm7, %v5281_v41, %v1307_v16  ;;  %v7764_v41 = vsel %vm7278_vm7, %v1302_v31, %v1303_v28  ;;  %v1316_v31 = vrot.slane %v1314_v62, 4  ;;  %v3673_v28 = vshrl.u32 %v5605_v54, 16 }
  0xc5   : > { %v7806_v35 = vrot.slane %v3682_v36, 5 }
  0xc7   : > { %6276 = vmatmul.mubr.msk.bf16.gmra.mrb[4].mxu0 %vm699_vm3, %v6706_v37  ;;  %v1309_v37 = vrot.slane %v1307_v16, 4  ;;  %v6763_v16 = vld [vmem:[%s7026_s13 + $0x68] sm:$0x1] }
  0xc8   : > { %6122 = vmatmul.mubr.msk.bf16.gmra.mrb[20].mxu1 %vm699_vm3, %v5253_v6  ;;  %6279 = vmatprep.mubr.msk.bf16.mxu0 %vm699_vm3, %v6708_v61  ;;  %v3630_v6 = vrot.slane %v3628_v8, 5  ;;  %v6710_v61 = vld [vmem:[%s7026_s13 + $0x54] sm:$0xff]   ;;  %v1317_v40 = vrot.slane %v6763_v16, 5  ;;  %v3658_v8 = vshll.u32 %v5603_v39, 16  ;;  %v3641_v16 = vor.u32 %v3640_v12, %v7758_v7 }
  0xc9   : > { %6125 = vmatprep.mubr.msk.bf16.mxu1 %vm699_vm3, %v5254_v9  ;;  %v3649_v9 = vshrl.u32 %v5602_v24, 16  ;;  %v7773_v44 = vsel %vm7278_vm7, %v1309_v37, %v1310_v55  ;;  %v1324_v24 = vrot.slane %v6765_v17, 5  ;;  %v3686_v39 = vshrl.u32 %v5606_v15, 16 }
  0xca   : > { %v3631_v10 = vor.u32 %v3630_v6, %v3627_v43  ;;  %v7779_v37 = vrot.slane %v3658_v8, 5  ;;  %v3664_v55 = vrot.slane %v3662_v18, 4  ;;  %v8887_v43 = vcombine.low %v7383_v52, %v7394_v46  ;;  %v6766_v8 = vld [vmem:[%s7026_s13 + $0x7c] sm:$0xf]  ;;  %v7815_v18 = vld [vmem:[%s7026_s13 + $0x38] sm:$0x1] }
  0xcb   : > { %v3651_v38 = vrot.slane %v3649_v9, 4  ;;  %v7788_v17 = vsel %vm7278_vm7, %v5282_v11, %v1314_v62  ;;  %v7792_v57 = vsel %vm7278_vm7, %v1316_v31, %v1317_v40  ;;  %v3675_v6 = vrot.slane %v3673_v28, 4  ;;  %8889 = vst [vmem:[#allocation13_spill] sm:$0xff] %v7815_v18 }
  0xcc   : > { %v3678_v12 = vrot.slane %v3676_v50, 5  ;;  %v8888_v52 = vcombine.low %v7415_v33, %v7420_v56  ;;  %v3632_v46 = vrot.slane %v3631_v10, 4  ;;  %v3642_v54 = vrot.slane %v3641_v16, 4  ;;  %v6714_v33 = vld [vmem:[%s7026_s13 + $0x6c] sm:$0xff]   ;;  %v1216_v16 = vld [vmem:[%s7026_s13 + $0x84] sm:$0xe] }
  0xcd   : > { %v3668_v62 = vshll.u32 %v5604_v20, 16  ;;  %v7800_v11 = vsel %vm7278_vm7, %v5283_v5, %v1321_v30  ;;  %v7804_v40 = vsel %vm7278_vm7, %v1323_v48, %v1324_v24  ;;  %v3688_v9 = vrot.slane %v3686_v39, 4  ;;  %v6715_v48 = vld [vmem:[%s7026_s13 + $0x78] sm:$0xff]  }
  0xce   : > { %v3655_v10 = vor.u32 %v3654_v27, %v3651_v38  ;;  %v3665_v20 = vor.u32 %v3664_v55, %v7779_v37  ;;  %v1328_v30 = vrot.slane %v6766_v8, 5  ;;  %v3679_v38 = vor.u32 %v3678_v12, %v3675_v6  ;;  %v5608_v5 = vld [vmem:[%s7026_s13 + $0x3c] sm:$0xf] }
  0xcf   : > { %6280 = vmatmul.mubr.msk.bf16.gmra.mrb[8].mxu0 %vm699_vm3, %v6710_v61  ;;  %v3646_v61 = vrot.slane %v3644_v25, 5  ;;  %v1215_v25 = vld [vmem:[%s7026_s13 + $0x78] sm:$0xe]  ;;  %v7831_v50 = vrot.slane %v3668_v62, 5  ;;  %v3689_v39 = vor.u32 %v3688_v9, %v7806_v35  ;;  %v3692_v55 = vshll.u32 %v7815_v18, 16 }
  0xd0   : > { %6126 = vmatmul.mubr.msk.bf16.gmra.mrb[24].mxu1 %vm699_vm3, %v8887_v43  ;;  %6283 = vmatprep.mubr.msk.bf16.mxu0 %vm699_vm3, %v6712_v21  ;;  %v3637_v21 = vsel %vm7052_vm4, %v3632_v46, %v7758_v7  ;;  %v5284_v24 = vrot.slane %v1215_v25, 9  ;;  %v6767_v43 = vld [vmem:[%s7026_s13 + $0x88] sm:$0xf]  ;;  %v7839_v7 = vld [vmem:[%s7026_s13 + $0x40] sm:$0xf]  ;;  %v3656_v12 = vrot.slane %v3655_v10, 4  ;;  %v8891_v62 = vcombine.low %v7435_v14, %v7444_v42 }
  0xd1   : > { %6129 = vmatprep.mubr.msk.bf16.mxu1 %vm699_vm3, %v8888_v52  ;;  %v3647_v31 = vsel %vm7052_vm4, %v3642_v54, %v3646_v61  ;;  %v1335_v6 = vrot.slane %v6767_v43, 5  ;;  %8890 = vst [vmem:[#allocation14_spill] sm:$0xff] %v7839_v7  ;;  %v3666_v52 = vrot.slane %v3665_v20, 4  ;;  %v1330_v46 = vrot.slane %v1328_v30, 4  ;;  %v6768_v54 = vld [vmem:[%s7026_s13 + $0x80] sm:$0x1] }
  0xd2   : > { %v1331_v61 = vrot.slane %v6768_v54, 5  ;;  %v3680_v9 = vrot.slane %v3679_v38, 4  ;;  %v5285_v25 = vrot.slane %v1216_v16, 9  ;;  %v3697_v8 = vshrl.u32 %v5608_v5, 16  ;;  %v6716_v10 = vld [vmem:[%s7026_s13 + $0x84] sm:$0xff]  }
  0xd3   : > { %v3700_v43 = vshll.u32 %v5608_v5, 16  ;;  %v7853_v20 = vcombine.low %v3637_v21, %v3647_v31  ;;  %v7857_v14 = vsel %vm748_vm0, %v7657_v26, 0  ;;  %v3710_v38 = vshrl.u32 %v7839_v7, 16  ;;  %v6717_v21 = vld [vmem:[%s7026_s13 + $0x90] sm:$0xff]   ;;  %v6773_v18 = vld [vmem:[%s7026_s13 + $0xa0] sm:$0xf] }
  0xd4   : > { %v3690_v16 = vrot.slane %v3689_v39, 4  ;;  %v3694_v5 = vrot.slane %v3692_v55, 5  ;;  %v1337_v54 = vrot.slane %v1335_v6, 4  ;;  %v3661_v31 = vsel %vm7052_vm4, %v3656_v12, %v7779_v37 }
  0xd5   : > { %v3671_v26 = vsel %vm7052_vm4, %v3666_v52, %v7831_v50  ;;  %v7872_v39 = vsel %vm7278_vm7, %v5284_v24, %v1328_v30  ;;  %v7876_v55 = vsel %vm7278_vm7, %v1330_v46, %v1331_v61  ;;  %v3685_v37 = vsel %vm7052_vm4, %v3680_v9, %v7806_v35  ;;  %v5614_v30 = vld [vmem:[%s7026_s13 + $0x54] sm:$0xf]  ;;  %v7893_v24 = vld [vmem:[%s7026_s13 + $0x58] sm:$0xf]  ;;  %v7898_v61 = vld [vmem:[%s7026_s13 + $0x90] sm:$0xe] }
  0xd6   : > { %v7889_v12 = vsel %vm7278_vm7, %v5285_v25, %v1335_v6  ;;  %v3699_v50 = vrot.slane %v3697_v8, 4  ;;  %v3702_v52 = vrot.slane %v3700_v43, 5  ;;  %v3712_v46 = vrot.slane %v3710_v38, 4 }
  0xd7   : > { %6284 = vmatmul.mubr.msk.bf16.gmra.mrb[12].mxu0 %vm699_vm3, %v6714_v33  ;;  %v8892_v33 = vcombine.low %v7642_v0, %v7661_v23  ;;  %v6769_v0 = vld [vmem:[%s7026_s13 + $0x8c] sm:$0x1]  ;;  %v3695_v36 = vsel %vm7052_vm4, %v3690_v16, %v3694_v5  ;;  %v3745_v25 = vshrl.u32 %v5614_v30, 16  ;;  %v3748_v8 = vshll.u32 %v5614_v30, 16 }
  0xd8   : > { %6130 = vmatmul.mubr.msk.bf16.gmra.mrb[28].mxu1 %vm699_vm3, %v8891_v62  ;;  %6287 = vmatprep.mubr.msk.bf16.mxu0 %vm699_vm3, %v6715_v48  ;;  %v3706_v48 = vshll.u32 %v7839_v7, 16  ;;  %v1338_v23 = vrot.slane %v6769_v0, 5  ;;  %v5611_v62 = vld [vmem:[%s7026_s13 + $0x48] sm:$0xf]  ;;  %v7882_v0 = vld [vmem:[%s7026_s13 + $0x4c] sm:$0xf]  ;;  %v8894_v38 = vcombine.low %v7646_v29, %v7650_v53  ;;  %v7916_v16 = vcombine.low %v3661_v31, %v3671_v26 }
  0xd9   : > { %6135 = vmatprep.mubr.msk.bf16.mxu1 %vm699_vm3, %v8892_v33  ;;  %v7879_v33 = vld [vmem:[%s7026_s13 + $0x44] sm:$0x1]  ;;  %v3721_v27 = vshrl.u32 %v5611_v62, 16  ;;  %v3724_v15 = vshll.u32 %v5611_v62, 16  ;;  %v3730_v6 = vshll.u32 %v7882_v0, 16  ;;  %v3734_v9 = vshrl.u32 %v7882_v0, 16 }
  0xda   : > { %8893 = vst [vmem:[#allocation15_spill] sm:$0xff] %v7879_v33  ;;  %v7895_v28 = vrot.slane %v3706_v48, 5  ;;  %v7904_v35 = vsel %vm7278_vm7, %v1337_v54, %v1338_v23  ;;  %v3754_v43 = vshll.u32 %v7893_v24, 16  ;;  %v3758_v48 = vshrl.u32 %v7893_v24, 16  ;;  %v5617_v31 = vld [vmem:[%s7026_s13 + $0x60] sm:$0xf] }
  0xdb   : > { %v3716_v5 = vshll.u32 %v7879_v33, 16  ;;  %v5286_v54 = vrot.slane %v7898_v61, 9  ;;  %v8895_v23 = vcombine.low %v7687_v34, %v7703_v4  ;;  %v7927_v29 = vcombine.low %v3685_v37, %v3695_v36  ;;  %v6718_v26 = vld [vmem:[%s7026_s13 + $0x9c] sm:$0xff]   ;;  %v6719_v30 = vld [vmem:[%s7026_s13 + $0xa8] sm:$0xff]  }
  0xdc   : > { %v3703_v53 = vor.u32 %v3702_v52, %v3699_v50  ;;  %v3723_v62 = vrot.slane %v3721_v27, 4  ;;  %v7938_v34 = vrot.slane %v3730_v6, 5  ;;  %v3736_v4 = vrot.slane %v3734_v9, 4  ;;  %v6770_v36 = vld [vmem:[%s8860_s1 + $0x8] sm:$0x3] }
  0xdd   : > { %v3747_v27 = vrot.slane %v3745_v25, 4  ;;  %v3750_v37 = vrot.slane %v3748_v8, 5  ;;  %v7947_v50 = vrot.slane %v3754_v43, 5  ;;  %v3760_v52 = vrot.slane %v3758_v48, 4  ;;  %v6771_v6 = vld [vmem:[%s7026_s13 + $0x94] sm:$0xf] }
  0xde   : > { %v7953_v9 = vld [vmem:[%s7026_s13 + $0x64] sm:$0xf]  ;;  %v3769_v61 = vshrl.u32 %v5617_v31, 16  ;;  %v7955_v22 = vrot.slane %v3703_v53, 4  ;;  %v1349_v25 = vrot.slane %v6773_v18, 5  ;;  %v3737_v43 = vor.u32 %v3736_v4, %v7938_v34 }
  0xdf   : > { %6288 = vmatmul.mubr.msk.bf16.gmra.mrb[16].mxu0 %vm699_vm3, %v6716_v10  ;;  %8896 = vst [vmem:[#allocation16_spill] sm:$0xff] %v7953_v9  ;;  %v3772_v10 = vshll.u32 %v5617_v31, 16  ;;  %v3751_v31 = vor.u32 %v3750_v37, %v3747_v27  ;;  %v3761_v53 = vor.u32 %v3760_v52, %v7947_v50  ;;  %v8897_v18 = vcombine.low %v7694_v19, %v7707_v58  ;;  %v6720_v37 = vld [vmem:[%s7026_s13 + $0xb4] sm:$0xff]  }
  0xe0   : > { %6136 = vmatmul.mubr.msk.bf16.vlgmr.msra.gmra.mrb[0].mxu1 %vm699_vm3, %v8894_v38  ;;  %6291 = vmatprep.mubr.msk.bf16.mxu0 %vm699_vm3, %v6717_v21  ;;  %v3726_v21 = vrot.slane %v3724_v15, 5  ;;  %v7936_v38 = vld [vmem:[%s7026_s13 + $0x50] sm:$0x1]  ;;  %v7945_v15 = vld [vmem:[%s7026_s13 + $0x5c] sm:$0x1]  ;;  %v8898_v27 = vcombine.low %v7712_v2, %v7716_v1  ;;  %v1351_v52 = vrot.slane %v1349_v25, 4 }
  0xe1   : > { %6168 = vmatpush3.bf16.msra.mxu1 %v7683_v49  ;;  %6139 = vmatprep.mubr.msk.bf16.mxu1 %vm699_vm3, %v8895_v23  ;;  %v3713_v49 = vor.u32 %v3712_v46, %v7895_v28  ;;  %v7949_v46 = vrot.slane %v3716_v5, 5  ;;  %v1342_v23 = vrot.slane %v6771_v6, 5  ;;  %v3740_v48 = vshll.u32 %v7936_v38, 16  ;;  %v1218_v5 = vld [vmem:[%s7026_s13 + $0x9c] sm:$0xe] }
  0xe2   : > { %6634 = vmatprep.subr.msk.bf16.mxu1 %vm748_vm0, %v6770_v36  ;;  %v6772_v36 = vld [vmem:[%s7026_s13 + $0x98] sm:$0x1]  ;;  %v3727_v7 = vor.u32 %v3726_v21, %v3723_v62  ;;  %v3764_v6 = vshll.u32 %v7945_v15, 16  ;;  %v3782_v62 = vshrl.u32 %v7953_v9, 16  ;;  %v3774_v4 = vrot.slane %v3772_v10, 5 }
  0xe3   : > { %v1345_v33 = vrot.slane %v6772_v36, 5  ;;  %v3714_v8 = vrot.slane %v3713_v49, 4  ;;  %v3778_v36 = vshll.u32 %v7953_v9, 16  ;;  %v7974_v21 = vsel %vm7278_vm7, %v5286_v54, %v1342_v23  ;;  %v7985_v2 = vld [vmem:[%s7026_s13 + $0x68] sm:$0x1] }
  0xe4   : > { %v3771_v49 = vrot.slane %v3769_v61, 4  ;;  %v3728_v19 = vrot.slane %v3727_v7, 4  ;;  %v5287_v58 = vrot.slane %v1218_v5, 9  ;;  %v3738_v3 = vrot.slane %v3737_v43, 4  ;;  %8899 = vst [vmem:[#allocation17_spill] sm:$0xff] %v7985_v2  ;;  %v6721_v5 = vld [vmem:[%s7026_s13 + $0xc0] sm:$0xff]  }
  0xe5   : > { %v3742_v54 = vrot.slane %v3740_v48, 5  ;;  %v3766_v63 = vrot.slane %v3764_v6, 5  ;;  %v1356_v61 = vrot.slane %v7420_v56, 5  ;;  %v3752_v10 = vrot.slane %v3751_v31, 4  ;;  %v1220_v31 = vld [vmem:[%s7026_s13 + $0xb4] sm:$0xe] }
  0xe6   : > { %v3762_v51 = vrot.slane %v3761_v53, 4  ;;  %v7987_v1 = vrot.slane %v3778_v36, 5  ;;  %v3784_v7 = vrot.slane %v3782_v62, 4  ;;  %v3709_v43 = vsel %vm7052_vm4, %v7955_v22, %v7895_v28  ;;  %v6775_v62 = vld [vmem:[%s7026_s13 + $0xb0] sm:$0x1] }
  0xe7   : > { %6292 = vmatmul.mubr.msk.bf16.gmra.mrb[20].mxu0 %vm699_vm3, %v6718_v26  ;;  %v1344_v26 = vrot.slane %v1342_v23, 4  ;;  %v1219_v23 = vld [vmem:[%s7026_s13 + $0xa8] sm:$0xe]  ;;  %v3719_v48 = vsel %vm7052_vm4, %v3714_v8, %v7949_v46  ;;  %v3775_v6 = vor.u32 %v3774_v4, %v3771_v49  ;;  %v3733_v53 = vsel %vm7052_vm4, %v3728_v19, %v7938_v34  ;;  %v5620_v46 = vld [vmem:[%s7026_s13 + $0x6c] sm:$0xf] }
  0xe8   : > { %6140 = vmatmul.mubr.msk.bf16.gmra.mrb[4].mxu1 %vm699_vm3, %v8897_v18  ;;  %6295 = vmatprep.mubr.msk.bf16.mxu0 %vm699_vm3, %v6719_v30  ;;  %v6774_v18 = vld [vmem:[%s7026_s13 + $0xa4] sm:$0x1]  ;;  %v8007_v36 = vsel %vm7278_vm7, %v5287_v58, %v1349_v25  ;;  %v5288_v28 = vrot.slane %v1219_v23, 9  ;;  %v1358_v8 = vrot.slane %v1356_v61, 4  ;;  %v3788_v49 = vshll.u32 %v7985_v2, 16 }
  0xe9   : > { %6143 = vmatprep.mubr.msk.bf16.mxu1 %vm699_vm3, %v8898_v27  ;;  %v1352_v30 = vrot.slane %v6774_v18, 5  ;;  %v7999_v56 = vsel %vm7278_vm7, %v1344_v26, %v1345_v33  ;;  %v3743_v33 = vsel %vm7052_vm4, %v3738_v3, %v3742_v54  ;;  %v1359_v26 = vrot.slane %v6775_v62, 5  ;;  %v5623_v18 = vld [vmem:[%s7026_s13 + $0x78] sm:$0xf]  ;;  %v8062_v54 = vld [vmem:[%s7026_s13 + $0xbc] sm:$0x1] }
  0xea   : > { %v3757_v34 = vsel %vm7052_vm4, %v3752_v10, %v7947_v50  ;;  %v3767_v25 = vsel %vm7052_vm4, %v3762_v51, %v3766_v63  ;;  %v3785_v4 = vor.u32 %v3784_v7, %v7987_v1  ;;  %v5289_v27 = vrot.slane %v1220_v31, 9  ;;  %v8036_v51 = vld [vmem:[%s7026_s13 + $0x70] sm:$0xf]  ;;  %v8066_v10 = vld [vmem:[%s7026_s13 + $0x7c] sm:$0xf] }
  0xeb   : > { %v8011_v22 = vsel %vm7278_vm7, %v1351_v52, %v1352_v30  ;;  %v8901_v3 = vcombine.low %v7729_v45, %v7733_v59  ;;  %v8032_v19 = vrot.slane %v3775_v6, 4  ;;  %v1363_v50 = vrot.slane %v7444_v42, 5  ;;  %8902 = vst [vmem:[#allocation19_spill] sm:$0xff] %v8036_v51  ;;  %8904 = vst [vmem:[#allocation20_spill] sm:$0xff] %v8066_v10  ;;  %v5626_v7 = vld [vmem:[%s7026_s13 + $0x84] sm:$0xf] }
  0xec   : > { %8900 = vst [vmem:[#allocation18_spill] sm:$0xff] %v8011_v22  ;;  %v3793_v63 = vshrl.u32 %v5620_v46, 16  ;;  %v8903_v45 = vcombine.low %v7737_v47, %v7764_v41  ;;  %v8044_v58 = vcombine.low %v3733_v53, %v3743_v33  ;;  %v8050_v42 = vsel %vm7278_vm7, %v5288_v28, %v1356_v61  ;;  %v6722_v61 = vld [vmem:[%s7026_s13 + $0xcc] sm:$0xff]   ;;  %v8078_v31 = vld [vmem:[%s7026_s13 + $0x88] sm:$0xf] }
  0xed   : > { %v8053_v30 = vcombine.low %v3757_v34, %v3767_v25  ;;  %v8057_v47 = vsel %vm7278_vm7, %v1358_v8, %v1359_v26  ;;  %v8059_v41 = vrot.slane %v3788_v49, 5  ;;  %v3802_v6 = vshll.u32 %v8036_v51, 16  ;;  %8905 = vst [vmem:[#allocation21_spill] sm:$0xff] %v8078_v31  ;;  %v5629_v62 = vld [vmem:[%s7026_s13 + $0x90] sm:$0xf] }
  0xee   : > { %v8084_v28 = vrot.slane %v1363_v50, 4  ;;  %v8086_v33 = vrot.slane %v3793_v63, 4  ;;  %v3806_v8 = vshrl.u32 %v8036_v51, 16  ;;  %v3817_v26 = vshrl.u32 %v5623_v18, 16  ;;  %v8093_v25 = vld [vmem:[%s7026_s13 + $0x94] sm:$0xf] }
  0xef   : > { %6296 = vmatmul.mubr.msk.bf16.gmra.mrb[24].mxu0 %vm699_vm3, %v6720_v37  ;;  %v8030_v37 = vcombine.low %v3709_v43, %v3719_v48  ;;  %v8074_v43 = vsel %vm7278_vm7, %v5289_v27, %v1363_v50  ;;  %v3796_v48 = vshll.u32 %v5620_v46, 16  ;;  %v3820_v49 = vshll.u32 %v5623_v18, 16  ;;  %8906 = vst [vmem:[#allocation22_spill] sm:$0xff] %v8093_v25  ;;  %v8131_v2 = vld [vmem:[%s7026_s13 + $0x8c] sm:$0x1] }
  0xf0   : > { %6144 = vmatmul.mubr.msk.bf16.gmra.mrb[8].mxu1 %vm699_vm3, %v8901_v3  ;;  %6299 = vmatprep.mubr.msk.bf16.mxu0 %vm699_vm3, %v6721_v5  ;;  %v8070_v5 = vrot.slane %v3785_v4, 4  ;;  %v3826_v46 = vshll.u32 %v8066_v10, 16  ;;  %v3830_v34 = vshrl.u32 %v8066_v10, 16  ;;  %v3841_v4 = vshrl.u32 %v5626_v7, 16 }
  0xf1   : > { %6147 = vmatprep.mubr.msk.bf16.mxu1 %vm699_vm3, %v8903_v45  ;;  %v3844_v27 = vshll.u32 %v5626_v7, 16  ;;  %v3850_v3 = vshll.u32 %v8078_v31, 16  ;;  %v3854_v50 = vshrl.u32 %v8078_v31, 16  ;;  %v8103_v45 = vld [vmem:[%s7026_s13 + $0x74] sm:$0x1]  ;;  %v3798_v18 = vrot.slane %v3796_v48, 5 }
  0xf2   : > { %v3865_v52 = vshrl.u32 %v5629_v62, 16  ;;  %v3868_v53 = vshll.u32 %v5629_v62, 16  ;;  %v8907_v7 = vcombine.low %v7748_v60, %v7773_v44  ;;  %v3808_v59 = vrot.slane %v3806_v8, 4  ;;  %v5632_v48 = vld [vmem:[%s7026_s13 + $0x9c] sm:$0xf] }
  0xf3   : > { %v3874_v63 = vshll.u32 %v8093_v25, 16  ;;  %v3878_v23 = vshrl.u32 %v8093_v25, 16  ;;  %v8908_v62 = vcombine.low %v7788_v17, %v7792_v57  ;;  %v8121_v44 = vld [vmem:[%s7026_s13 + $0x80] sm:$0x1]  ;;  %v3819_v60 = vrot.slane %v3817_v26, 4 }
  0xf4   : > { %8909 = vst [vmem:[#allocation23_spill] sm:$0xff] %v8121_v44  ;;  %v3843_v31 = vrot.slane %v3841_v4, 4  ;;  %v3846_v8 = vrot.slane %v3844_v27, 5  ;;  %v8125_v10 = vrot.slane %v3850_v3, 5  ;;  %v3856_v51 = vrot.slane %v3854_v50, 4 }
  0xf5   : > { %v8128_v25 = vld [vmem:[%s7026_s13 + $0xa0] sm:$0xf]  ;;  %v3867_v17 = vrot.slane %v3865_v52, 4  ;;  %v3870_v57 = vrot.slane %v3868_v53, 5  ;;  %v3892_v9 = vshll.u32 %v5632_v48, 16  ;;  %v3799_v26 = vor.u32 %v3798_v18, %v8086_v33 }
  0xf6   : > { %v3836_v27 = vshll.u32 %v8121_v44, 16  ;;  %v8140_v3 = vld [vmem:[%s7026_s13 + $0x98] sm:$0x1]  ;;  %v3898_v50 = vshll.u32 %v8128_v25, 16  ;;  %v3902_v52 = vshrl.u32 %v8128_v25, 16  ;;  %v3847_v22 = vor.u32 %v3846_v8, %v3843_v31 }
  0xf7   : > { %6300 = vmatmul.mubr.msk.bf16.gmra.mrb[28].mxu0 %vm699_vm3, %v6722_v61  ;;  %v8111_v61 = vrot.slane %v3802_v6, 5  ;;  %v3832_v6 = vrot.slane %v3830_v34, 4  ;;  %v3880_v34 = vrot.slane %v3878_v23, 4  ;;  %v3860_v33 = vshll.u32 %v8131_v2, 16 }
  0xf8   : > { %6148 = vmatmul.mubr.msk.bf16.gmra.mrb[12].mxu1 %vm699_vm3, %v8907_v7  ;;  %6305 = vmatprep.mubr.msk.bf16.mxu0 %vm699_vm3, %v7853_v20  ;;  %v3822_v7 = vrot.slane %v3820_v49, 5  ;;  %v8123_v20 = vrot.slane %v3826_v46, 5  ;;  %v3812_v49 = vshll.u32 %v8103_v45, 16  ;;  %v8135_v46 = vrot.slane %v3874_v63, 5 }
  0xf9   : > { %6151 = vmatprep.mubr.msk.bf16.mxu1 %vm699_vm3, %v8908_v62  ;;  %v3889_v62 = vshrl.u32 %v5632_v48, 16  ;;  %v3809_v4 = vor.u32 %v3808_v59, %v8111_v61  ;;  %v3857_v23 = vor.u32 %v3856_v51, %v8125_v10  ;;  %v3871_v59 = vor.u32 %v3870_v57, %v3867_v17  ;;  %v8173_v57 = vld [vmem:[%s7026_s13 + $0xa4] sm:$0x1] }
  0xfa   : > { %v3823_v53 = vor.u32 %v3822_v7, %v3819_v60  ;;  %v3833_v48 = vor.u32 %v3832_v6, %v8123_v20  ;;  %v3894_v18 = vrot.slane %v3892_v9, 5  ;;  %v8910_v44 = vcombine.low %v7800_v11, %v7804_v40 }
  0xfb   : > { %v3891_v63 = vrot.slane %v3889_v62, 4  ;;  %v8911_v31 = vrot.slane %v8062_v54, 5  ;;  %v3814_v51 = vrot.slane %v3812_v49, 5  ;;  %v3881_v60 = vor.u32 %v3880_v34, %v8135_v46  ;;  %v8176_v34 = vld [vmem:[%s7026_s13 + $0xac] sm:$0xf] }
  0xfc   : > { %v3884_v9 = vshll.u32 %v8140_v3, 16  ;;  %v8912_v11 = vcombine.low %v7872_v39, %v7876_v55  ;;  %v3800_v40 = vrot.slane %v3799_v26, 4  ;;  %v8169_v54 = vrot.slane %v3898_v50, 5 }
  0xfd   : > { %v3824_v7 = vrot.slane %v3823_v53, 4  ;;  %v3834_v6 = vrot.slane %v3833_v48, 4  ;;  %v3838_v8 = vrot.slane %v3836_v27, 5  ;;  %v3862_v17 = vrot.slane %v3860_v33, 5  ;;  %v8186_v48 = vld [vmem:[%s7026_s13 + $0xb0] sm:$0x1] }
  0xfe   : > { %v3848_v39 = vrot.slane %v3847_v22, 4  ;;  %v3858_v55 = vrot.slane %v3857_v23, 4  ;;  %v3872_v62 = vrot.slane %v3871_v59, 4  ;;  %v3895_v49 = vor.u32 %v3894_v18, %v3891_v63 }
  0xff   : > { %6306 = vmatmul.mubr.msk.bf16.vlgmr.msra.gmra.mrb[0].mxu0 %vm699_vm3, %v7916_v16  ;;  %v8159_v16 = vsel %vm7278_vm7, %v8084_v28, %v8911_v31  ;;  %v3904_v28 = vrot.slane %v3902_v52, 4  ;;  %v3886_v26 = vrot.slane %v3884_v9, 5  ;;  %v3805_v52 = vsel %vm7052_vm4, %v3800_v40, %v8111_v61 }
 0x100   : > { %6152 = vmatmul.mubr.msk.bf16.gmra.mrb[16].mxu1 %vm699_vm3, %v8910_v44  ;;  %6338 = vmatpush3.bf16.msra.mxu0 %v7857_v14  ;;  %v3810_v14 = vrot.slane %v3809_v4, 4  ;;  %v5635_v44 = vld [vmem:[%s7026_s13 + $0xa8] sm:$0xf]  ;;  %v3908_v22 = vshll.u32 %v8173_v57, 16  ;;  %v3829_v33 = vsel %vm7052_vm4, %v3824_v7, %v8123_v20  ;;  %v3839_v23 = vsel %vm7052_vm4, %v3834_v6, %v3838_v8 }
 0x101   : > { %6155 = vmatprep.mubr.msk.bf16.mxu1 %vm699_vm3, %v8912_v11  ;;  %6309 = vmatprep.mubr.msk.bf16.mxu0 %vm699_vm3, %v7927_v29  ;;  %v3882_v29 = vrot.slane %v3881_v60, 4  ;;  %v3913_v4 = vshrl.u32 %v5635_v44, 16  ;;  %v3916_v50 = vshll.u32 %v5635_v44, 16  ;;  %v3905_v53 = vor.u32 %v3904_v28, %v8169_v54  ;;  %v5684_v11 = vld [vmem:[%s7026_s13 + $0x48] sm:$0xe] }
 0x102   : > { %v3815_v27 = vsel %vm7052_vm4, %v3810_v14, %v3814_v51  ;;  %v3922_v59 = vshll.u32 %v8176_v34, 16  ;;  %v3926_v61 = vshrl.u32 %v8176_v34, 16  ;;  %v3853_v63 = vsel %vm7052_vm4, %v3848_v39, %v8125_v10  ;;  %v8251_v39 = vld [vmem:[%s7026_s13 + $0xb8] sm:$0xf] }
 0x103   : > { %v3863_v18 = vsel %vm7052_vm4, %v3858_v55, %v3862_v17  ;;  %v3877_v20 = vsel %vm7052_vm4, %v3872_v62, %v8135_v46  ;;  %v3896_v31 = vrot.slane %v3895_v49, 4  ;;  %v8913_v51 = vcombine.low %v7889_v12, %v7904_v35 }
 0x104   : > { %v3915_v10 = vrot.slane %v3913_v4, 4  ;;  %v3918_v60 = vrot.slane %v3916_v50, 5  ;;  %v3932_v9 = vshll.u32 %v8186_v48, 16  ;;  %v8914_v46 = vcombine.low %v7974_v21, %v7999_v56  ;;  %v5638_v21 = vld [vmem:[%s7026_s13 + $0xb4] sm:$0xf] }
 0x105   : > { %v5305_v12 = vcombine.low %v8050_v42, %v8057_v47  ;;  %v8915_v35 = vsel %vm7052_vm4, %v8070_v5, %v8059_v41  ;;  %v3906_v14 = vrot.slane %v3905_v53, 4  ;;  %v3910_v28 = vrot.slane %v3908_v22, 5  ;;  %v5686_v4 = vld [vmem:[%s7026_s13 + $0x60] sm:$0xe]  ;;  %v5687_v53 = vld [vmem:[%s7026_s13 + $0x6c] sm:$0xe] }
 0x106   : > { %v5306_v56 = vcombine.low %v8074_v43, %v8159_v16  ;;  %v8234_v44 = vcombine.low %v3805_v52, %v3815_v27  ;;  %v8236_v42 = vrot.slane %v3922_v59, 5  ;;  %v3928_v47 = vrot.slane %v3926_v61, 4  ;;  %v8924_v16 = vld [vmem:[#allocation11_spill] sm:$0xff] }
 0x107   : > { %6310 = vmatmul.mubr.msk.bf16.gmra.mrb[4].mxu0 %vm699_vm3, %v8030_v37  ;;  %v3887_v37 = vsel %vm7052_vm4, %v3882_v29, %v3886_v26  ;;  %v8238_v41 = vcombine.low %v3829_v33, %v3839_v23  ;;  %v8240_v5 = vcombine.low %v3853_v63, %v3863_v18  ;;  %v3901_v6 = vsel %vm7052_vm4, %v3896_v31, %v8169_v54  ;;  %v8917_v23 = vld [vmem:[#allocation18_spill] sm:$0xff]  ;;  %v5641_v63 = vld [vmem:[%s7026_s13 + $0xc0] sm:$0xf]  ;;  %v8920_v31 = vld [vmem:[#allocation17_spill] sm:$0xff] }
 0x108   : > { %6156 = vmatmul.mubr.msk.bf16.gmra.mrb[20].mxu1 %vm699_vm3, %v8913_v51  ;;  %6313 = vmatprep.mubr.msk.bf16.mxu0 %vm699_vm3, %v8044_v58  ;;  %v8916_v58 = vsel %vm7052_vm4, %v8032_v19, %v7987_v1  ;;  %v8242_v7 = vcombine.low %v3877_v20, %v3887_v37  ;;  %v5700_v1 = vrot.slane %v5684_v11, 9  ;;  %v5685_v19 = vld [vmem:[%s7026_s13 + $0x54] sm:$0xe]  ;;  %v3919_v8 = vor.u32 %v3918_v60, %v3915_v10  ;;  %v8919_v18 = vld [vmem:[#allocation16_spill] sm:$0xff] }
 0x109   : > { %6159 = vmatprep.mubr.msk.bf16.mxu1 %vm699_vm3, %v8914_v46  ;;  %v5654_v40 = vcombine.low %v8916_v58, %v8915_v35  ;;  %v8248_v17 = vrot.slane %v3932_v9, 5  ;;  %v3937_v55 = vshrl.u32 %v5638_v21, 16  ;;  %v3911_v62 = vsel %vm7052_vm4, %v3906_v14, %v3910_v28  ;;  %v8921_v9 = vld [vmem:[#allocation19_spill] sm:$0xff]  ;;  %v8300_v35 = vld [vmem:[%s7026_s13 + $0xbc] sm:$0x1] }
 0x10a   : > { %v3940_v49 = vshll.u32 %v5638_v21, 16  ;;  %v4396_v29 = vrot.slane %v7882_v0, 5  ;;  %v4399_v26 = vrot.slane %v7936_v38, 5  ;;  %v3929_v50 = vor.u32 %v3928_v47, %v8236_v42  ;;  %v8303_v58 = vld [vmem:[%s7026_s13 + $0xc4] sm:$0xf] }
 0x10b   : > { %v5701_v52 = vrot.slane %v5685_v19, 9  ;;  %v4403_v54 = vrot.slane %v7893_v24, 5  ;;  %v4406_v27 = vrot.slane %v7945_v15, 5  ;;  %v3946_v22 = vshll.u32 %v8251_v39, 16  ;;  %v5688_v19 = vld [vmem:[%s7026_s13 + $0x78] sm:$0xe] }
 0x10c   : > { %v3950_v33 = vshrl.u32 %v8251_v39, 16  ;;  %v8268_v0 = vsel %vm7278_vm7, %v5700_v1, %v4396_v29  ;;  %v4398_v38 = vrot.slane %v4396_v29, 4  ;;  %v8918_v59 = vcombine.low %v8007_v36, %v8917_v23  ;;  %v8922_v23 = vld [vmem:[#allocation20_spill] sm:$0xff] }
 0x10d   : > { %v8275_v24 = vcombine.low %v3901_v6, %v3911_v62  ;;  %v8279_v15 = vsel %vm7278_vm7, %v5701_v52, %v4403_v54  ;;  %v5702_v61 = vrot.slane %v5686_v4, 9  ;;  %v4410_v20 = vrot.slane %v8919_v18, 5  ;;  %v6723_v6 = vld [vmem:[%s7026_s13 + $0xc] sm:$0xff]  }
 0x10e   : > { %v8285_v36 = vsel %vm7278_vm7, %v4398_v38, %v4399_v26  ;;  %v4413_v51 = vrot.slane %v8920_v31, 5  ;;  %v5703_v37 = vrot.slane %v5687_v53, 9  ;;  %v4417_v11 = vrot.slane %v8921_v9, 5 }
 0x10f   : > { %6314 = vmatmul.mubr.msk.bf16.gmra.mrb[8].mxu0 %vm699_vm3, %v8053_v30  ;;  %v4405_v30 = vrot.slane %v4403_v54, 4  ;;  %v5717_v10 = vcombine.low %v8268_v0, %v8285_v36  ;;  %v4420_v46 = vrot.slane %v8103_v45, 5  ;;  %v8309_v14 = vsel %vm7278_vm7, %v5702_v61, %v4410_v20 }
 0x110   : > { %6160 = vmatmul.mubr.msk.bf16.gmra.mrb[24].mxu1 %vm699_vm3, %v8918_v59  ;;  %6317 = vmatprep.mubr.msk.bf16.mxu0 %vm699_vm3, %v5654_v40  ;;  %v4412_v28 = vrot.slane %v4410_v20, 4  ;;  %v8311_v21 = vrot.slane %v3937_v55, 4  ;;  %v3961_v47 = vshrl.u32 %v5641_v63, 16  ;;  %v8315_v45 = vsel %vm7278_vm7, %v5703_v37, %v4417_v11  ;;  %v5415_v55 = vld [vmem:[%s7026_s13 + $0x78] sm:$0xf] }
 0x111   : > { %6163 = vmatprep.mubr.msk.bf16.mxu1 %vm699_vm3, %v5305_v12  ;;  %v8293_v60 = vsel %vm7278_vm7, %v4405_v30, %v4406_v27  ;;  %v8297_v12 = vrot.slane %v3919_v8, 4  ;;  %v4419_v1 = vrot.slane %v4417_v11, 4  ;;  %v8319_v8 = vrot.slane %v3929_v50, 4  ;;  %v8923_v59 = vld [vmem:[#allocation23_spill] sm:$0xff] }
 0x112   : > { %v5718_v40 = vcombine.low %v8279_v15, %v8293_v60  ;;  %v8321_v62 = vrot.slane %v3940_v49, 5  ;;  %v3964_v29 = vshll.u32 %v5641_v63, 16  ;;  %v8325_v26 = vsel %vm7278_vm7, %v4412_v28, %v4413_v51  ;;  %v8926_v28 = vld [vmem:[#allocation21_spill] sm:$0xff]  ;;  %v6786_v60 = vld [vmem:[%s7026_s13 + $0xa0] sm:$0xf] }
 0x113   : > { %v8328_v4 = vrot.slane %v3946_v22, 5  ;;  %v8330_v52 = vrot.slane %v3950_v33, 4  ;;  %v5719_v54 = vcombine.low %v8309_v14, %v8325_v26  ;;  %v8336_v27 = vsel %vm7278_vm7, %v4419_v1, %v4420_v46  ;;  %v5689_v33 = vld [vmem:[%s7026_s13 + $0x84] sm:$0xe]  ;;  %v6724_v1 = vld [vmem:[%s7026_s13 + $0x18] sm:$0xff]  }
 0x114   : > { %v3956_v49 = vshll.u32 %v8300_v35, 16  ;;  %v3970_v50 = vshll.u32 %v8303_v58, 16  ;;  %v5720_v53 = vcombine.low %v8315_v45, %v8336_v27  ;;  %v5704_v22 = vrot.slane %v5688_v19, 9  ;;  %v6790_v27 = vld [vmem:[%s7026_s13 + $0xac] sm:$0xf] }
 0x115   : > { %v3963_v38 = vrot.slane %v3961_v47, 4  ;;  %v4427_v30 = vrot.slane %v8923_v59, 5  ;;  %v2286_v61 = vshrl.u32 %v5415_v55, 16  ;;  %v3966_v63 = vrot.slane %v3964_v29, 5  ;;  %v5644_v29 = vld [vmem:[%s7026_s13 + $0xcc] sm:$0xf] }
 0x116   : > { %v3974_v18 = vshrl.u32 %v8303_v58, 16  ;;  %v2289_v43 = vshll.u32 %v5415_v55, 16  ;;  %v5705_v37 = vrot.slane %v5689_v33, 9  ;;  %v3925_v9 = vsel %vm7052_vm4, %v8297_v12, %v8236_v42  ;;  %v8379_v55 = vld [vmem:[%s7026_s13 + $0xd0] sm:$0xf] }
 0x117   : > { %6318 = vmatmul.mubr.msk.bf16.gmra.mrb[12].mxu0 %vm699_vm3, %v8234_v44  ;;  %v4424_v44 = vrot.slane %v8922_v23, 5  ;;  %v2288_v51 = vrot.slane %v2286_v61, 4  ;;  %v3943_v11 = vor.u32 %v8321_v62, %v8311_v21  ;;  %v4431_v47 = vrot.slane %v8926_v28, 5  ;;  %v6725_v21 = vld [vmem:[%s7026_s13 + $0x24] sm:$0xff]  }
 0x118   : > { %6164 = vmatmul.mubr.msk.bf16.gmra.mrb[28].mxu1 %vm699_vm3, %v5306_v56  ;;  %6321 = vmatprep.mubr.msk.bf16.mxu0 %vm699_vm3, %v8238_v41  ;;  %v8925_v56 = vld [vmem:[#allocation12_spill] sm:$0xff]  ;;  %v2291_v46 = vrot.slane %v2289_v43, 5  ;;  %v3935_v19 = vsel %vm7052_vm4, %v8319_v8, %v8248_v17  ;;  %v4434_v12 = vrot.slane %v8131_v2, 5  ;;  %v8387_v62 = vrot.slane %v3970_v50, 5  ;;  %v5690_v8 = vld [vmem:[%s7026_s13 + $0x90] sm:$0xe] }
 0x119   : > { %6169 = vmatprep.mubr.msk.bf16.mxu1 %vm699_vm3, %v6723_v6  ;;  %v2308_v41 = vsel %vm7052_vm4, %v8925_v56, %v8924_v16  ;;  %v8361_v20 = vsel %vm7278_vm7, %v5704_v22, %v4424_v44  ;;  %v4426_v31 = vrot.slane %v4424_v44, 4  ;;  %v3953_v6 = vor.u32 %v8330_v52, %v8328_v4  ;;  %v8393_v52 = vld [vmem:[%s7026_s13 + $0xc8] sm:$0x1] }
 0x11a   : > { %v3976_v22 = vrot.slane %v3974_v18, 4  ;;  %v2292_v17 = vor.u32 %v2291_v46, %v2288_v51  ;;  %v3958_v23 = vrot.slane %v3956_v49, 5  ;;  %v3967_v44 = vor.u32 %v3966_v63, %v3963_v38  ;;  %v8928_v16 = vld [vmem:[#allocation9_spill] sm:$0xff]  ;;  %v8929_v51 = vld [vmem:[#allocation10_spill] sm:$0xff] }
 0x11b   : > { %v8383_v42 = vsel %vm7278_vm7, %v4426_v31, %v4427_v30  ;;  %v8397_v59 = vsel %vm7278_vm7, %v5705_v37, %v4431_v47  ;;  %v4433_v30 = vrot.slane %v4431_v47, 4  ;;  %v3985_v2 = vshrl.u32 %v5644_v29, 16 }
 0x11c   : > { %v5721_v33 = vcombine.low %v8361_v20, %v8383_v42  ;;  %v3988_v50 = vshll.u32 %v5644_v29, 16  ;;  %v3994_v61 = vshll.u32 %v8379_v55, 16  ;;  %v2293_v18 = vrot.slane %v2292_v17, 4  ;;  %v6726_v29 = vld [vmem:[%s7026_s13 + $0x30] sm:$0xff]  }
 0x11d   : > { %v3998_v49 = vshrl.u32 %v8379_v55, 16  ;;  %v8408_v38 = vsel %vm7278_vm7, %v4433_v30, %v4434_v12  ;;  %v5706_v63 = vrot.slane %v5690_v8, 9  ;;  %v3977_v56 = vor.u32 %v3976_v22, %v8387_v62 }
 0x11e   : > { %v3980_v31 = vshll.u32 %v8393_v52, 16  ;;  %v5722_v37 = vcombine.low %v8397_v59, %v8408_v38  ;;  %v5660_v46 = vcombine.low %v3925_v9, %v3935_v19  ;;  %v3944_v28 = vrot.slane %v3943_v11, 4  ;;  %v5691_v11 = vld [vmem:[%s7026_s13 + $0x9c] sm:$0xe] }
 0x11f   : > { %6322 = vmatmul.mubr.msk.bf16.gmra.mrb[16].mxu0 %vm699_vm3, %v8240_v5  ;;  %v8927_v5 = vld [vmem:[#allocation22_spill] sm:$0xff]  ;;  %v3954_v47 = vrot.slane %v3953_v6, 4  ;;  %v3968_v12 = vrot.slane %v3967_v44, 4  ;;  %v4441_v8 = vrot.slane %v8140_v3, 5  ;;  %v3987_v30 = vrot.slane %v3985_v2, 4  ;;  %v6727_v19 = vld [vmem:[%s7026_s13 + $0x3c] sm:$0xff]  }
 0x120   : > { %6170 = vmatmul.mubr.msk.bf16.vlgmr.msra.gmra.mrb[0].mxu1 %vm699_vm3, %v6724_v1  ;;  %6325 = vmatprep.mubr.msk.bf16.mxu0 %vm699_vm3, %v8242_v7  ;;  %v4438_v43 = vrot.slane %v8927_v5, 5  ;;  %v2298_v7 = vsel %vm7052_vm4, %v2293_v18, %v8929_v51  ;;  %v3990_v18 = vrot.slane %v3988_v50, 5  ;;  %v8431_v5 = vrot.slane %v3994_v61, 5 }
 0x121   : > { %6372 = vmatpush3.bf16.msra.mxu1 %v8928_v16  ;;  %6173 = vmatprep.mubr.msk.bf16.mxu1 %vm699_vm3, %v6725_v21  ;;  %v8420_v1 = vcombine.low %v2298_v7, %v2308_v41  ;;  %v8424_v21 = vld [vmem:[%s7026_s13 + $0xd4] sm:$0x1]  ;;  %v4000_v9 = vrot.slane %v3998_v49, 4  ;;  %v3978_v41 = vrot.slane %v3977_v56, 4  ;;  %v3982_v6 = vrot.slane %v3980_v31, 5 }
 0x122   : > { %v8428_v22 = vsel %vm7278_vm7, %v5706_v63, %v4438_v43  ;;  %v4440_v17 = vrot.slane %v4438_v43, 4  ;;  %v3949_v63 = vsel %vm7052_vm4, %v3944_v28, %v8328_v4  ;;  %v3959_v2 = vsel %vm7052_vm4, %v3954_v47, %v3958_v23  ;;  %v6777_v16 = vld [vmem:[%s7026_s13 + $0x1c] sm:$0xf]  ;;  %v5692_v28 = vld [vmem:[%s7026_s13 + $0xa8] sm:$0xe] }
 0x123   : > { %v4004_v50 = vshll.u32 %v8424_v21, 16  ;;  %v5707_v61 = vrot.slane %v5691_v11, 9  ;;  %v4445_v49 = vrot.slane %v8128_v25, 5  ;;  %v3973_v4 = vsel %vm7052_vm4, %v3968_v12, %v8387_v62  ;;  %v5680_v62 = vld [vmem:[%s7026_s13 + $0x18] sm:$0xe]  ;;  %v6728_v47 = vld [vmem:[%s7026_s13 + $0x48] sm:$0xff]  }
 0x124   : > { %v8437_v44 = vsel %vm7278_vm7, %v4440_v17, %v4441_v8  ;;  %v4001_v43 = vor.u32 %v4000_v9, %v8431_v5  ;;  %v4448_v23 = vrot.slane %v8173_v57, 5  ;;  %v3983_v25 = vsel %vm7052_vm4, %v3978_v41, %v3982_v6  ;;  %v6778_v11 = vld [vmem:[%s7026_s13 + $0x20] sm:$0x1] }
 0x125   : > { %v5723_v3 = vcombine.low %v8428_v22, %v8437_v44  ;;  %v4368_v56 = vrot.slane %v6777_v16, 5  ;;  %v8463_v31 = vsel %vm7278_vm7, %v5707_v61, %v4445_v49  ;;  %v4447_v51 = vrot.slane %v4445_v49, 4  ;;  %v5693_v49 = vld [vmem:[%s7026_s13 + $0xb4] sm:$0xe] }
 0x126   : > { %v5661_v7 = vcombine.low %v3949_v63, %v3959_v2  ;;  %v4002_v17 = vrot.slane %v4001_v43, 4  ;;  %v5708_v41 = vrot.slane %v5692_v28, 9  ;;  %v4452_v6 = vrot.slane %v8176_v34, 5  ;;  %v5681_v2 = vld [vmem:[%s7026_s13 + $0x24] sm:$0xe] }
 0x127   : > { %6326 = vmatmul.mubr.msk.bf16.gmra.mrb[20].mxu0 %vm699_vm3, %v8275_v24  ;;  %v3991_v24 = vor.u32 %v3990_v18, %v3987_v30  ;;  %v8468_v57 = vsel %vm7278_vm7, %v4447_v51, %v4448_v23  ;;  %v6729_v30 = vld [vmem:[%s7026_s13 + $0x54] sm:$0xff]   ;;  %v5696_v18 = vrot.slane %v5680_v62, 9  ;;  %v4370_v9 = vrot.slane %v4368_v56, 4  ;;  %v6781_v28 = vld [vmem:[%s7026_s13 + $0x2c] sm:$0x1] }
 0x128   : > { %6174 = vmatmul.mubr.msk.bf16.gmra.mrb[4].mxu1 %vm699_vm3, %v6726_v29  ;;  %6329 = vmatprep.mubr.msk.bf16.mxu0 %vm699_vm3, %v5660_v46  ;;  %v4006_v46 = vrot.slane %v4004_v50, 5  ;;  %v5662_v29 = vcombine.low %v3973_v4, %v3983_v25  ;;  %v5724_v8 = vcombine.low %v8463_v31, %v8468_v57  ;;  %v4455_v63 = vrot.slane %v8186_v48, 5  ;;  %v6779_v50 = vld [vmem:[%s7026_s13 + $0x28] sm:$0xf]  ;;  %v5682_v25 = vld [vmem:[%s7026_s13 + $0x30] sm:$0xe] }
 0x129   : > { %6177 = vmatprep.mubr.msk.bf16.mxu1 %vm699_vm3, %v6727_v19  ;;  %v3992_v12 = vrot.slane %v3991_v24, 4  ;;  %v4371_v19 = vrot.slane %v6778_v11, 5  ;;  %v4375_v61 = vrot.slane %v6779_v50, 5  ;;  %v8491_v48 = vsel %vm7278_vm7, %v5708_v41, %v4452_v6  ;;  %v6731_v11 = vld [vmem:[%s7026_s13 + $0x6c] sm:$0xff]   ;;  %v8930_v41 = vld [vmem:[#allocation13_spill] sm:$0xff] }
 0x12a   : > { %v4007_v34 = vsel %vm7052_vm4, %v4002_v17, %v4006_v46  ;;  %v4454_v24 = vrot.slane %v4452_v6, 4  ;;  %v4369_v43 = vsel %vm7278_vm7, %v5696_v18, %v4368_v56  ;;  %v5697_v51 = vrot.slane %v5681_v2, 9  ;;  %v5694_v50 = vld [vmem:[%s7026_s13 + $0xc0] sm:$0xe]  ;;  %v6795_v31 = vld [vmem:[%s7026_s13 + $0xc8] sm:$0x1] }
 0x12b   : > { %v3997_v4 = vsel %vm7052_vm4, %v3992_v12, %v8431_v5  ;;  %v4372_v23 = vsel %vm7278_vm7, %v4370_v9, %v4371_v19  ;;  %v6780_v5 = vld [vmem:[%s7026_s13 + $0x34] sm:$0xf]  ;;  %v6730_v12 = vld [vmem:[%s7026_s13 + $0x60] sm:$0xff]   ;;  %v5698_v18 = vrot.slane %v5682_v25, 9  ;;  %v4462_v9 = vrot.slane %v8300_v35, 5 }
 0x12c   : > { %v4382_v16 = vrot.slane %v6780_v5, 5  ;;  %v8502_v62 = vsel %vm7278_vm7, %v4454_v24, %v4455_v63  ;;  %v5663_v46 = vcombine.low %v3997_v4, %v4007_v34  ;;  %v5713_v17 = vcombine.low %v4369_v43, %v4372_v23  ;;  %v5683_v24 = vld [vmem:[%s7026_s13 + $0x3c] sm:$0xe] }
 0x12d   : > { %v5725_v56 = vcombine.low %v8491_v48, %v8502_v62  ;;  %v4385_v6 = vrot.slane %v8930_v41, 5  ;;  %v4376_v35 = vsel %vm7278_vm7, %v5697_v51, %v4375_v61  ;;  %v5710_v5 = vrot.slane %v5694_v50, 9 }
 0x12e   : > { %v4384_v19 = vrot.slane %v4382_v16, 4  ;;  %v4383_v23 = vsel %vm7278_vm7, %v5698_v18, %v4382_v16  ;;  %v4469_v51 = vrot.slane %v8393_v52, 5  ;;  %v2449_v57 = vshll.u32 %v6795_v31, 16 }
 0x12f   : > { %6330 = vmatmul.mubr.msk.bf16.gmra.mrb[24].mxu0 %vm699_vm3, %v5661_v7  ;;  %v5709_v7 = vrot.slane %v5693_v49, 9 }
 0x130   : > { %6178 = vmatmul.mubr.msk.bf16.gmra.mrb[8].mxu1 %vm699_vm3, %v6728_v47  ;;  %6333 = vmatprep.mubr.msk.bf16.mxu0 %vm699_vm3, %v5662_v29  ;;  %v4378_v47 = vrot.slane %v6781_v28, 5  ;;  %v4459_v29 = vrot.slane %v8251_v39, 5  ;;  %v8931_v39 = vld [vmem:[#allocation14_spill] sm:$0xff]  ;;  %v4386_v25 = vsel %vm7278_vm7, %v4384_v19, %v4385_v6  ;;  %v5699_v28 = vrot.slane %v5683_v24, 9 }
 0x131   : > { %6181 = vmatprep.mubr.msk.bf16.mxu1 %vm699_vm3, %v6729_v30  ;;  %v4377_v30 = vrot.slane %v4375_v61, 4  ;;  %v4389_v49 = vrot.slane %v8931_v39, 5  ;;  %v4466_v61 = vrot.slane %v8303_v58, 5  ;;  %v6782_v39 = vld [vmem:[%s7026_s13 + $0x70] sm:$0xf]  ;;  %v4473_v24 = vrot.slane %v8379_v55, 5 }
 0x132   : > { %v8514_v63 = vsel %vm7278_vm7, %v5709_v7, %v4459_v29  ;;  %v4461_v2 = vrot.slane %v4459_v29, 4  ;;  %v5412_v7 = vld [vmem:[%s7026_s13 + $0x6c] sm:$0xf]  ;;  %v8932_v29 = vld [vmem:[#allocation15_spill] sm:$0xff] }
 0x133   : > { %v4379_v34 = vsel %vm7278_vm7, %v4377_v30, %v4378_v47  ;;  %v4391_v47 = vrot.slane %v4389_v49, 4  ;;  %v6732_v30 = vld [vmem:[%s7026_s13 + $0x78] sm:$0xff]   ;;  %v8545_v16 = vsel %vm7278_vm7, %v5710_v5, %v4466_v61  ;;  %v4468_v18 = vrot.slane %v4466_v61, 4 }
 0x134   : > { %v8521_v4 = vsel %vm7278_vm7, %v4461_v2, %v4462_v9  ;;  %v5715_v9 = vcombine.low %v4383_v23, %v4386_v25  ;;  %v2262_v19 = vshrl.u32 %v5412_v7, 16  ;;  %v2265_v41 = vshll.u32 %v5412_v7, 16 }
 0x135   : > { %v5726_v43 = vcombine.low %v8514_v63, %v8521_v4  ;;  %v8550_v58 = vsel %vm7278_vm7, %v4468_v18, %v4469_v51  ;;  %v4390_v6 = vsel %vm7278_vm7, %v5699_v28, %v4389_v49  ;;  %v4476_v49 = vrot.slane %v8424_v21, 5  ;;  %v6734_v51 = vld [vmem:[%s7026_s13 + $0x90] sm:$0xff]   ;;  %v6735_v21 = vld [vmem:[%s7026_s13 + $0x9c] sm:$0xff]  }
 0x136   : > { %v5727_v50 = vcombine.low %v8545_v16, %v8550_v58  ;;  %v2264_v23 = vrot.slane %v2262_v19, 4  ;;  %v2267_v25 = vrot.slane %v2265_v41, 5  ;;  %v4475_v7 = vrot.slane %v4473_v24, 4 }
 0x137   : > { %6334 = vmatmul.mubr.msk.bf16.gmra.mrb[28].mxu0 %vm699_vm3, %v5663_v46  ;;  %v5714_v46 = vcombine.low %v4376_v35, %v4379_v34  ;;  %v2271_v35 = vshll.u32 %v6782_v39, 16  ;;  %v2275_v34 = vshrl.u32 %v6782_v39, 16 }
 0x138   : > { %6182 = vmatmul.mubr.msk.bf16.gmra.mrb[12].mxu1 %vm699_vm3, %v6730_v12  ;;  %6339 = vmatprep.mubr.msk.bf16.mxu0 %vm699_vm3, %v5713_v17  ;;  %v4392_v12 = vrot.slane %v8932_v29, 5  ;;  %v5695_v17 = vld [vmem:[%s7026_s13 + $0xcc] sm:$0xe]  ;;  %v8572_v55 = vsel %vm7278_vm7, %v4475_v7, %v4476_v49 }
 0x139   : > { %6185 = vmatprep.mubr.msk.bf16.mxu1 %vm699_vm3, %v6731_v11  ;;  %v6733_v11 = vld [vmem:[%s7026_s13 + $0x84] sm:$0xff]   ;;  %v5711_v52 = vrot.slane %v5695_v17, 9  ;;  %v2277_v28 = vrot.slane %v2275_v34, 4  ;;  %v6783_v17 = vld [vmem:[%s7026_s13 + $0x74] sm:$0x1] }
 0x13a   : > { %v4393_v2 = vsel %vm7278_vm7, %v4391_v47, %v4392_v12  ;;  %v5418_v47 = vld [vmem:[%s7026_s13 + $0x84] sm:$0xf]  ;;  %v2268_v12 = vor.u32 %v2267_v25, %v2264_v23  ;;  %v6737_v34 = vld [vmem:[%s7026_s13 + $0xb4] sm:$0xff]  }
 0x13b   : > { %v8567_v5 = vsel %vm7278_vm7, %v5711_v52, %v4473_v24  ;;  %v5716_v61 = vcombine.low %v4390_v6, %v4393_v2  ;;  %v2313_v18 = vshll.u32 %v5418_v47, 16  ;;  %v5421_v6 = vld [vmem:[%s7026_s13 + $0x90] sm:$0xf]  ;;  %v6736_v2 = vld [vmem:[%s7026_s13 + $0xa8] sm:$0xff]  }
 0x13c   : > { %v5728_v29 = vcombine.low %v8567_v5, %v8572_v55  ;;  %v2269_v52 = vrot.slane %v2268_v12, 4  ;;  %v2334_v23 = vshrl.u32 %v5421_v6, 16  ;;  %v2337_v25 = vshll.u32 %v5421_v6, 16 }
 0x13d   : > { %v2367_v12 = vshll.u32 %v6786_v60, 16 }
 0x13e   : > { %v2339_v14 = vrot.slane %v2337_v25, 5  ;;  %v6789_v25 = vld [vmem:[%s7026_s13 + $0xa4] sm:$0x1] }
 0x13f   : > { %6340 = vmatmul.mubr.msk.bf16.vlgmr.msra.gmra.mrb[0].mxu0 %vm699_vm3, %v5714_v46  ;;  %v2273_v46 = vrot.slane %v2271_v35, 5  ;;  %v5424_v35 = vld [vmem:[%s7026_s13 + $0x9c] sm:$0xf]  ;;  %v8614_v6 = vrot.slane %v2367_v12, 5 }
 0x140   : > { %6186 = vmatmul.mubr.msk.bf16.gmra.mrb[16].mxu1 %vm699_vm3, %v6732_v30  ;;  %6343 = vmatprep.mubr.msk.bf16.mxu0 %vm699_vm3, %v5715_v9  ;;  %v2281_v30 = vshll.u32 %v6783_v17, 16  ;;  %v2310_v9 = vshrl.u32 %v5418_v47, 16  ;;  %v2361_v47 = vshll.u32 %v5424_v35, 16  ;;  %v6787_v17 = vld [vmem:[%s7026_s13 + $0x8c] sm:$0x1] }
 0x141   : > { %6189 = vmatprep.mubr.msk.bf16.mxu1 %vm699_vm3, %v6733_v11  ;;  %v2278_v13 = vor.u32 %v2277_v28, %v2273_v46  ;;  %v6784_v11 = vld [vmem:[%s7026_s13 + $0x88] sm:$0xf]  ;;  %v2274_v7 = vsel %vm7052_vm4, %v2269_v52, %v2273_v46 }
 0x142   : > { %v2319_v19 = vshll.u32 %v6784_v11, 16  ;;  %v2323_v41 = vshrl.u32 %v6784_v11, 16  ;;  %v2283_v0 = vrot.slane %v2281_v30, 5  ;;  %v2312_v36 = vrot.slane %v2310_v9, 4 }
 0x143   : > { %v2279_v39 = vrot.slane %v2278_v13, 4  ;;  %v2329_v30 = vshll.u32 %v6787_v17, 16  ;;  %v2336_v9 = vrot.slane %v2334_v23, 4  ;;  %v2363_v11 = vrot.slane %v2361_v47, 5 }
 0x144   : > { %v8591_v24 = vrot.slane %v2319_v19, 5  ;;  %v2325_v49 = vrot.slane %v2323_v41, 4  ;;  %v6738_v19 = vld [vmem:[%s7026_s13 + $0xc0] sm:$0xff]  }
 0x145   : > { %v2284_v46 = vsel %vm7052_vm4, %v2279_v39, %v2283_v0  ;;  %v5427_v39 = vld [vmem:[%s7026_s13 + $0xa8] sm:$0xf] }
 0x146   : > { %v2326_v13 = vor.u32 %v2325_v49, %v8591_v24  ;;  %v5445_v41 = vcombine.low %v2274_v7, %v2284_v46  ;;  %v2377_v7 = vshll.u32 %v6789_v25, 16  ;;  %v2385_v45 = vshll.u32 %v5427_v39, 16 }
 0x147   : > { %6344 = vmatmul.mubr.msk.bf16.gmra.mrb[4].mxu0 %vm699_vm3, %v5716_v61  ;;  %v6785_v61 = vld [vmem:[%s7026_s13 + $0x94] sm:$0xf] }
 0x148   : > { %6190 = vmatmul.mubr.msk.bf16.gmra.mrb[20].mxu1 %vm699_vm3, %v6734_v51  ;;  %6347 = vmatprep.mubr.msk.bf16.mxu0 %vm699_vm3, %v5717_v10  ;;  %v2315_v10 = vrot.slane %v2313_v18, 5  ;;  %v2343_v51 = vshll.u32 %v6785_v61, 16  ;;  %v2347_v28 = vshrl.u32 %v6785_v61, 16  ;;  %v2327_v0 = vrot.slane %v2326_v13, 4 }
 0x149   : > { %6193 = vmatprep.mubr.msk.bf16.mxu1 %vm699_vm3, %v6735_v21  ;;  %v2358_v21 = vshrl.u32 %v5424_v35, 16  ;;  %v6788_v35 = vld [vmem:[%s7026_s13 + $0x98] sm:$0x1]  ;;  %v2382_v61 = vshrl.u32 %v5427_v39, 16  ;;  %v5433_v39 = vld [vmem:[%s7026_s13 + $0xc0] sm:$0xf] }
 0x14a   : > { %v2316_v15 = vor.u32 %v2315_v10, %v2312_v36  ;;  %v8611_v26 = vrot.slane %v2343_v51, 5  ;;  %v2331_v36 = vrot.slane %v2329_v30, 5  ;;  %v2340_v10 = vor.u32 %v2339_v14, %v2336_v9  ;;  %v5430_v51 = vld [vmem:[%s7026_s13 + $0xb4] sm:$0xf] }
 0x14b   : > { %v2360_v18 = vrot.slane %v2358_v21, 4  ;;  %v2395_v21 = vshrl.u32 %v6790_v27, 16  ;;  %v2406_v20 = vshrl.u32 %v5430_v51, 16  ;;  %v2409_v42 = vshll.u32 %v5430_v51, 16 }
 0x14c   : > { %v2317_v52 = vrot.slane %v2316_v15, 4  ;;  %v2332_v46 = vsel %vm7052_vm4, %v2327_v0, %v2331_v36  ;;  %v2341_v15 = vrot.slane %v2340_v10, 4  ;;  %v2379_v30 = vrot.slane %v2377_v7, 5 }
 0x14d   : > { %v2364_v23 = vor.u32 %v2363_v11, %v2360_v18  ;;  %v2384_v9 = vrot.slane %v2382_v61, 4  ;;  %v2397_v11 = vrot.slane %v2395_v21, 4  ;;  %v6794_v61 = vld [vmem:[%s7026_s13 + $0xbc] sm:$0x1] }
 0x14e   : > { %v2322_v47 = vsel %vm7052_vm4, %v2317_v52, %v8591_v24  ;;  %v2346_v0 = vsel %vm7052_vm4, %v2341_v15, %v8611_v26  ;;  %v2425_v22 = vshll.u32 %v6794_v61, 16 }
 0x14f   : > { %6348 = vmatmul.mubr.msk.bf16.gmra.mrb[8].mxu0 %vm699_vm3, %v5718_v40  ;;  %v2371_v40 = vshrl.u32 %v6786_v60, 16  ;;  %v2365_v17 = vrot.slane %v2364_v23, 4  ;;  %v5447_v24 = vcombine.low %v2322_v47, %v2332_v46 }
 0x150   : > { %6194 = vmatmul.mubr.msk.bf16.gmra.mrb[24].mxu1 %vm699_vm3, %v6736_v2  ;;  %6351 = vmatprep.mubr.msk.bf16.mxu0 %vm699_vm3, %v5719_v54  ;;  %v2349_v54 = vrot.slane %v2347_v28, 4 }
 0x151   : > { %6197 = vmatprep.mubr.msk.bf16.mxu1 %vm699_vm3, %v6737_v34  ;;  %v2373_v2 = vrot.slane %v2371_v40, 4  ;;  %v2353_v34 = vshll.u32 %v6788_v35, 16  ;;  %v2370_v10 = vsel %vm7052_vm4, %v2365_v17, %v8614_v6  ;;  %v2451_v17 = vrot.slane %v2449_v57, 5 }
 0x152   : > { %v2350_v49 = vor.u32 %v2349_v54, %v8611_v26  ;;  %v2387_v54 = vrot.slane %v2385_v45, 5  ;;  %v6792_v26 = vld [vmem:[%s7026_s13 + $0xb0] sm:$0x1] }
 0x153   : > { %v2374_v28 = vor.u32 %v2373_v2, %v8614_v6  ;;  %v2355_v60 = vrot.slane %v2353_v34, 5  ;;  %v2401_v35 = vshll.u32 %v6792_v26, 16  ;;  %v2430_v34 = vshrl.u32 %v5433_v39, 16 }
 0x154   : > { %v2351_v13 = vrot.slane %v2350_v49, 4  ;;  %v2388_v38 = vor.u32 %v2387_v54, %v2384_v9  ;;  %v2433_v6 = vshll.u32 %v5433_v39, 16  ;;  %v6793_v49 = vld [vmem:[%s7026_s13 + $0xc4] sm:$0xf] }
 0x155   : > { %v2375_v14 = vrot.slane %v2374_v28, 4  ;;  %v2439_v23 = vshll.u32 %v6793_v49, 16  ;;  %v2443_v25 = vshrl.u32 %v6793_v49, 16  ;;  %v2403_v45 = vrot.slane %v2401_v35, 5 }
 0x156   : > { %v2356_v36 = vsel %vm7052_vm4, %v2351_v13, %v2355_v60  ;;  %v2389_v51 = vrot.slane %v2388_v38, 4  ;;  %v2427_v60 = vrot.slane %v2425_v22, 5 }
 0x157   : > { %6352 = vmatmul.mubr.msk.bf16.gmra.mrb[12].mxu0 %vm699_vm3, %v5720_v53  ;;  %v2391_v53 = vshll.u32 %v6790_v27, 16  ;;  %v2380_v59 = vsel %vm7052_vm4, %v2375_v14, %v2379_v30  ;;  %v5448_v44 = vcombine.low %v2346_v0, %v2356_v36  ;;  %v2432_v27 = vrot.slane %v2430_v34, 4 }
 0x158   : > { %6198 = vmatmul.mubr.msk.bf16.gmra.mrb[28].mxu1 %vm699_vm3, %v6738_v19  ;;  %6355 = vmatprep.mubr.msk.bf16.mxu0 %vm699_vm3, %v5721_v33  ;;  %v6791_v33 = vld [vmem:[%s7026_s13 + $0xb8] sm:$0xf]  ;;  %v2408_v19 = vrot.slane %v2406_v20, 4  ;;  %v2441_v21 = vrot.slane %v2439_v23, 5  ;;  %v2445_v47 = vrot.slane %v2443_v25, 4  ;;  %s5207_s13 = sshll.u32 %s8713_s12, 7 }
 0x159   : > { %6219 = vmatprep.mubr.msk.bf16.mxu1 %vm699_vm3, %v5445_v41  ;;  %v2415_v12 = vshll.u32 %v6791_v33, 16  ;;  %v2419_v40 = vshrl.u32 %v6791_v33, 16  ;;  %v2393_v18 = vrot.slane %v2391_v53, 5  ;;  %v2411_v41 = vrot.slane %v2409_v42, 5  ;;  %s8716_s14 = scalar_lea.vmem [#allocation2], %s5207_s13 }
 0x15a   : > { %v2435_v53 = vrot.slane %v2433_v6, 5  ;;  %s5062_s23 = sshll.u32 %s8716_s14, 4  ;;  %s8744_s23 = int_to_ptr.vmem [resolvable:$true] %s5062_s23 }
 0x15b   : > { %v2417_v52 = vrot.slane %v2415_v12, 5  ;;  %v2421_v2 = vrot.slane %v2419_v40, 4  ;;  %v2394_v20 = vsel %vm7052_vm4, %v2389_v51, %v2393_v18  ;;  %v2446_v12 = vor.u32 %v2445_v47, %v2441_v21  ;;  %s6796_s5 = scalar_lea.vmem %s8744_s23, 2048  ;;  %p6803_p0 = scmp.lt.s32.totalorder %s8744_s23, %s6801_s7 }
 0x15c   : > { %v2436_v33 = vor.u32 %v2435_v53, %v2432_v27  ;;  %p6797_p11 = scmp.ne.s32.totalorder %s8744_s23, %s6796_s5  ;;  %p6804_p1 = scmp.lt.s32.totalorder %s6802_s8, %s6796_s5 }
 0x15d   : > { %v2422_v7 = vor.u32 %v2421_v2, %v2417_v52  ;;  %v2447_v13 = vrot.slane %v2446_v12, 4 }
 0x15e   : > { %v2437_v40 = vrot.slane %v2436_v33, 4  ;;  %p6798_p12 = pnand %p6797_p11, %p6990_p5  ;;  %p6805_p2 = por %p6804_p1, %p6803_p0 }
 0x15f   : > { %6356 = vmatmul.mubr.msk.bf16.gmra.mrb[16].mxu0 %vm699_vm3, %v5722_v37  ;;  %v2398_v37 = vor.u32 %v2397_v11, %v2393_v18  ;;  %v2423_v15 = vrot.slane %v2422_v7, 4  ;;  %v2452_v9 = vsel %vm7052_vm4, %v2447_v13, %v2451_v17 }
 0x160   : > { %6220 = vmatmul.mubr.msk.bf16.vlgmr.msra.gmra.mrb[16].mxu1 %vm699_vm3, %v8420_v1  ;;  %6359 = vmatprep.mubr.msk.bf16.mxu0 %vm699_vm3, %v5723_v3  ;;  %v2412_v1 = vor.u32 %v2411_v41, %v2408_v19  ;;  %v5449_v3 = vcombine.low %v2370_v10, %v2380_v59  ;;  %v2442_v30 = vsel %vm7052_vm4, %v2437_v40, %v2441_v21  ;;  %p6799_p13 = pneg %p6798_p12 }
 0x161   : > { %6223 = vmatprep.mubr.msk.bf16.mxu1 %vm699_vm3, %v5447_v24  ;;  %v2399_v28 = vrot.slane %v2398_v37, 4  ;;  %v2428_v48 = vsel %vm7052_vm4, %v2423_v15, %v2427_v60  ;;  %v5452_v14 = vcombine.low %v2442_v30, %v2452_v9 }
 0x162   : > { %v2413_v46 = vrot.slane %v2412_v1, 4  ;;  %p6806_p3 = pnand %p6805_p2, %p6799_p13 }
 0x163   : > { %v2404_v42 = vsel %vm7052_vm4, %v2399_v28, %v2403_v45 }
 0x164   : > { %v5450_v62 = vcombine.low %v2394_v20, %v2404_v42 }
 0x167   : > { %6360 = vmatmul.mubr.msk.bf16.gmra.mrb[20].mxu0 %vm699_vm3, %v5724_v8  ;;  %v2418_v8 = vsel %vm7052_vm4, %v2413_v46, %v2417_v52 }
 0x168   : > { %6224 = vmatmul.mubr.msk.bf16.gmra.mrb[20].mxu1 %vm699_vm3, %v5448_v44  ;;  %6363 = vmatprep.mubr.msk.bf16.mxu0 %vm699_vm3, %v5725_v56  ;;  %v5451_v56 = vcombine.low %v2418_v8, %v2428_v48 }
 0x169   : > { %6227 = vmatprep.mubr.msk.bf16.mxu1 %vm699_vm3, %v5449_v3 }
 0x16f   : > { %6364 = vmatmul.mubr.msk.bf16.gmra.mrb[24].mxu0 %vm699_vm3, %v5726_v43 }
 0x170   : > { %6228 = vmatmul.mubr.msk.bf16.gmra.mrb[24].mxu1 %vm699_vm3, %v5450_v62  ;;  %6367 = vmatprep.mubr.msk.bf16.mxu0 %vm699_vm3, %v5727_v50 }
 0x171   : > { %6231 = vmatprep.mubr.msk.bf16.mxu1 %vm699_vm3, %v5451_v56 }
 0x177   : > { %6368 = vmatmul.mubr.msk.bf16.gmra.mrb[28].mxu0 %vm699_vm3, %v5728_v29 }
 0x178   : > { %6232 = vmatmul.mubr.msk.bf16.gmra.mrb[28].mxu1 %vm699_vm3, %v5452_v14 }
 0x1f3   : > { %v6171_v63 = vpop.f32.mrb[0].mxu1 }
 0x1f4   : > { %v1862_v4 = vpop.f32.mrb[1].mxu1 }
 0x1f5   : > { %v6172_v43 = vpop.f32.mrb[2].mxu1 }
 0x1f6   : > { %v1865_v16 = vpop.f32.mrb[3].mxu1 }
 0x1fb   : > { %v6175_v58 = vpop.f32.mrb[4].mxu1 }
 0x1fc   : > { %v1878_v50 = vpop.f32.mrb[5].mxu1 }
 0x1fd   : > { %v6176_v54 = vpop.f32.mrb[6].mxu1 }
 0x1fe   : > { %v1881_v18 = vpop.f32.mrb[7].mxu1 }
 0x203   : > { %v6179_v11 = vpop.f32.mrb[8].mxu1 }
 0x204   : > { %v1894_v32 = vpop.f32.mrb[9].mxu1 }
 0x205   : > { %v6180_v24 = vpop.f32.mrb[10].mxu1 }
 0x206   : > { %v8702_v19 = vpop.f32.mrb[11].mxu1 }
 0x20b   : > { %v8704_v41 = vpop.f32.mrb[12].mxu1 }
 0x20c   : > { %v8706_v5 = vpop.f32.mrb[13].mxu1 }
 0x20d   : > { %v8708_v55 = vpop.f32.mrb[14].mxu1 }
 0x20e   : > { %v8710_v29 = vpop.f32.mrb[15].mxu1 }
 0x212   : > { %v6341_v52 = vpop.f32.mrb[0].mxu0 }
 0x213   : > { %v6373_v2 = vadd.f32 %v6341_v52, %v6171_v63  ;;  %v4613_v39 = vpop.f32.mrb[1].mxu0 }
 0x214   : > { %v6374_v0 = vadd.f32 %v4613_v39, %v1862_v4  ;;  %v6342_v36 = vpop.f32.mrb[2].mxu0 }
 0x215   : > { %v6375_v10 = vadd.f32 %v6342_v36, %v6172_v43  ;;  %v4616_v59 = vpop.f32.mrb[3].mxu0  ;;  %v4972_v49 = vmul.f32 %v6373_v2, %v6373_v2 }
 0x216   : > { %v6376_v38 = vadd.f32 %v4616_v59, %v1865_v16  ;;  %v4970_v26 = vmul.f32 %v6374_v0, %v6374_v0 }
 0x217   : > { %v5825_v37 = vpack.c.bf16 %v6375_v10, %v6373_v2  ;;  %v4973_v22 = vmul.f32 %v6375_v10, %v6375_v10 }
 0x218   : > { %v5820_v35 = vpack.c.bf16 %v6376_v38, %v6374_v0  ;;  %v4932_v34 = vadd.f32 %v6376_v38, %v6374_v0  ;;  %v4971_v6 = vmul.f32 %v6376_v38, %v6376_v38 }
 0x219   : > { %5897 = vst [vmem:[%s8716_s14 + $0x8] sm:$0xff] %v5825_v37  }
 0x21a   : > { %5821 = vst [vmem:[%s8716_s14] sm:$0xff] %v5820_v35   ;;  %v4933_v23 = vadd.f32 %v6373_v2, %v4932_v34  ;;  %v5002_v25 = vadd.f32 %v4971_v6, %v4970_v26  ;;  %v6345_v1 = vpop.f32.mrb[4].mxu0 }
 0x21b   : > { %v6377_v7 = vadd.f32 %v6345_v1, %v6175_v58  ;;  %v4629_v61 = vpop.f32.mrb[5].mxu0 }
 0x21c   : > { %v5003_v44 = vadd.f32 %v5002_v25, %v4972_v49  ;;  %v6378_v3 = vadd.f32 %v4629_v61, %v1878_v50  ;;  %v4934_v51 = vadd.f32 %v6375_v10, %v4933_v23  ;;  %v6346_v28 = vpop.f32.mrb[6].mxu0 }
 0x21d   : > { %v6379_v45 = vadd.f32 %v6346_v28, %v6176_v54  ;;  %v4632_v27 = vpop.f32.mrb[7].mxu0  ;;  %v4976_v12 = vmul.f32 %v6377_v7, %v6377_v7 }
 0x21e   : > { %v4935_v53 = vadd.f32 %v6378_v3, %v4934_v51  ;;  %v4974_v21 = vmul.f32 %v6378_v3, %v6378_v3  ;;  %v5004_v47 = vadd.f32 %v5003_v44, %v4973_v22  ;;  %v6380_v46 = vadd.f32 %v4632_v27, %v1881_v18 }
 0x21f   : > { %v5835_v15 = vpack.c.bf16 %v6379_v45, %v6377_v7  ;;  %v4977_v56 = vmul.f32 %v6379_v45, %v6379_v45 }
 0x220   : > { %v5005_v60 = vadd.f32 %v5004_v47, %v4974_v21  ;;  %v5830_v20 = vpack.c.bf16 %v6380_v46, %v6378_v3  ;;  %v4936_v42 = vadd.f32 %v6380_v46, %v4935_v53  ;;  %v4975_v33 = vmul.f32 %v6380_v46, %v6380_v46 }
 0x221   : > { %5899 = vst [vmem:[%s8716_s14 + $0x18] sm:$0xff] %v5835_v15  }
 0x222   : > { %5898 = vst [vmem:[%s8716_s14 + $0x10] sm:$0xff] %v5830_v20   ;;  %v4937_v31 = vadd.f32 %v6377_v7, %v4936_v42  ;;  %v5006_v57 = vadd.f32 %v5005_v60, %v4975_v33  ;;  %v6349_v8 = vpop.f32.mrb[8].mxu0 }
 0x223   : > { %v6381_v48 = vadd.f32 %v6349_v8, %v6179_v11  ;;  %v4645_v62 = vpop.f32.mrb[9].mxu0 }
 0x224   : > { %v5007_v40 = vadd.f32 %v5006_v57, %v4976_v12  ;;  %v6382_v13 = vadd.f32 %v4645_v62, %v1894_v32  ;;  %v4938_v17 = vadd.f32 %v6379_v45, %v4937_v31  ;;  %v6350_v30 = vpop.f32.mrb[10].mxu0 }
 0x225   : > { %v6383_v9 = vadd.f32 %v6350_v30, %v6180_v24  ;;  %v4648_v14 = vpop.f32.mrb[11].mxu0  ;;  %v4980_v52 = vmul.f32 %v6381_v48, %v6381_v48 }
 0x226   : > { %v4939_v63 = vadd.f32 %v6382_v13, %v4938_v17  ;;  %v4978_v4 = vmul.f32 %v6382_v13, %v6382_v13  ;;  %v5008_v43 = vadd.f32 %v5007_v40, %v4977_v56  ;;  %v6384_v16 = vadd.f32 %v4648_v14, %v8702_v19 }
 0x227   : > { %v5845_v58 = vpack.c.bf16 %v6383_v9, %v6381_v48  ;;  %v4981_v36 = vmul.f32 %v6383_v9, %v6383_v9 }
 0x228   : > { %v5009_v50 = vadd.f32 %v5008_v43, %v4978_v4  ;;  %v5840_v54 = vpack.c.bf16 %v6384_v16, %v6382_v13  ;;  %v4940_v18 = vadd.f32 %v6384_v16, %v4939_v63  ;;  %v4979_v11 = vmul.f32 %v6384_v16, %v6384_v16 }
 0x229   : > { %5901 = vst [vmem:[%s8716_s14 + $0x28] sm:$0xff] %v5845_v58  }
 0x22a   : > { %5900 = vst [vmem:[%s8716_s14 + $0x20] sm:$0xff] %v5840_v54   ;;  %v4941_v2 = vadd.f32 %v6381_v48, %v4940_v18  ;;  %v5010_v32 = vadd.f32 %v5009_v50, %v4979_v11  ;;  %v6353_v39 = vpop.f32.mrb[12].mxu0 }
 0x22b   : > { %v6385_v0 = vadd.f32 %v6353_v39, %v8704_v41  ;;  %v4661_v24 = vpop.f32.mrb[13].mxu0 }
 0x22c   : > { %v5011_v10 = vadd.f32 %v5010_v32, %v4980_v52  ;;  %v6386_v59 = vadd.f32 %v4661_v24, %v8706_v5  ;;  %v4942_v19 = vadd.f32 %v6383_v9, %v4941_v2  ;;  %v6354_v38 = vpop.f32.mrb[14].mxu0 }
 0x22d   : > { %v6387_v37 = vadd.f32 %v6354_v38, %v8708_v55  ;;  %v4664_v26 = vpop.f32.mrb[15].mxu0  ;;  %v4984_v61 = vmul.f32 %v6385_v0, %v6385_v0 }
 0x22e   : > { %v4943_v35 = vadd.f32 %v6386_v59, %v4942_v19  ;;  %v4982_v34 = vmul.f32 %v6386_v59, %v6386_v59  ;;  %v5012_v6 = vadd.f32 %v5011_v10, %v4981_v36  ;;  %v6388_v49 = vadd.f32 %v4664_v26, %v8710_v29 }
 0x22f   : > { %v5855_v23 = vpack.c.bf16 %v6387_v37, %v6385_v0  ;;  %v4985_v55 = vmul.f32 %v6387_v37, %v6387_v37 }
 0x230   : > { %v5013_v25 = vadd.f32 %v5012_v6, %v4982_v34  ;;  %v5850_v41 = vpack.c.bf16 %v6388_v49, %v6386_v59  ;;  %v4944_v1 = vadd.f32 %v6388_v49, %v4943_v35  ;;  %v4983_v7 = vmul.f32 %v6388_v49, %v6388_v49 }
 0x231   : > { %5903 = vst [vmem:[%s8716_s14 + $0x38] sm:$0xff] %v5855_v23  }
 0x232   : > { %5902 = vst [vmem:[%s8716_s14 + $0x30] sm:$0xff] %v5850_v41   ;;  %v4945_v5 = vadd.f32 %v6385_v0, %v4944_v1  ;;  %v5014_v22 = vadd.f32 %v5013_v25, %v4983_v7  ;;  %v6357_v44 = vpop.f32.mrb[16].mxu0 }
 0x233   : > { %v6221_v3 = vpop.f32.mrb[16].mxu1  ;;  %v4677_v51 = vpop.f32.mrb[17].mxu0 }
 0x234   : > { %v5015_v28 = vadd.f32 %v5014_v22, %v4984_v61  ;;  %v6389_v45 = vadd.f32 %v6357_v44, %v6221_v3  ;;  %v2652_v27 = vpop.f32.mrb[17].mxu1  ;;  %v4946_v53 = vadd.f32 %v6387_v37, %v4945_v5  ;;  %v6358_v29 = vpop.f32.mrb[18].mxu0 }
 0x235   : > { %v6390_v21 = vadd.f32 %v4677_v51, %v2652_v27  ;;  %v6222_v47 = vpop.f32.mrb[18].mxu1  ;;  %v4680_v46 = vpop.f32.mrb[19].mxu0 }
 0x236   : > { %v5016_v15 = vadd.f32 %v5015_v28, %v4985_v55  ;;  %v6391_v60 = vadd.f32 %v6358_v29, %v6222_v47  ;;  %v2655_v20 = vpop.f32.mrb[19].mxu1  ;;  %v4988_v40 = vmul.f32 %v6389_v45, %v6389_v45 }
 0x237   : > { %v4947_v42 = vadd.f32 %v6390_v21, %v4946_v53  ;;  %v4986_v33 = vmul.f32 %v6390_v21, %v6390_v21  ;;  %v6392_v12 = vadd.f32 %v4680_v46, %v2655_v20 }
 0x238   : > { %v5865_v31 = vpack.c.bf16 %v6391_v60, %v6389_v45  ;;  %v4989_v43 = vmul.f32 %v6391_v60, %v6391_v60 }
 0x239   : > { %v5017_v57 = vadd.f32 %v5016_v15, %v4986_v33  ;;  %v5860_v8 = vpack.c.bf16 %v6392_v12, %v6390_v21  ;;  %v4948_v48 = vadd.f32 %v6392_v12, %v4947_v42  ;;  %v4987_v62 = vmul.f32 %v6392_v12, %v6392_v12 }
 0x23a   : > { %5905 = vst [vmem:[%s8716_s14 + $0x48] sm:$0xff] %v5865_v31   ;;  %v6361_v56 = vpop.f32.mrb[20].mxu0 }
 0x23b   : > { %5904 = vst [vmem:[%s8716_s14 + $0x40] sm:$0xff] %v5860_v8   ;;  %v4949_v13 = vadd.f32 %v6389_v45, %v4948_v48  ;;  %v5018_v17 = vadd.f32 %v5017_v57, %v4987_v62  ;;  %v6225_v30 = vpop.f32.mrb[20].mxu1  ;;  %v4693_v9 = vpop.f32.mrb[21].mxu0 }
 0x23c   : > { %v6393_v14 = vadd.f32 %v6361_v56, %v6225_v30  ;;  %v2668_v63 = vpop.f32.mrb[21].mxu1  ;;  %v6362_v4 = vpop.f32.mrb[22].mxu0 }
 0x23d   : > { %v5019_v16 = vadd.f32 %v5018_v17, %v4988_v40  ;;  %v6394_v58 = vadd.f32 %v4693_v9, %v2668_v63  ;;  %v4950_v50 = vadd.f32 %v6391_v60, %v4949_v13  ;;  %v6226_v54 = vpop.f32.mrb[22].mxu1  ;;  %v4696_v18 = vpop.f32.mrb[23].mxu0 }
 0x23e   : > { %v6395_v11 = vadd.f32 %v6362_v4, %v6226_v54  ;;  %v2671_v52 = vpop.f32.mrb[23].mxu1  ;;  %v4992_v37 = vmul.f32 %v6393_v14, %v6393_v14 }
 0x23f   : > { %v4951_v2 = vadd.f32 %v6394_v58, %v4950_v50  ;;  %v4990_v32 = vmul.f32 %v6394_v58, %v6394_v58  ;;  %v5020_v39 = vadd.f32 %v5019_v16, %v4989_v43  ;;  %v6396_v0 = vadd.f32 %v4696_v18, %v2671_v52 }
 0x240   : > { %v5875_v24 = vpack.c.bf16 %v6395_v11, %v6393_v14  ;;  %v4993_v41 = vmul.f32 %v6395_v11, %v6395_v11 }
 0x241   : > { %v5021_v36 = vadd.f32 %v5020_v39, %v4990_v32  ;;  %v5870_v10 = vpack.c.bf16 %v6396_v0, %v6394_v58  ;;  %v4952_v59 = vadd.f32 %v6396_v0, %v4951_v2  ;;  %v4991_v19 = vmul.f32 %v6396_v0, %v6396_v0 }
 0x242   : > { %5907 = vst [vmem:[%s8716_s14 + $0x58] sm:$0xff] %v5875_v24   ;;  %v6365_v38 = vpop.f32.mrb[24].mxu0 }
 0x243   : > { %5906 = vst [vmem:[%s8716_s14 + $0x50] sm:$0xff] %v5870_v10   ;;  %v4953_v26 = vadd.f32 %v6393_v14, %v4952_v59  ;;  %v5022_v35 = vadd.f32 %v5021_v36, %v4991_v19  ;;  %v6229_v34 = vpop.f32.mrb[24].mxu1  ;;  %v4709_v6 = vpop.f32.mrb[25].mxu0 }
 0x244   : > { %v6397_v49 = vadd.f32 %v6365_v38, %v6229_v34  ;;  %v2684_v23 = vpop.f32.mrb[25].mxu1  ;;  %v6366_v25 = vpop.f32.mrb[26].mxu0 }
 0x245   : > { %v5023_v1 = vadd.f32 %v5022_v35, %v4992_v37  ;;  %v6398_v7 = vadd.f32 %v4709_v6, %v2684_v23  ;;  %v4954_v61 = vadd.f32 %v6395_v11, %v4953_v26  ;;  %v6230_v5 = vpop.f32.mrb[26].mxu1  ;;  %v4712_v22 = vpop.f32.mrb[27].mxu0 }
 0x246   : > { %v6399_v44 = vadd.f32 %v6366_v25, %v6230_v5  ;;  %v2687_v3 = vpop.f32.mrb[27].mxu1  ;;  %v4996_v15 = vmul.f32 %v6397_v49, %v6397_v49 }
 0x247   : > { %v4955_v51 = vadd.f32 %v6398_v7, %v4954_v61  ;;  %v4994_v55 = vmul.f32 %v6398_v7, %v6398_v7  ;;  %v5024_v28 = vadd.f32 %v5023_v1, %v4993_v41  ;;  %v6400_v45 = vadd.f32 %v4712_v22, %v2687_v3 }
 0x248   : > { %v5885_v27 = vpack.c.bf16 %v6399_v44, %v6397_v49  ;;  %v4997_v8 = vmul.f32 %v6399_v44, %v6399_v44 }
 0x249   : > { %v5025_v53 = vadd.f32 %v5024_v28, %v4994_v55  ;;  %v5880_v29 = vpack.c.bf16 %v6400_v45, %v6398_v7  ;;  %v4956_v21 = vadd.f32 %v6400_v45, %v4955_v51  ;;  %v4995_v47 = vmul.f32 %v6400_v45, %v6400_v45 }
 0x24a   : > { %5909 = vst [vmem:[%s8716_s14 + $0x68] sm:$0xff] %v5885_v27   ;;  %v6369_v46 = vpop.f32.mrb[28].mxu0 }
 0x24b   : > { %5908 = vst [vmem:[%s8716_s14 + $0x60] sm:$0xff] %v5880_v29   ;;  %v4957_v60 = vadd.f32 %v6397_v49, %v4956_v21  ;;  %v5026_v20 = vadd.f32 %v5025_v53, %v4995_v47  ;;  %v6233_v42 = vpop.f32.mrb[28].mxu1  ;;  %v4725_v33 = vpop.f32.mrb[29].mxu0 }
 0x24c   : > { %v6401_v12 = vadd.f32 %v6369_v46, %v6233_v42  ;;  %v2700_v31 = vpop.f32.mrb[29].mxu1  ;;  %v6370_v57 = vpop.f32.mrb[30].mxu0 }
 0x24d   : > { %v5027_v48 = vadd.f32 %v5026_v20, %v4996_v15  ;;  %v6402_v62 = vadd.f32 %v4725_v33, %v2700_v31  ;;  %v4958_v56 = vadd.f32 %v6399_v44, %v4957_v60  ;;  %v6234_v40 = vpop.f32.mrb[30].mxu1  ;;  %v4728_v13 = vpop.f32.mrb[31].mxu0 }
 0x24e   : > { %v6403_v17 = vadd.f32 %v6370_v57, %v6234_v40  ;;  %v2703_v30 = vpop.f32.mrb[31].mxu1  ;;  %v5000_v18 = vmul.f32 %v6401_v12, %v6401_v12 }
 0x24f   : > { %v4959_v9 = vadd.f32 %v6402_v62, %v4958_v56  ;;  %v4998_v14 = vmul.f32 %v6402_v62, %v6402_v62  ;;  %v5028_v63 = vadd.f32 %v5027_v48, %v4997_v8  ;;  %v6404_v4 = vadd.f32 %v4728_v13, %v2703_v30 }
 0x250   : > { %v5895_v43 = vpack.c.bf16 %v6403_v17, %v6401_v12 }
 0x251   : > { %v5029_v16 = vadd.f32 %v5028_v63, %v4998_v14  ;;  %v5890_v58 = vpack.c.bf16 %v6404_v4, %v6402_v62  ;;  %v4960_v50 = vadd.f32 %v6404_v4, %v4959_v9  ;;  %v4999_v54 = vmul.f32 %v6404_v4, %v6404_v4 }
 0x252   : > { %5911 = vst [vmem:[%s8716_s14 + $0x78] sm:$0xff] %v5895_v43  }
 0x253   : > { %5910 = vst [vmem:[%s8716_s14 + $0x70] sm:$0xff] %v5890_v58   ;;  %v4961_v11 = vadd.f32 %v6401_v12, %v4960_v50  ;;  %v5030_v52 = vadd.f32 %v5029_v16, %v4999_v54 }
 0x254   : > { %6809 = shalt.err (!%p6806_p3)
}
 0x255   : > { %s6810_s9 = scalar_lea.hbm %s8742_s29, 2048  ;;  %s6814_s13 = scalar_lea.hbm %s8861_s2, 4096 }
 0x256   : > { %p6811_p4 = scmp.ne.s32.totalorder %s8742_s29, %s6810_s9  ;;  %p6815_p9 = scmp.lt.u32.totalorder %s8742_s29, %s8861_s2 }
 0x257   : > { %p6816_p10 = scmp.lt.u32.totalorder %s6814_s13, %s6810_s9  ;;  %p6818_p12 = scmp.lt.u32.totalorder %s6810_s9, %s8742_s29 }
 0x258   : > { %p6812_p7 = pnand %p6811_p4, %p6990_p5 }
 0x259   : > { %p6817_p11 = por %p6816_p10, %p6815_p9 }
 0x25a   : > { %p6813_p8 = pneg %p6812_p7 }
 0x25b   : > { %p6819_p13 = por %p6818_p12, %p6817_p11 }
 0x25d   : > { %p6820_p0 = pnand %p6819_p13, %p6813_p8 }
 0x25f   : > { %6823 = shalt.err (!%p6820_p0)
}
 0x260   : > { %s6921_s27 = smov 64   ;;  %s6922_s28 = smov 4   ;;  %v5001_v2 = vmul.f32 %v6403_v17, %v6403_v17  ;;  %v4962_v32 = vadd.f32 %v6403_v17, %v4961_v11  ;;  %v5031_v39 = vadd.f32 %v5030_v52, %v5000_v18 }
 0x261   : > { %6640 = dma.vmem_to_hbm [thread:$0]  (%p6990_p5), %s8744_s23, 2048, %s8742_s29, %s5041_s30, %s6921_s27, %s6921_s27, %s6922_s28  }
 0x262   : > { %v4963_v0 = vrot.slane %v4962_v32, 4  ;;  %v5032_v24 = vadd.f32 %v5031_v39, %v5001_v2  ;;  %s5045_s5 = sand.u32 1, %s6971_s19   ;;  %s5780_s6 = sshll.u32 %s6971_s19, 4 }
 0x263   : > { %s200_s7 = scalar_lea.vmem [#allocation4], %s8713_s12  ;;  %s206_s23 = scalar_lea.vmem [#allocation6], %s8713_s12 }
 0x264   : > { %v5033_v36 = vrot.slane %v5032_v24, 4  ;;  %v4964_v10 = vadd.f32 %v4963_v0, %v4962_v32  ;;  %s5078_s8 = sshll.u32 %s200_s7, 4  ;;  %s5091_s29 = sshll.u32 %s206_s23, 4  ;;  %s8783_s8 = int_to_ptr.vmem [resolvable:$true] %s5078_s8  ;;  %s8790_s29 = int_to_ptr.vmem [resolvable:$true] %s5091_s29 }
 0x265   : > { %s8781_s10 = scalar_lea.hbm %s8862_s3, %s5780_s6  ;;  %s8788_s13 = scalar_lea.hbm %s8863_s4, %s5780_s6 }
 0x266   : > { %v4965_v59 = vrot.slane %v4964_v10, 2  ;;  %v5034_v19 = vadd.f32 %v5033_v36, %v5032_v24  ;;  %s8792_s14 = scalar_lea.sflag [#allocation5], %s5045_s5  ;;  %s6824_s22 = scalar_lea.vmem %s8783_s8, 16 }
 0x267   : > { %p6825_p1 = scmp.ne.s32.totalorder %s8783_s8, %s6824_s22  ;;  %s6923_s27 = smov [#allocation4]  }
 0x268   : > { %v4966_v38 = vadd.f32 %v4965_v59, %v4964_v10  ;;  %v5035_v37 = vrot.slane %v5034_v19, 2  ;;  %s6828_s28 = sshll.u32 %s6923_s27, 4  ;;  %s6829_s28 = int_to_ptr.vmem [resolvable:$false] %s6828_s28 }
 0x269   : > { %p6826_p2 = pnand %p6825_p1, %p6990_p5  ;;  %s6830_s30 = scalar_lea.vmem %s6829_s28, 32 }
 0x26a   : > { %v4967_v26 = vrot.slane %v4966_v38, 1  ;;  %v5036_v35 = vadd.f32 %v5035_v37, %v5034_v19  ;;  %p6831_p4 = scmp.lt.s32.totalorder %s8783_s8, %s6829_s28  ;;  %p6832_p7 = scmp.lt.s32.totalorder %s6830_s30, %s6824_s22 }
 0x26b   : > { %p6827_p3 = pneg %p6826_p2 }
 0x26c   : > { %v4968_v34 = vadd.f32 %v4967_v26, %v4966_v38  ;;  %v5037_v6 = vrot.slane %v5036_v35, 1  ;;  %p6833_p8 = por %p6832_p7, %p6831_p4 }
 0x26e   : > { %4969 = vst [vmem:[%s200_s7] sm:$0x1] %v4968_v34  ;;  %v5038_v49 = vadd.f32 %v5037_v6, %v5036_v35  ;;  %p6834_p9 = pnand %p6833_p8, %p6827_p3 }
 0x270   : > { %6837 = shalt.err (!%p6834_p9)
}
 0x271   : > { %s6838_s5 = scalar_lea.hbm %s8781_s10, 16  ;;  %s6842_s9 = scalar_lea.hbm %s8862_s3, 32 }
 0x272   : > { %p6839_p10 = scmp.ne.s32.totalorder %s8781_s10, %s6838_s5  ;;  %p6843_p13 = scmp.lt.u32.totalorder %s8781_s10, %s8862_s3 }
 0x273   : > { %p6844_p0 = scmp.lt.u32.totalorder %s6842_s9, %s6838_s5  ;;  %p6846_p2 = scmp.lt.u32.totalorder %s6838_s5, %s8781_s10 }
 0x274   : > { %p6840_p11 = pnand %p6839_p10, %p6990_p5 }
 0x275   : > { %p6845_p1 = por %p6844_p0, %p6843_p13 }
 0x276   : > { %p6841_p12 = pneg %p6840_p11 }
 0x277   : > { %p6847_p3 = por %p6846_p2, %p6845_p1 }
 0x279   : > { %p6848_p4 = pnand %p6847_p3, %p6841_p12 }
 0x27b   : > { %6851 = shalt.err (!%p6848_p4)
}
 0x27c   : > { %6641 = dma.vmem_to_hbm [thread:$0]  (%p6990_p5), %s8783_s8, 16, %s8781_s10, %s8792_s14   ;;  %5039 = vst [vmem:[%s206_s23] sm:$0x1] %v5038_v49 }
 0x27d   : > { %s6852_s22 = scalar_lea.vmem %s8790_s29, 16  ;;  %s6924_s27 = smov [#allocation6]  }
 0x27e   : > { %p6853_p7 = scmp.ne.s32.totalorder %s8790_s29, %s6852_s22  ;;  %s6856_s28 = sshll.u32 %s6924_s27, 4  ;;  %s6857_s28 = int_to_ptr.vmem [resolvable:$false] %s6856_s28 }
 0x27f   : > { %s6858_s30 = scalar_lea.vmem %s6857_s28, 32  ;;  %p6859_p10 = scmp.lt.s32.totalorder %s8790_s29, %s6857_s28 }
 0x280   : > { %p6854_p8 = pnand %p6853_p7, %p6990_p5  ;;  %p6860_p11 = scmp.lt.s32.totalorder %s6858_s30, %s6852_s22 }
 0x282   : > { %p6855_p9 = pneg %p6854_p8  ;;  %p6861_p12 = por %p6860_p11, %p6859_p10 }
 0x284   : > { %p6862_p13 = pnand %p6861_p12, %p6855_p9 }
 0x286   : > { %6865 = shalt.err (!%p6862_p13)
}
 0x287   : > { %s6866_s12 = scalar_lea.hbm %s8788_s13, 16  ;;  %s6870_s10 = scalar_lea.hbm %s8863_s4, 32 }
 0x288   : > { %p6867_p0 = scmp.ne.s32.totalorder %s8788_s13, %s6866_s12  ;;  %p6871_p3 = scmp.lt.u32.totalorder %s8788_s13, %s8863_s4 }
 0x289   : > { %p6872_p4 = scmp.lt.u32.totalorder %s6870_s10, %s6866_s12  ;;  %p6874_p8 = scmp.lt.u32.totalorder %s6866_s12, %s8788_s13 }
 0x28a   : > { %p6868_p1 = pnand %p6867_p0, %p6990_p5 }
 0x28b   : > { %p6873_p7 = por %p6872_p4, %p6871_p3 }
 0x28c   : > { %p6869_p2 = pneg %p6868_p1 }
 0x28d   : > { %p6875_p9 = por %p6874_p8, %p6873_p7 }
 0x28f   : > { %p6876_p10 = pnand %p6875_p9, %p6869_p2 }
 0x291   : > { %6879 = shalt.err (!%p6876_p10)
}
 0x292   : > { %6642 = dma.vmem_to_hbm [thread:$0]  (%p6990_p5), %s8790_s29, 16, %s8788_s13, %s8792_s14  }
 0x293 PF: > { %p6656_p11 = scmp.ge.s32.totalorder %s6918_s18, 2  ;;  %s5103_s7 = sand.u32 1, %s6906_s15  }
 0x294   : > { %s5104_s9 = scalar_lea.sflag [#allocation3], %s5103_s7 }
 0x295   : > { %p6647_p12 = pnand %p6656_p11, %p6994_p6 }
 0x297   : > { %6897 = dma.done.wait (!%p6647_p12), %s5104_s9, 2048  }
 0x298   : > { %6899 = vsyncadd (!%p6647_p12), %s5104_s9, 4294965248  ;;  %s5112_s19 = sand.u32 1, %s5203_s20  }
 0x299   : > { %s5113_s11 = scalar_lea.sflag [#allocation5], %s5112_s19 }
 0x29a   : > { %6901 = dma.done.wait (!%p6647_p12), %s5113_s11, 32  }
 0x29b   : > { %6903 = vsyncadd (!%p6647_p12), %s5113_s11, 4294967264  ;;  %p18_p5 = scmp.ge.s32.totalorder %s6975_s21, 4   ;;  %s8933_s15 = smov %s6910_s16 }
 0x29c   : > { %s8934_s16 = smov %s6914_s17  ;;  %s8935_s17 = smov %s6988_s24 }
 0x29d   : > { %s8936_s18 = smov %s6975_s21  ;;  %20 = sbr.rel (!%p18_p5) target bundleno = 5 (0x5), region = 105 }
 0x2a4   :  { %5125 = vsyncpa [#allocation3], 1 }
 0x2a5   :  { %5127 = vsyncpa [#allocation3 + $0x1], 1 }
 0x2a6   :  { %5128 = vsyncpa [#allocation5], 1 }
 0x2a7   :  { %5130 = vsyncpa [#allocation5 + $0x1], 1 }

</bundles_post_ra>
